<compile_context>
chip_gen: v7x
topology: tpu7x:2x2x1
jax: 0.10.0
libtpu: 0.0.40
codegen_flags: <defaults>
</compile_context>

<pallas_src>
import functools

import jax
import jax.numpy as jnp
from jax.experimental import pallas as pl
from jax.experimental.pallas import tpu as pltpu


# ----------------------------------------------------------------------------
# Fused Pallas kernel: 4 GRU layers + fc1 head, no grid (everything in VMEM).
# ----------------------------------------------------------------------------
def fused_gru_kernel(*refs, layer_num, seq_len, batch, hidden):
    """Ref layout:
      refs[0]                      x_ref    (T*N, F0)  time-major, flattened
      per layer l in [0, layer_num):
        refs[1+4l+0]  w_ih_ref  (F_in, 3H)  packed columns [r | z | n]
        refs[1+4l+1]  w_hh_ref  (H,   3H)
        refs[1+4l+2]  b_c_ref   (1,   3H)   [b_ir+b_hr | b_iz+b_hz | b_in]
        refs[1+4l+3]  b_hn_ref  (1,   H)
      refs[-3]  fc_w_ref  (H, 1)
      refs[-2]  fc_b_ref  (1, 1)
      refs[-1]  out_ref   (N, 1)
    """
    T, N, H = seq_len, batch, hidden
    x_ref = refs[0]
    layer_refs = refs[1:1 + 4 * layer_num]
    fc_w_ref, fc_b_ref, out_ref = refs[1 + 4 * layer_num:]

    seq = x_ref[...].astype(jnp.float32)                       # (T*N, F_in)

    for l in range(layer_num):
        w_ih = layer_refs[4 * l + 0][...]                      # (F_in, 3H)
        w_hh = layer_refs[4 * l + 1][...]                      # (H, 3H)
        b_c = layer_refs[4 * l + 2][...]                       # (1, 3H)
        b_hn = layer_refs[4 * l + 3][...]                      # (1, H)

        # Hoisted input projection: one MXU matmul for all timesteps.
        gates_x = jnp.dot(seq, w_ih,
                          preferred_element_type=jnp.float32) + b_c   # (T*N, 3H)

        h = jnp.zeros((N, H), jnp.float32)                     # h0 = 0 (torch default)
        outs = []
        for t in range(T):                                     # static unroll (T small)
            gx = gates_x[t * N:(t + 1) * N, :]                 # (N, 3H) static slice
            gh = jnp.dot(h, w_hh,
                         preferred_element_type=jnp.float32)   # (N, 3H)
            r = jax.nn.sigmoid(gx[:, 0:H] + gh[:, 0:H])
            z = jax.nn.sigmoid(gx[:, H:2 * H] + gh[:, H:2 * H])
            n = jnp.tanh(gx[:, 2 * H:3 * H] + r * (gh[:, 2 * H:3 * H] + b_hn))
            h = (1.0 - z) * n + z * h                          # PyTorch GRU update
            outs.append(h)
        seq = jnp.concatenate(outs, axis=0)                    # (T*N, H) next-layer input
        # Inference: inter-layer dropout is a no-op.

    h_last = seq[(T - 1) * N:T * N, :]                         # (N, H) == x[:, -1, :]
    out_ref[...] = (
        jnp.dot(h_last, fc_w_ref[...], preferred_element_type=jnp.float32)
        + fc_b_ref[...]
    ).astype(out_ref.dtype)


# ----------------------------------------------------------------------------
# Wrapper
# ----------------------------------------------------------------------------
@jax.jit
def gru_forward(x, packed):
    """x: (N, T, F) batch-first, like the PyTorch module. Returns (N, 1)."""
    N, T, F = x.shape
    H = packed["fc1_w"].shape[0]
    layer_num = len(packed["layers"])

    # Time-major, flattened to a 2-D lane-dense slab outside the kernel.
    x_tm = jnp.transpose(x, (1, 0, 2)).reshape(T * N, F).astype(jnp.float32)

    args = [x_tm]
    for layer in packed["layers"]:
        args.extend(layer)                 # w_ih_packed, w_hh_packed, b_c, b_hn
    args += [packed["fc1_w"], packed["fc1_b"]]

    kernel = functools.partial(
        fused_gru_kernel,
        layer_num=layer_num, seq_len=T, batch=N, hidden=H)

    # No grid: whole working set (< 100 KiB at these dims) lives in VMEM;
    # only the (N, 1) result goes back to HBM.
    # TODO(synk): for large N on v7x, add a leading 'parallel' batch grid axis.
    return pl.pallas_call(
        kernel,
        out_shape=jax.ShapeDtypeStruct((N, 1), jnp.float32),
    )(*args)


# ----------------------------------------------------------------------------
# Parameter init (PyTorch-style U(-1/sqrt(H), 1/sqrt(H)), gate order [r, z, n])
# ----------------------------------------------------------------------------
def init_params(key, layer_num, n_input, n_filter):
    bound = 1.0 / jnp.sqrt(n_filter)
    layers = []
    for layer in range(layer_num):
        f_in = n_input if layer == 0 else n_filter
        key, k1, k2, k3, k4 = jax.random.split(key, 5)
        w_ih = jax.random.uniform(k1, (3, f_in, n_filter), jnp.float32, -bound, bound)
        w_hh = jax.random.uniform(k2, (3, n_filter, n_filter), jnp.float32, -bound, bound)
        b_ih = jax.random.uniform(k3, (3, 1, n_filter), jnp.float32, -bound, bound)
        b_hh = jax.random.uniform(k4, (3, 1, n_filter), jnp.float32, -bound, bound)
        layers.append((w_ih, w_hh, b_ih, b_hh))
    key, k5, k6 = jax.random.split(key, 3)
    fc1_w = jax.random.uniform(k5, (n_filter, 1), jnp.float32, -bound, bound)
    fc1_b = jax.random.uniform(k6, (1, 1), jnp.float32, -bound, bound)
    return {"gru_layers": layers, "fc1_w": fc1_w, "fc1_b": fc1_b}


def pack_params(params):
    """Convert per-gate params into the packed kernel layout."""
    layers = []
    for (w_ih, w_hh, b_ih, b_hh) in params["gru_layers"]:
        w_ih_p = jnp.concatenate([w_ih[0], w_ih[1], w_ih[2]], axis=1)   # (F_in, 3H)
        w_hh_p = jnp.concatenate([w_hh[0], w_hh[1], w_hh[2]], axis=1)   # (H, 3H)
        b_c = jnp.concatenate(
            [b_ih[0] + b_hh[0], b_ih[1] + b_hh[1], b_ih[2]], axis=1)    # (1, 3H)
        b_hn = b_hh[2]                                                  # (1, H)
        layers.append((w_ih_p, w_hh_p, b_c, b_hn))
    return {"layers": layers, "fc1_w": params["fc1_w"], "fc1_b": params["fc1_b"]}


# ----------------------------------------------------------------------------
# Pure-JAX reference (independent structure, for correctness check)
# ----------------------------------------------------------------------------
def gru_forward_ref(x, params):
    x = x.astype(jnp.float32)
    N = x.shape[0]
    H = params["fc1_w"].shape[0]
    h_seq = x
    for (w_ih, w_hh, b_ih, b_hh) in params["gru_layers"]:
        h = jnp.zeros((N, H), jnp.float32)
        outs = []
        for t in range(h_seq.shape[1]):
            xt = h_seq[:, t, :]
            i_r = xt @ w_ih[0] + b_ih[0]
            i_z = xt @ w_ih[1] + b_ih[1]
            i_n = xt @ w_ih[2] + b_ih[2]
            h_r = h @ w_hh[0] + b_hh[0]
            h_z = h @ w_hh[1] + b_hh[1]
            h_n = h @ w_hh[2] + b_hh[2]
            r = jax.nn.sigmoid(i_r + h_r)
            z = jax.nn.sigmoid(i_z + h_z)
            n = jnp.tanh(i_n + r * h_n)
            h = (1.0 - z) * n + z * h
            outs.append(h)
        h_seq = jnp.stack(outs, axis=1)
    return h_seq[:, -1, :] @ params["fc1_w"] + params["fc1_b"]


# ----------------------------------------------------------------------------
if __name__ == "__main__":
    layer_num = 4
    n_input = 16      # feature dim
    n_filter = 32     # hidden dim
    seq_len = 8
    batch = 2

    key = jax.random.PRNGKey(0)
    k_x, k_p = jax.random.split(key)
    x = jax.random.normal(k_x, (batch, seq_len, n_input), jnp.float32)
    params = init_params(k_p, layer_num, n_input, n_filter)
    packed = pack_params(params)

    out = gru_forward(x, packed)
    out = jax.block_until_ready(out)
    assert out.shape == (batch, 1), out.shape

    ref = gru_forward_ref(x, params)
    assert jnp.allclose(out, ref, rtol=1e-5, atol=1e-5), (out, ref)

    print("KERNEL_OK")
</pallas_src>

<mosaic_0001>
module attributes {stable_mosaic.version = 11 : i64} {
  func.func @fused_gru_kernel(%arg0: memref<16x16xf32, #tpu.memory_space<vmem>>, %arg1: memref<16x96xf32, #tpu.memory_space<vmem>>, %arg2: memref<32x96xf32, #tpu.memory_space<vmem>>, %arg3: memref<1x96xf32, #tpu.memory_space<vmem>>, %arg4: memref<1x32xf32, #tpu.memory_space<vmem>>, %arg5: memref<32x96xf32, #tpu.memory_space<vmem>>, %arg6: memref<32x96xf32, #tpu.memory_space<vmem>>, %arg7: memref<1x96xf32, #tpu.memory_space<vmem>>, %arg8: memref<1x32xf32, #tpu.memory_space<vmem>>, %arg9: memref<32x96xf32, #tpu.memory_space<vmem>>, %arg10: memref<32x96xf32, #tpu.memory_space<vmem>>, %arg11: memref<1x96xf32, #tpu.memory_space<vmem>>, %arg12: memref<1x32xf32, #tpu.memory_space<vmem>>, %arg13: memref<32x96xf32, #tpu.memory_space<vmem>>, %arg14: memref<32x96xf32, #tpu.memory_space<vmem>>, %arg15: memref<1x96xf32, #tpu.memory_space<vmem>>, %arg16: memref<1x32xf32, #tpu.memory_space<vmem>>, %arg17: memref<32x1xf32, #tpu.memory_space<vmem>>, %arg18: memref<1x1xf32, #tpu.memory_space<vmem>>, %arg19: memref<2x1xf32, #tpu.memory_space<vmem>>) attributes {dimension_semantics = [], scalar_prefetch = 0 : i64, scratch_operands = 0 : i64, tpu.core_type = #tpu.core_type<tc>} {
    %c0 = arith.constant 0 : index
    %c0_0 = arith.constant 0 : index
    %0 = vector.load %arg0[%c0, %c0_0] : memref<16x16xf32, #tpu.memory_space<vmem>>, vector<16x16xf32>
    %c0_1 = arith.constant 0 : index
    %c0_2 = arith.constant 0 : index
    %1 = vector.load %arg1[%c0_1, %c0_2] : memref<16x96xf32, #tpu.memory_space<vmem>>, vector<16x96xf32>
    %c0_3 = arith.constant 0 : index
    %c0_4 = arith.constant 0 : index
    %2 = vector.load %arg2[%c0_3, %c0_4] : memref<32x96xf32, #tpu.memory_space<vmem>>, vector<32x96xf32>
    %c0_5 = arith.constant 0 : index
    %c0_6 = arith.constant 0 : index
    %3 = vector.load %arg3[%c0_5, %c0_6] : memref<1x96xf32, #tpu.memory_space<vmem>>, vector<1x96xf32>
    %c0_7 = arith.constant 0 : index
    %c0_8 = arith.constant 0 : index
    %4 = vector.load %arg4[%c0_7, %c0_8] : memref<1x32xf32, #tpu.memory_space<vmem>>, vector<1x32xf32>
    %cst = arith.constant dense<0.000000e+00> : vector<16x96xf32>
    %5 = tpu.matmul %0, %1, %cst {dimension_numbers = #tpu.dot_dimension_numbers<[1], [0], [0], [1], [0, 0, 1, 1], [], []>} : vector<16x16xf32>, vector<16x96xf32>, vector<16x96xf32> -> vector<16x96xf32>
    %6 = vector.broadcast %3 : vector<1x96xf32> to vector<16x96xf32>
    %7 = arith.addf %5, %6 : vector<16x96xf32>
    %cst_9 = arith.constant 0.000000e+00 : f32
    %8 = vector.broadcast %cst_9 : f32 to vector<2x32xf32>
    %9 = vector.extract_strided_slice %7 {offsets = [0, 0], sizes = [2, 96], strides = [1, 1]} : vector<16x96xf32> to vector<2x96xf32>
    %cst_10 = arith.constant dense<0.000000e+00> : vector<2x96xf32>
    %10 = tpu.matmul %8, %2, %cst_10 {dimension_numbers = #tpu.dot_dimension_numbers<[1], [0], [0], [1], [0, 0, 1, 1], [], []>} : vector<2x32xf32>, vector<32x96xf32>, vector<2x96xf32> -> vector<2x96xf32>
    %11 = vector.extract_strided_slice %9 {offsets = [0, 0], sizes = [2, 32], strides = [1, 1]} : vector<2x96xf32> to vector<2x32xf32>
    %12 = vector.extract_strided_slice %10 {offsets = [0, 0], sizes = [2, 32], strides = [1, 1]} : vector<2x96xf32> to vector<2x32xf32>
    %13 = arith.addf %11, %12 : vector<2x32xf32>
    %14 = arith.negf %13 : vector<2x32xf32>
    %15 = math.exp %14 : vector<2x32xf32>
    %cst_11 = arith.constant 1.000000e+00 : f32
    %16 = vector.broadcast %cst_11 : f32 to vector<2x32xf32>
    %17 = arith.addf %16, %15 : vector<2x32xf32>
    %18 = arith.divf %16, %17 : vector<2x32xf32>
    %19 = vector.extract_strided_slice %9 {offsets = [0, 32], sizes = [2, 32], strides = [1, 1]} : vector<2x96xf32> to vector<2x32xf32>
    %20 = vector.extract_strided_slice %10 {offsets = [0, 32], sizes = [2, 32], strides = [1, 1]} : vector<2x96xf32> to vector<2x32xf32>
    %21 = arith.addf %19, %20 : vector<2x32xf32>
    %22 = arith.negf %21 : vector<2x32xf32>
    %23 = math.exp %22 : vector<2x32xf32>
    %cst_12 = arith.constant 1.000000e+00 : f32
    %24 = vector.broadcast %cst_12 : f32 to vector<2x32xf32>
    %25 = arith.addf %24, %23 : vector<2x32xf32>
    %26 = arith.divf %24, %25 : vector<2x32xf32>
    %27 = vector.extract_strided_slice %9 {offsets = [0, 64], sizes = [2, 32], strides = [1, 1]} : vector<2x96xf32> to vector<2x32xf32>
    %28 = vector.extract_strided_slice %10 {offsets = [0, 64], sizes = [2, 32], strides = [1, 1]} : vector<2x96xf32> to vector<2x32xf32>
    %29 = vector.broadcast %4 : vector<1x32xf32> to vector<2x32xf32>
    %30 = arith.addf %28, %29 : vector<2x32xf32>
    %31 = arith.mulf %18, %30 : vector<2x32xf32>
    %32 = arith.addf %27, %31 : vector<2x32xf32>
    %33 = math.tanh %32 : vector<2x32xf32>
    %cst_13 = arith.constant 1.000000e+00 : f32
    %34 = vector.broadcast %cst_13 : f32 to vector<2x32xf32>
    %35 = arith.subf %34, %26 : vector<2x32xf32>
    %36 = arith.mulf %35, %33 : vector<2x32xf32>
    %37 = arith.mulf %26, %8 : vector<2x32xf32>
    %38 = arith.addf %36, %37 : vector<2x32xf32>
    %39 = vector.extract_strided_slice %7 {offsets = [2, 0], sizes = [2, 96], strides = [1, 1]} : vector<16x96xf32> to vector<2x96xf32>
    %cst_14 = arith.constant dense<0.000000e+00> : vector<2x96xf32>
    %40 = tpu.matmul %38, %2, %cst_14 {dimension_numbers = #tpu.dot_dimension_numbers<[1], [0], [0], [1], [0, 0, 1, 1], [], []>} : vector<2x32xf32>, vector<32x96xf32>, vector<2x96xf32> -> vector<2x96xf32>
    %41 = vector.extract_strided_slice %39 {offsets = [0, 0], sizes = [2, 32], strides = [1, 1]} : vector<2x96xf32> to vector<2x32xf32>
    %42 = vector.extract_strided_slice %40 {offsets = [0, 0], sizes = [2, 32], strides = [1, 1]} : vector<2x96xf32> to vector<2x32xf32>
    %43 = arith.addf %41, %42 : vector<2x32xf32>
    %44 = arith.negf %43 : vector<2x32xf32>
    %45 = math.exp %44 : vector<2x32xf32>
    %cst_15 = arith.constant 1.000000e+00 : f32
    %46 = vector.broadcast %cst_15 : f32 to vector<2x32xf32>
    %47 = arith.addf %46, %45 : vector<2x32xf32>
    %48 = arith.divf %46, %47 : vector<2x32xf32>
    %49 = vector.extract_strided_slice %39 {offsets = [0, 32], sizes = [2, 32], strides = [1, 1]} : vector<2x96xf32> to vector<2x32xf32>
    %50 = vector.extract_strided_slice %40 {offsets = [0, 32], sizes = [2, 32], strides = [1, 1]} : vector<2x96xf32> to vector<2x32xf32>
    %51 = arith.addf %49, %50 : vector<2x32xf32>
    %52 = arith.negf %51 : vector<2x32xf32>
    %53 = math.exp %52 : vector<2x32xf32>
    %cst_16 = arith.constant 1.000000e+00 : f32
    %54 = vector.broadcast %cst_16 : f32 to vector<2x32xf32>
    %55 = arith.addf %54, %53 : vector<2x32xf32>
    %56 = arith.divf %54, %55 : vector<2x32xf32>
    %57 = vector.extract_strided_slice %39 {offsets = [0, 64], sizes = [2, 32], strides = [1, 1]} : vector<2x96xf32> to vector<2x32xf32>
    %58 = vector.extract_strided_slice %40 {offsets = [0, 64], sizes = [2, 32], strides = [1, 1]} : vector<2x96xf32> to vector<2x32xf32>
    %59 = vector.broadcast %4 : vector<1x32xf32> to vector<2x32xf32>
    %60 = arith.addf %58, %59 : vector<2x32xf32>
    %61 = arith.mulf %48, %60 : vector<2x32xf32>
    %62 = arith.addf %57, %61 : vector<2x32xf32>
    %63 = math.tanh %62 : vector<2x32xf32>
    %cst_17 = arith.constant 1.000000e+00 : f32
    %64 = vector.broadcast %cst_17 : f32 to vector<2x32xf32>
    %65 = arith.subf %64, %56 : vector<2x32xf32>
    %66 = arith.mulf %65, %63 : vector<2x32xf32>
    %67 = arith.mulf %56, %38 : vector<2x32xf32>
    %68 = arith.addf %66, %67 : vector<2x32xf32>
    %69 = vector.extract_strided_slice %7 {offsets = [4, 0], sizes = [2, 96], strides = [1, 1]} : vector<16x96xf32> to vector<2x96xf32>
    %cst_18 = arith.constant dense<0.000000e+00> : vector<2x96xf32>
    %70 = tpu.matmul %68, %2, %cst_18 {dimension_numbers = #tpu.dot_dimension_numbers<[1], [0], [0], [1], [0, 0, 1, 1], [], []>} : vector<2x32xf32>, vector<32x96xf32>, vector<2x96xf32> -> vector<2x96xf32>
    %71 = vector.extract_strided_slice %69 {offsets = [0, 0], sizes = [2, 32], strides = [1, 1]} : vector<2x96xf32> to vector<2x32xf32>
    %72 = vector.extract_strided_slice %70 {offsets = [0, 0], sizes = [2, 32], strides = [1, 1]} : vector<2x96xf32> to vector<2x32xf32>
    %73 = arith.addf %71, %72 : vector<2x32xf32>
    %74 = arith.negf %73 : vector<2x32xf32>
    %75 = math.exp %74 : vector<2x32xf32>
    %cst_19 = arith.constant 1.000000e+00 : f32
    %76 = vector.broadcast %cst_19 : f32 to vector<2x32xf32>
    %77 = arith.addf %76, %75 : vector<2x32xf32>
    %78 = arith.divf %76, %77 : vector<2x32xf32>
    %79 = vector.extract_strided_slice %69 {offsets = [0, 32], sizes = [2, 32], strides = [1, 1]} : vector<2x96xf32> to vector<2x32xf32>
    %80 = vector.extract_strided_slice %70 {offsets = [0, 32], sizes = [2, 32], strides = [1, 1]} : vector<2x96xf32> to vector<2x32xf32>
    %81 = arith.addf %79, %80 : vector<2x32xf32>
    %82 = arith.negf %81 : vector<2x32xf32>
    %83 = math.exp %82 : vector<2x32xf32>
    %cst_20 = arith.constant 1.000000e+00 : f32
    %84 = vector.broadcast %cst_20 : f32 to vector<2x32xf32>
    %85 = arith.addf %84, %83 : vector<2x32xf32>
    %86 = arith.divf %84, %85 : vector<2x32xf32>
    %87 = vector.extract_strided_slice %69 {offsets = [0, 64], sizes = [2, 32], strides = [1, 1]} : vector<2x96xf32> to vector<2x32xf32>
    %88 = vector.extract_strided_slice %70 {offsets = [0, 64], sizes = [2, 32], strides = [1, 1]} : vector<2x96xf32> to vector<2x32xf32>
    %89 = vector.broadcast %4 : vector<1x32xf32> to vector<2x32xf32>
    %90 = arith.addf %88, %89 : vector<2x32xf32>
    %91 = arith.mulf %78, %90 : vector<2x32xf32>
    %92 = arith.addf %87, %91 : vector<2x32xf32>
    %93 = math.tanh %92 : vector<2x32xf32>
    %cst_21 = arith.constant 1.000000e+00 : f32
    %94 = vector.broadcast %cst_21 : f32 to vector<2x32xf32>
    %95 = arith.subf %94, %86 : vector<2x32xf32>
    %96 = arith.mulf %95, %93 : vector<2x32xf32>
    %97 = arith.mulf %86, %68 : vector<2x32xf32>
    %98 = arith.addf %96, %97 : vector<2x32xf32>
    %99 = vector.extract_strided_slice %7 {offsets = [6, 0], sizes = [2, 96], strides = [1, 1]} : vector<16x96xf32> to vector<2x96xf32>
    %cst_22 = arith.constant dense<0.000000e+00> : vector<2x96xf32>
    %100 = tpu.matmul %98, %2, %cst_22 {dimension_numbers = #tpu.dot_dimension_numbers<[1], [0], [0], [1], [0, 0, 1, 1], [], []>} : vector<2x32xf32>, vector<32x96xf32>, vector<2x96xf32> -> vector<2x96xf32>
    %101 = vector.extract_strided_slice %99 {offsets = [0, 0], sizes = [2, 32], strides = [1, 1]} : vector<2x96xf32> to vector<2x32xf32>
    %102 = vector.extract_strided_slice %100 {offsets = [0, 0], sizes = [2, 32], strides = [1, 1]} : vector<2x96xf32> to vector<2x32xf32>
    %103 = arith.addf %101, %102 : vector<2x32xf32>
    %104 = arith.negf %103 : vector<2x32xf32>
    %105 = math.exp %104 : vector<2x32xf32>
    %cst_23 = arith.constant 1.000000e+00 : f32
    %106 = vector.broadcast %cst_23 : f32 to vector<2x32xf32>
    %107 = arith.addf %106, %105 : vector<2x32xf32>
    %108 = arith.divf %106, %107 : vector<2x32xf32>
    %109 = vector.extract_strided_slice %99 {offsets = [0, 32], sizes = [2, 32], strides = [1, 1]} : vector<2x96xf32> to vector<2x32xf32>
    %110 = vector.extract_strided_slice %100 {offsets = [0, 32], sizes = [2, 32], strides = [1, 1]} : vector<2x96xf32> to vector<2x32xf32>
    %111 = arith.addf %109, %110 : vector<2x32xf32>
    %112 = arith.negf %111 : vector<2x32xf32>
    %113 = math.exp %112 : vector<2x32xf32>
    %cst_24 = arith.constant 1.000000e+00 : f32
    %114 = vector.broadcast %cst_24 : f32 to vector<2x32xf32>
    %115 = arith.addf %114, %113 : vector<2x32xf32>
    %116 = arith.divf %114, %115 : vector<2x32xf32>
    %117 = vector.extract_strided_slice %99 {offsets = [0, 64], sizes = [2, 32], strides = [1, 1]} : vector<2x96xf32> to vector<2x32xf32>
    %118 = vector.extract_strided_slice %100 {offsets = [0, 64], sizes = [2, 32], strides = [1, 1]} : vector<2x96xf32> to vector<2x32xf32>
    %119 = vector.broadcast %4 : vector<1x32xf32> to vector<2x32xf32>
    %120 = arith.addf %118, %119 : vector<2x32xf32>
    %121 = arith.mulf %108, %120 : vector<2x32xf32>
    %122 = arith.addf %117, %121 : vector<2x32xf32>
    %123 = math.tanh %122 : vector<2x32xf32>
    %cst_25 = arith.constant 1.000000e+00 : f32
    %124 = vector.broadcast %cst_25 : f32 to vector<2x32xf32>
    %125 = arith.subf %124, %116 : vector<2x32xf32>
    %126 = arith.mulf %125, %123 : vector<2x32xf32>
    %127 = arith.mulf %116, %98 : vector<2x32xf32>
    %128 = arith.addf %126, %127 : vector<2x32xf32>
    %129 = vector.extract_strided_slice %7 {offsets = [8, 0], sizes = [2, 96], strides = [1, 1]} : vector<16x96xf32> to vector<2x96xf32>
    %cst_26 = arith.constant dense<0.000000e+00> : vector<2x96xf32>
    %130 = tpu.matmul %128, %2, %cst_26 {dimension_numbers = #tpu.dot_dimension_numbers<[1], [0], [0], [1], [0, 0, 1, 1], [], []>} : vector<2x32xf32>, vector<32x96xf32>, vector<2x96xf32> -> vector<2x96xf32>
    %131 = vector.extract_strided_slice %129 {offsets = [0, 0], sizes = [2, 32], strides = [1, 1]} : vector<2x96xf32> to vector<2x32xf32>
    %132 = vector.extract_strided_slice %130 {offsets = [0, 0], sizes = [2, 32], strides = [1, 1]} : vector<2x96xf32> to vector<2x32xf32>
    %133 = arith.addf %131, %132 : vector<2x32xf32>
    %134 = arith.negf %133 : vector<2x32xf32>
    %135 = math.exp %134 : vector<2x32xf32>
    %cst_27 = arith.constant 1.000000e+00 : f32
    %136 = vector.broadcast %cst_27 : f32 to vector<2x32xf32>
    %137 = arith.addf %136, %135 : vector<2x32xf32>
    %138 = arith.divf %136, %137 : vector<2x32xf32>
    %139 = vector.extract_strided_slice %129 {offsets = [0, 32], sizes = [2, 32], strides = [1, 1]} : vector<2x96xf32> to vector<2x32xf32>
    %140 = vector.extract_strided_slice %130 {offsets = [0, 32], sizes = [2, 32], strides = [1, 1]} : vector<2x96xf32> to vector<2x32xf32>
    %141 = arith.addf %139, %140 : vector<2x32xf32>
    %142 = arith.negf %141 : vector<2x32xf32>
    %143 = math.exp %142 : vector<2x32xf32>
    %cst_28 = arith.constant 1.000000e+00 : f32
    %144 = vector.broadcast %cst_28 : f32 to vector<2x32xf32>
    %145 = arith.addf %144, %143 : vector<2x32xf32>
    %146 = arith.divf %144, %145 : vector<2x32xf32>
    %147 = vector.extract_strided_slice %129 {offsets = [0, 64], sizes = [2, 32], strides = [1, 1]} : vector<2x96xf32> to vector<2x32xf32>
    %148 = vector.extract_strided_slice %130 {offsets = [0, 64], sizes = [2, 32], strides = [1, 1]} : vector<2x96xf32> to vector<2x32xf32>
    %149 = vector.broadcast %4 : vector<1x32xf32> to vector<2x32xf32>
    %150 = arith.addf %148, %149 : vector<2x32xf32>
    %151 = arith.mulf %138, %150 : vector<2x32xf32>
    %152 = arith.addf %147, %151 : vector<2x32xf32>
    %153 = math.tanh %152 : vector<2x32xf32>
    %cst_29 = arith.constant 1.000000e+00 : f32
    %154 = vector.broadcast %cst_29 : f32 to vector<2x32xf32>
    %155 = arith.subf %154, %146 : vector<2x32xf32>
    %156 = arith.mulf %155, %153 : vector<2x32xf32>
    %157 = arith.mulf %146, %128 : vector<2x32xf32>
    %158 = arith.addf %156, %157 : vector<2x32xf32>
    %159 = vector.extract_strided_slice %7 {offsets = [10, 0], sizes = [2, 96], strides = [1, 1]} : vector<16x96xf32> to vector<2x96xf32>
    %cst_30 = arith.constant dense<0.000000e+00> : vector<2x96xf32>
    %160 = tpu.matmul %158, %2, %cst_30 {dimension_numbers = #tpu.dot_dimension_numbers<[1], [0], [0], [1], [0, 0, 1, 1], [], []>} : vector<2x32xf32>, vector<32x96xf32>, vector<2x96xf32> -> vector<2x96xf32>
    %161 = vector.extract_strided_slice %159 {offsets = [0, 0], sizes = [2, 32], strides = [1, 1]} : vector<2x96xf32> to vector<2x32xf32>
    %162 = vector.extract_strided_slice %160 {offsets = [0, 0], sizes = [2, 32], strides = [1, 1]} : vector<2x96xf32> to vector<2x32xf32>
    %163 = arith.addf %161, %162 : vector<2x32xf32>
    %164 = arith.negf %163 : vector<2x32xf32>
    %165 = math.exp %164 : vector<2x32xf32>
    %cst_31 = arith.constant 1.000000e+00 : f32
    %166 = vector.broadcast %cst_31 : f32 to vector<2x32xf32>
    %167 = arith.addf %166, %165 : vector<2x32xf32>
    %168 = arith.divf %166, %167 : vector<2x32xf32>
    %169 = vector.extract_strided_slice %159 {offsets = [0, 32], sizes = [2, 32], strides = [1, 1]} : vector<2x96xf32> to vector<2x32xf32>
    %170 = vector.extract_strided_slice %160 {offsets = [0, 32], sizes = [2, 32], strides = [1, 1]} : vector<2x96xf32> to vector<2x32xf32>
    %171 = arith.addf %169, %170 : vector<2x32xf32>
    %172 = arith.negf %171 : vector<2x32xf32>
    %173 = math.exp %172 : vector<2x32xf32>
    %cst_32 = arith.constant 1.000000e+00 : f32
    %174 = vector.broadcast %cst_32 : f32 to vector<2x32xf32>
    %175 = arith.addf %174, %173 : vector<2x32xf32>
    %176 = arith.divf %174, %175 : vector<2x32xf32>
    %177 = vector.extract_strided_slice %159 {offsets = [0, 64], sizes = [2, 32], strides = [1, 1]} : vector<2x96xf32> to vector<2x32xf32>
    %178 = vector.extract_strided_slice %160 {offsets = [0, 64], sizes = [2, 32], strides = [1, 1]} : vector<2x96xf32> to vector<2x32xf32>
    %179 = vector.broadcast %4 : vector<1x32xf32> to vector<2x32xf32>
    %180 = arith.addf %178, %179 : vector<2x32xf32>
    %181 = arith.mulf %168, %180 : vector<2x32xf32>
    %182 = arith.addf %177, %181 : vector<2x32xf32>
    %183 = math.tanh %182 : vector<2x32xf32>
    %cst_33 = arith.constant 1.000000e+00 : f32
    %184 = vector.broadcast %cst_33 : f32 to vector<2x32xf32>
    %185 = arith.subf %184, %176 : vector<2x32xf32>
    %186 = arith.mulf %185, %183 : vector<2x32xf32>
    %187 = arith.mulf %176, %158 : vector<2x32xf32>
    %188 = arith.addf %186, %187 : vector<2x32xf32>
    %189 = vector.extract_strided_slice %7 {offsets = [12, 0], sizes = [2, 96], strides = [1, 1]} : vector<16x96xf32> to vector<2x96xf32>
    %cst_34 = arith.constant dense<0.000000e+00> : vector<2x96xf32>
    %190 = tpu.matmul %188, %2, %cst_34 {dimension_numbers = #tpu.dot_dimension_numbers<[1], [0], [0], [1], [0, 0, 1, 1], [], []>} : vector<2x32xf32>, vector<32x96xf32>, vector<2x96xf32> -> vector<2x96xf32>
    %191 = vector.extract_strided_slice %189 {offsets = [0, 0], sizes = [2, 32], strides = [1, 1]} : vector<2x96xf32> to vector<2x32xf32>
    %192 = vector.extract_strided_slice %190 {offsets = [0, 0], sizes = [2, 32], strides = [1, 1]} : vector<2x96xf32> to vector<2x32xf32>
    %193 = arith.addf %191, %192 : vector<2x32xf32>
    %194 = arith.negf %193 : vector<2x32xf32>
    %195 = math.exp %194 : vector<2x32xf32>
    %cst_35 = arith.constant 1.000000e+00 : f32
    %196 = vector.broadcast %cst_35 : f32 to vector<2x32xf32>
    %197 = arith.addf %196, %195 : vector<2x32xf32>
    %198 = arith.divf %196, %197 : vector<2x32xf32>
    %199 = vector.extract_strided_slice %189 {offsets = [0, 32], sizes = [2, 32], strides = [1, 1]} : vector<2x96xf32> to vector<2x32xf32>
    %200 = vector.extract_strided_slice %190 {offsets = [0, 32], sizes = [2, 32], strides = [1, 1]} : vector<2x96xf32> to vector<2x32xf32>
    %201 = arith.addf %199, %200 : vector<2x32xf32>
    %202 = arith.negf %201 : vector<2x32xf32>
    %203 = math.exp %202 : vector<2x32xf32>
    %cst_36 = arith.constant 1.000000e+00 : f32
    %204 = vector.broadcast %cst_36 : f32 to vector<2x32xf32>
    %205 = arith.addf %204, %203 : vector<2x32xf32>
    %206 = arith.divf %204, %205 : vector<2x32xf32>
    %207 = vector.extract_strided_slice %189 {offsets = [0, 64], sizes = [2, 32], strides = [1, 1]} : vector<2x96xf32> to vector<2x32xf32>
    %208 = vector.extract_strided_slice %190 {offsets = [0, 64], sizes = [2, 32], strides = [1, 1]} : vector<2x96xf32> to vector<2x32xf32>
    %209 = vector.broadcast %4 : vector<1x32xf32> to vector<2x32xf32>
    %210 = arith.addf %208, %209 : vector<2x32xf32>
    %211 = arith.mulf %198, %210 : vector<2x32xf32>
    %212 = arith.addf %207, %211 : vector<2x32xf32>
    %213 = math.tanh %212 : vector<2x32xf32>
    %cst_37 = arith.constant 1.000000e+00 : f32
    %214 = vector.broadcast %cst_37 : f32 to vector<2x32xf32>
    %215 = arith.subf %214, %206 : vector<2x32xf32>
    %216 = arith.mulf %215, %213 : vector<2x32xf32>
    %217 = arith.mulf %206, %188 : vector<2x32xf32>
    %218 = arith.addf %216, %217 : vector<2x32xf32>
    %219 = vector.extract_strided_slice %7 {offsets = [14, 0], sizes = [2, 96], strides = [1, 1]} : vector<16x96xf32> to vector<2x96xf32>
    %cst_38 = arith.constant dense<0.000000e+00> : vector<2x96xf32>
    %220 = tpu.matmul %218, %2, %cst_38 {dimension_numbers = #tpu.dot_dimension_numbers<[1], [0], [0], [1], [0, 0, 1, 1], [], []>} : vector<2x32xf32>, vector<32x96xf32>, vector<2x96xf32> -> vector<2x96xf32>
    %221 = vector.extract_strided_slice %219 {offsets = [0, 0], sizes = [2, 32], strides = [1, 1]} : vector<2x96xf32> to vector<2x32xf32>
    %222 = vector.extract_strided_slice %220 {offsets = [0, 0], sizes = [2, 32], strides = [1, 1]} : vector<2x96xf32> to vector<2x32xf32>
    %223 = arith.addf %221, %222 : vector<2x32xf32>
    %224 = arith.negf %223 : vector<2x32xf32>
    %225 = math.exp %224 : vector<2x32xf32>
    %cst_39 = arith.constant 1.000000e+00 : f32
    %226 = vector.broadcast %cst_39 : f32 to vector<2x32xf32>
    %227 = arith.addf %226, %225 : vector<2x32xf32>
    %228 = arith.divf %226, %227 : vector<2x32xf32>
    %229 = vector.extract_strided_slice %219 {offsets = [0, 32], sizes = [2, 32], strides = [1, 1]} : vector<2x96xf32> to vector<2x32xf32>
    %230 = vector.extract_strided_slice %220 {offsets = [0, 32], sizes = [2, 32], strides = [1, 1]} : vector<2x96xf32> to vector<2x32xf32>
    %231 = arith.addf %229, %230 : vector<2x32xf32>
    %232 = arith.negf %231 : vector<2x32xf32>
    %233 = math.exp %232 : vector<2x32xf32>
    %cst_40 = arith.constant 1.000000e+00 : f32
    %234 = vector.broadcast %cst_40 : f32 to vector<2x32xf32>
    %235 = arith.addf %234, %233 : vector<2x32xf32>
    %236 = arith.divf %234, %235 : vector<2x32xf32>
    %237 = vector.extract_strided_slice %219 {offsets = [0, 64], sizes = [2, 32], strides = [1, 1]} : vector<2x96xf32> to vector<2x32xf32>
    %238 = vector.extract_strided_slice %220 {offsets = [0, 64], sizes = [2, 32], strides = [1, 1]} : vector<2x96xf32> to vector<2x32xf32>
    %239 = vector.broadcast %4 : vector<1x32xf32> to vector<2x32xf32>
    %240 = arith.addf %238, %239 : vector<2x32xf32>
    %241 = arith.mulf %228, %240 : vector<2x32xf32>
    %242 = arith.addf %237, %241 : vector<2x32xf32>
    %243 = math.tanh %242 : vector<2x32xf32>
    %cst_41 = arith.constant 1.000000e+00 : f32
    %244 = vector.broadcast %cst_41 : f32 to vector<2x32xf32>
    %245 = arith.subf %244, %236 : vector<2x32xf32>
    %246 = arith.mulf %245, %243 : vector<2x32xf32>
    %247 = arith.mulf %236, %218 : vector<2x32xf32>
    %248 = arith.addf %246, %247 : vector<2x32xf32>
    %249 = tpu.concatenate %38, %68, %98, %128, %158, %188, %218, %248 in 0 : vector<2x32xf32>, vector<2x32xf32>, vector<2x32xf32>, vector<2x32xf32>, vector<2x32xf32>, vector<2x32xf32>, vector<2x32xf32>, vector<2x32xf32> -> vector<16x32xf32>
    %c0_42 = arith.constant 0 : index
    %c0_43 = arith.constant 0 : index
    %250 = vector.load %arg5[%c0_42, %c0_43] : memref<32x96xf32, #tpu.memory_space<vmem>>, vector<32x96xf32>
    %c0_44 = arith.constant 0 : index
    %c0_45 = arith.constant 0 : index
    %251 = vector.load %arg6[%c0_44, %c0_45] : memref<32x96xf32, #tpu.memory_space<vmem>>, vector<32x96xf32>
    %c0_46 = arith.constant 0 : index
    %c0_47 = arith.constant 0 : index
    %252 = vector.load %arg7[%c0_46, %c0_47] : memref<1x96xf32, #tpu.memory_space<vmem>>, vector<1x96xf32>
    %c0_48 = arith.constant 0 : index
    %c0_49 = arith.constant 0 : index
    %253 = vector.load %arg8[%c0_48, %c0_49] : memref<1x32xf32, #tpu.memory_space<vmem>>, vector<1x32xf32>
    %cst_50 = arith.constant dense<0.000000e+00> : vector<16x96xf32>
    %254 = tpu.matmul %249, %250, %cst_50 {dimension_numbers = #tpu.dot_dimension_numbers<[1], [0], [0], [1], [0, 0, 1, 1], [], []>} : vector<16x32xf32>, vector<32x96xf32>, vector<16x96xf32> -> vector<16x96xf32>
    %255 = vector.broadcast %252 : vector<1x96xf32> to vector<16x96xf32>
    %256 = arith.addf %254, %255 : vector<16x96xf32>
    %cst_51 = arith.constant 0.000000e+00 : f32
    %257 = vector.broadcast %cst_51 : f32 to vector<2x32xf32>
    %258 = vector.extract_strided_slice %256 {offsets = [0, 0], sizes = [2, 96], strides = [1, 1]} : vector<16x96xf32> to vector<2x96xf32>
    %cst_52 = arith.constant dense<0.000000e+00> : vector<2x96xf32>
    %259 = tpu.matmul %257, %251, %cst_52 {dimension_numbers = #tpu.dot_dimension_numbers<[1], [0], [0], [1], [0, 0, 1, 1], [], []>} : vector<2x32xf32>, vector<32x96xf32>, vector<2x96xf32> -> vector<2x96xf32>
    %260 = vector.extract_strided_slice %258 {offsets = [0, 0], sizes = [2, 32], strides = [1, 1]} : vector<2x96xf32> to vector<2x32xf32>
    %261 = vector.extract_strided_slice %259 {offsets = [0, 0], sizes = [2, 32], strides = [1, 1]} : vector<2x96xf32> to vector<2x32xf32>
    %262 = arith.addf %260, %261 : vector<2x32xf32>
    %263 = arith.negf %262 : vector<2x32xf32>
    %264 = math.exp %263 : vector<2x32xf32>
    %cst_53 = arith.constant 1.000000e+00 : f32
    %265 = vector.broadcast %cst_53 : f32 to vector<2x32xf32>
    %266 = arith.addf %265, %264 : vector<2x32xf32>
    %267 = arith.divf %265, %266 : vector<2x32xf32>
    %268 = vector.extract_strided_slice %258 {offsets = [0, 32], sizes = [2, 32], strides = [1, 1]} : vector<2x96xf32> to vector<2x32xf32>
    %269 = vector.extract_strided_slice %259 {offsets = [0, 32], sizes = [2, 32], strides = [1, 1]} : vector<2x96xf32> to vector<2x32xf32>
    %270 = arith.addf %268, %269 : vector<2x32xf32>
    %271 = arith.negf %270 : vector<2x32xf32>
    %272 = math.exp %271 : vector<2x32xf32>
    %cst_54 = arith.constant 1.000000e+00 : f32
    %273 = vector.broadcast %cst_54 : f32 to vector<2x32xf32>
    %274 = arith.addf %273, %272 : vector<2x32xf32>
    %275 = arith.divf %273, %274 : vector<2x32xf32>
    %276 = vector.extract_strided_slice %258 {offsets = [0, 64], sizes = [2, 32], strides = [1, 1]} : vector<2x96xf32> to vector<2x32xf32>
    %277 = vector.extract_strided_slice %259 {offsets = [0, 64], sizes = [2, 32], strides = [1, 1]} : vector<2x96xf32> to vector<2x32xf32>
    %278 = vector.broadcast %253 : vector<1x32xf32> to vector<2x32xf32>
    %279 = arith.addf %277, %278 : vector<2x32xf32>
    %280 = arith.mulf %267, %279 : vector<2x32xf32>
    %281 = arith.addf %276, %280 : vector<2x32xf32>
    %282 = math.tanh %281 : vector<2x32xf32>
    %cst_55 = arith.constant 1.000000e+00 : f32
    %283 = vector.broadcast %cst_55 : f32 to vector<2x32xf32>
    %284 = arith.subf %283, %275 : vector<2x32xf32>
    %285 = arith.mulf %284, %282 : vector<2x32xf32>
    %286 = arith.mulf %275, %257 : vector<2x32xf32>
    %287 = arith.addf %285, %286 : vector<2x32xf32>
    %288 = vector.extract_strided_slice %256 {offsets = [2, 0], sizes = [2, 96], strides = [1, 1]} : vector<16x96xf32> to vector<2x96xf32>
    %cst_56 = arith.constant dense<0.000000e+00> : vector<2x96xf32>
    %289 = tpu.matmul %287, %251, %cst_56 {dimension_numbers = #tpu.dot_dimension_numbers<[1], [0], [0], [1], [0, 0, 1, 1], [], []>} : vector<2x32xf32>, vector<32x96xf32>, vector<2x96xf32> -> vector<2x96xf32>
    %290 = vector.extract_strided_slice %288 {offsets = [0, 0], sizes = [2, 32], strides = [1, 1]} : vector<2x96xf32> to vector<2x32xf32>
    %291 = vector.extract_strided_slice %289 {offsets = [0, 0], sizes = [2, 32], strides = [1, 1]} : vector<2x96xf32> to vector<2x32xf32>
    %292 = arith.addf %290, %291 : vector<2x32xf32>
    %293 = arith.negf %292 : vector<2x32xf32>
    %294 = math.exp %293 : vector<2x32xf32>
    %cst_57 = arith.constant 1.000000e+00 : f32
    %295 = vector.broadcast %cst_57 : f32 to vector<2x32xf32>
    %296 = arith.addf %295, %294 : vector<2x32xf32>
    %297 = arith.divf %295, %296 : vector<2x32xf32>
    %298 = vector.extract_strided_slice %288 {offsets = [0, 32], sizes = [2, 32], strides = [1, 1]} : vector<2x96xf32> to vector<2x32xf32>
    %299 = vector.extract_strided_slice %289 {offsets = [0, 32], sizes = [2, 32], strides = [1, 1]} : vector<2x96xf32> to vector<2x32xf32>
    %300 = arith.addf %298, %299 : vector<2x32xf32>
    %301 = arith.negf %300 : vector<2x32xf32>
    %302 = math.exp %301 : vector<2x32xf32>
    %cst_58 = arith.constant 1.000000e+00 : f32
    %303 = vector.broadcast %cst_58 : f32 to vector<2x32xf32>
    %304 = arith.addf %303, %302 : vector<2x32xf32>
    %305 = arith.divf %303, %304 : vector<2x32xf32>
    %306 = vector.extract_strided_slice %288 {offsets = [0, 64], sizes = [2, 32], strides = [1, 1]} : vector<2x96xf32> to vector<2x32xf32>
    %307 = vector.extract_strided_slice %289 {offsets = [0, 64], sizes = [2, 32], strides = [1, 1]} : vector<2x96xf32> to vector<2x32xf32>
    %308 = vector.broadcast %253 : vector<1x32xf32> to vector<2x32xf32>
    %309 = arith.addf %307, %308 : vector<2x32xf32>
    %310 = arith.mulf %297, %309 : vector<2x32xf32>
    %311 = arith.addf %306, %310 : vector<2x32xf32>
    %312 = math.tanh %311 : vector<2x32xf32>
    %cst_59 = arith.constant 1.000000e+00 : f32
    %313 = vector.broadcast %cst_59 : f32 to vector<2x32xf32>
    %314 = arith.subf %313, %305 : vector<2x32xf32>
    %315 = arith.mulf %314, %312 : vector<2x32xf32>
    %316 = arith.mulf %305, %287 : vector<2x32xf32>
    %317 = arith.addf %315, %316 : vector<2x32xf32>
    %318 = vector.extract_strided_slice %256 {offsets = [4, 0], sizes = [2, 96], strides = [1, 1]} : vector<16x96xf32> to vector<2x96xf32>
    %cst_60 = arith.constant dense<0.000000e+00> : vector<2x96xf32>
    %319 = tpu.matmul %317, %251, %cst_60 {dimension_numbers = #tpu.dot_dimension_numbers<[1], [0], [0], [1], [0, 0, 1, 1], [], []>} : vector<2x32xf32>, vector<32x96xf32>, vector<2x96xf32> -> vector<2x96xf32>
    %320 = vector.extract_strided_slice %318 {offsets = [0, 0], sizes = [2, 32], strides = [1, 1]} : vector<2x96xf32> to vector<2x32xf32>
    %321 = vector.extract_strided_slice %319 {offsets = [0, 0], sizes = [2, 32], strides = [1, 1]} : vector<2x96xf32> to vector<2x32xf32>
    %322 = arith.addf %320, %321 : vector<2x32xf32>
    %323 = arith.negf %322 : vector<2x32xf32>
    %324 = math.exp %323 : vector<2x32xf32>
    %cst_61 = arith.constant 1.000000e+00 : f32
    %325 = vector.broadcast %cst_61 : f32 to vector<2x32xf32>
    %326 = arith.addf %325, %324 : vector<2x32xf32>
    %327 = arith.divf %325, %326 : vector<2x32xf32>
    %328 = vector.extract_strided_slice %318 {offsets = [0, 32], sizes = [2, 32], strides = [1, 1]} : vector<2x96xf32> to vector<2x32xf32>
    %329 = vector.extract_strided_slice %319 {offsets = [0, 32], sizes = [2, 32], strides = [1, 1]} : vector<2x96xf32> to vector<2x32xf32>
    %330 = arith.addf %328, %329 : vector<2x32xf32>
    %331 = arith.negf %330 : vector<2x32xf32>
    %332 = math.exp %331 : vector<2x32xf32>
    %cst_62 = arith.constant 1.000000e+00 : f32
    %333 = vector.broadcast %cst_62 : f32 to vector<2x32xf32>
    %334 = arith.addf %333, %332 : vector<2x32xf32>
    %335 = arith.divf %333, %334 : vector<2x32xf32>
    %336 = vector.extract_strided_slice %318 {offsets = [0, 64], sizes = [2, 32], strides = [1, 1]} : vector<2x96xf32> to vector<2x32xf32>
    %337 = vector.extract_strided_slice %319 {offsets = [0, 64], sizes = [2, 32], strides = [1, 1]} : vector<2x96xf32> to vector<2x32xf32>
    %338 = vector.broadcast %253 : vector<1x32xf32> to vector<2x32xf32>
    %339 = arith.addf %337, %338 : vector<2x32xf32>
    %340 = arith.mulf %327, %339 : vector<2x32xf32>
    %341 = arith.addf %336, %340 : vector<2x32xf32>
    %342 = math.tanh %341 : vector<2x32xf32>
    %cst_63 = arith.constant 1.000000e+00 : f32
    %343 = vector.broadcast %cst_63 : f32 to vector<2x32xf32>
    %344 = arith.subf %343, %335 : vector<2x32xf32>
    %345 = arith.mulf %344, %342 : vector<2x32xf32>
    %346 = arith.mulf %335, %317 : vector<2x32xf32>
    %347 = arith.addf %345, %346 : vector<2x32xf32>
    %348 = vector.extract_strided_slice %256 {offsets = [6, 0], sizes = [2, 96], strides = [1, 1]} : vector<16x96xf32> to vector<2x96xf32>
    %cst_64 = arith.constant dense<0.000000e+00> : vector<2x96xf32>
    %349 = tpu.matmul %347, %251, %cst_64 {dimension_numbers = #tpu.dot_dimension_numbers<[1], [0], [0], [1], [0, 0, 1, 1], [], []>} : vector<2x32xf32>, vector<32x96xf32>, vector<2x96xf32> -> vector<2x96xf32>
    %350 = vector.extract_strided_slice %348 {offsets = [0, 0], sizes = [2, 32], strides = [1, 1]} : vector<2x96xf32> to vector<2x32xf32>
    %351 = vector.extract_strided_slice %349 {offsets = [0, 0], sizes = [2, 32], strides = [1, 1]} : vector<2x96xf32> to vector<2x32xf32>
    %352 = arith.addf %350, %351 : vector<2x32xf32>
    %353 = arith.negf %352 : vector<2x32xf32>
    %354 = math.exp %353 : vector<2x32xf32>
    %cst_65 = arith.constant 1.000000e+00 : f32
    %355 = vector.broadcast %cst_65 : f32 to vector<2x32xf32>
    %356 = arith.addf %355, %354 : vector<2x32xf32>
    %357 = arith.divf %355, %356 : vector<2x32xf32>
    %358 = vector.extract_strided_slice %348 {offsets = [0, 32], sizes = [2, 32], strides = [1, 1]} : vector<2x96xf32> to vector<2x32xf32>
    %359 = vector.extract_strided_slice %349 {offsets = [0, 32], sizes = [2, 32], strides = [1, 1]} : vector<2x96xf32> to vector<2x32xf32>
    %360 = arith.addf %358, %359 : vector<2x32xf32>
    %361 = arith.negf %360 : vector<2x32xf32>
    %362 = math.exp %361 : vector<2x32xf32>
    %cst_66 = arith.constant 1.000000e+00 : f32
    %363 = vector.broadcast %cst_66 : f32 to vector<2x32xf32>
    %364 = arith.addf %363, %362 : vector<2x32xf32>
    %365 = arith.divf %363, %364 : vector<2x32xf32>
    %366 = vector.extract_strided_slice %348 {offsets = [0, 64], sizes = [2, 32], strides = [1, 1]} : vector<2x96xf32> to vector<2x32xf32>
    %367 = vector.extract_strided_slice %349 {offsets = [0, 64], sizes = [2, 32], strides = [1, 1]} : vector<2x96xf32> to vector<2x32xf32>
    %368 = vector.broadcast %253 : vector<1x32xf32> to vector<2x32xf32>
    %369 = arith.addf %367, %368 : vector<2x32xf32>
    %370 = arith.mulf %357, %369 : vector<2x32xf32>
    %371 = arith.addf %366, %370 : vector<2x32xf32>
    %372 = math.tanh %371 : vector<2x32xf32>
    %cst_67 = arith.constant 1.000000e+00 : f32
    %373 = vector.broadcast %cst_67 : f32 to vector<2x32xf32>
    %374 = arith.subf %373, %365 : vector<2x32xf32>
    %375 = arith.mulf %374, %372 : vector<2x32xf32>
    %376 = arith.mulf %365, %347 : vector<2x32xf32>
    %377 = arith.addf %375, %376 : vector<2x32xf32>
    %378 = vector.extract_strided_slice %256 {offsets = [8, 0], sizes = [2, 96], strides = [1, 1]} : vector<16x96xf32> to vector<2x96xf32>
    %cst_68 = arith.constant dense<0.000000e+00> : vector<2x96xf32>
    %379 = tpu.matmul %377, %251, %cst_68 {dimension_numbers = #tpu.dot_dimension_numbers<[1], [0], [0], [1], [0, 0, 1, 1], [], []>} : vector<2x32xf32>, vector<32x96xf32>, vector<2x96xf32> -> vector<2x96xf32>
    %380 = vector.extract_strided_slice %378 {offsets = [0, 0], sizes = [2, 32], strides = [1, 1]} : vector<2x96xf32> to vector<2x32xf32>
    %381 = vector.extract_strided_slice %379 {offsets = [0, 0], sizes = [2, 32], strides = [1, 1]} : vector<2x96xf32> to vector<2x32xf32>
    %382 = arith.addf %380, %381 : vector<2x32xf32>
    %383 = arith.negf %382 : vector<2x32xf32>
    %384 = math.exp %383 : vector<2x32xf32>
    %cst_69 = arith.constant 1.000000e+00 : f32
    %385 = vector.broadcast %cst_69 : f32 to vector<2x32xf32>
    %386 = arith.addf %385, %384 : vector<2x32xf32>
    %387 = arith.divf %385, %386 : vector<2x32xf32>
    %388 = vector.extract_strided_slice %378 {offsets = [0, 32], sizes = [2, 32], strides = [1, 1]} : vector<2x96xf32> to vector<2x32xf32>
    %389 = vector.extract_strided_slice %379 {offsets = [0, 32], sizes = [2, 32], strides = [1, 1]} : vector<2x96xf32> to vector<2x32xf32>
    %390 = arith.addf %388, %389 : vector<2x32xf32>
    %391 = arith.negf %390 : vector<2x32xf32>
    %392 = math.exp %391 : vector<2x32xf32>
    %cst_70 = arith.constant 1.000000e+00 : f32
    %393 = vector.broadcast %cst_70 : f32 to vector<2x32xf32>
    %394 = arith.addf %393, %392 : vector<2x32xf32>
    %395 = arith.divf %393, %394 : vector<2x32xf32>
    %396 = vector.extract_strided_slice %378 {offsets = [0, 64], sizes = [2, 32], strides = [1, 1]} : vector<2x96xf32> to vector<2x32xf32>
    %397 = vector.extract_strided_slice %379 {offsets = [0, 64], sizes = [2, 32], strides = [1, 1]} : vector<2x96xf32> to vector<2x32xf32>
    %398 = vector.broadcast %253 : vector<1x32xf32> to vector<2x32xf32>
    %399 = arith.addf %397, %398 : vector<2x32xf32>
    %400 = arith.mulf %387, %399 : vector<2x32xf32>
    %401 = arith.addf %396, %400 : vector<2x32xf32>
    %402 = math.tanh %401 : vector<2x32xf32>
    %cst_71 = arith.constant 1.000000e+00 : f32
    %403 = vector.broadcast %cst_71 : f32 to vector<2x32xf32>
    %404 = arith.subf %403, %395 : vector<2x32xf32>
    %405 = arith.mulf %404, %402 : vector<2x32xf32>
    %406 = arith.mulf %395, %377 : vector<2x32xf32>
    %407 = arith.addf %405, %406 : vector<2x32xf32>
    %408 = vector.extract_strided_slice %256 {offsets = [10, 0], sizes = [2, 96], strides = [1, 1]} : vector<16x96xf32> to vector<2x96xf32>
    %cst_72 = arith.constant dense<0.000000e+00> : vector<2x96xf32>
    %409 = tpu.matmul %407, %251, %cst_72 {dimension_numbers = #tpu.dot_dimension_numbers<[1], [0], [0], [1], [0, 0, 1, 1], [], []>} : vector<2x32xf32>, vector<32x96xf32>, vector<2x96xf32> -> vector<2x96xf32>
    %410 = vector.extract_strided_slice %408 {offsets = [0, 0], sizes = [2, 32], strides = [1, 1]} : vector<2x96xf32> to vector<2x32xf32>
    %411 = vector.extract_strided_slice %409 {offsets = [0, 0], sizes = [2, 32], strides = [1, 1]} : vector<2x96xf32> to vector<2x32xf32>
    %412 = arith.addf %410, %411 : vector<2x32xf32>
    %413 = arith.negf %412 : vector<2x32xf32>
    %414 = math.exp %413 : vector<2x32xf32>
    %cst_73 = arith.constant 1.000000e+00 : f32
    %415 = vector.broadcast %cst_73 : f32 to vector<2x32xf32>
    %416 = arith.addf %415, %414 : vector<2x32xf32>
    %417 = arith.divf %415, %416 : vector<2x32xf32>
    %418 = vector.extract_strided_slice %408 {offsets = [0, 32], sizes = [2, 32], strides = [1, 1]} : vector<2x96xf32> to vector<2x32xf32>
    %419 = vector.extract_strided_slice %409 {offsets = [0, 32], sizes = [2, 32], strides = [1, 1]} : vector<2x96xf32> to vector<2x32xf32>
    %420 = arith.addf %418, %419 : vector<2x32xf32>
    %421 = arith.negf %420 : vector<2x32xf32>
    %422 = math.exp %421 : vector<2x32xf32>
    %cst_74 = arith.constant 1.000000e+00 : f32
    %423 = vector.broadcast %cst_74 : f32 to vector<2x32xf32>
    %424 = arith.addf %423, %422 : vector<2x32xf32>
    %425 = arith.divf %423, %424 : vector<2x32xf32>
    %426 = vector.extract_strided_slice %408 {offsets = [0, 64], sizes = [2, 32], strides = [1, 1]} : vector<2x96xf32> to vector<2x32xf32>
    %427 = vector.extract_strided_slice %409 {offsets = [0, 64], sizes = [2, 32], strides = [1, 1]} : vector<2x96xf32> to vector<2x32xf32>
    %428 = vector.broadcast %253 : vector<1x32xf32> to vector<2x32xf32>
    %429 = arith.addf %427, %428 : vector<2x32xf32>
    %430 = arith.mulf %417, %429 : vector<2x32xf32>
    %431 = arith.addf %426, %430 : vector<2x32xf32>
    %432 = math.tanh %431 : vector<2x32xf32>
    %cst_75 = arith.constant 1.000000e+00 : f32
    %433 = vector.broadcast %cst_75 : f32 to vector<2x32xf32>
    %434 = arith.subf %433, %425 : vector<2x32xf32>
    %435 = arith.mulf %434, %432 : vector<2x32xf32>
    %436 = arith.mulf %425, %407 : vector<2x32xf32>
    %437 = arith.addf %435, %436 : vector<2x32xf32>
    %438 = vector.extract_strided_slice %256 {offsets = [12, 0], sizes = [2, 96], strides = [1, 1]} : vector<16x96xf32> to vector<2x96xf32>
    %cst_76 = arith.constant dense<0.000000e+00> : vector<2x96xf32>
    %439 = tpu.matmul %437, %251, %cst_76 {dimension_numbers = #tpu.dot_dimension_numbers<[1], [0], [0], [1], [0, 0, 1, 1], [], []>} : vector<2x32xf32>, vector<32x96xf32>, vector<2x96xf32> -> vector<2x96xf32>
    %440 = vector.extract_strided_slice %438 {offsets = [0, 0], sizes = [2, 32], strides = [1, 1]} : vector<2x96xf32> to vector<2x32xf32>
    %441 = vector.extract_strided_slice %439 {offsets = [0, 0], sizes = [2, 32], strides = [1, 1]} : vector<2x96xf32> to vector<2x32xf32>
    %442 = arith.addf %440, %441 : vector<2x32xf32>
    %443 = arith.negf %442 : vector<2x32xf32>
    %444 = math.exp %443 : vector<2x32xf32>
    %cst_77 = arith.constant 1.000000e+00 : f32
    %445 = vector.broadcast %cst_77 : f32 to vector<2x32xf32>
    %446 = arith.addf %445, %444 : vector<2x32xf32>
    %447 = arith.divf %445, %446 : vector<2x32xf32>
    %448 = vector.extract_strided_slice %438 {offsets = [0, 32], sizes = [2, 32], strides = [1, 1]} : vector<2x96xf32> to vector<2x32xf32>
    %449 = vector.extract_strided_slice %439 {offsets = [0, 32], sizes = [2, 32], strides = [1, 1]} : vector<2x96xf32> to vector<2x32xf32>
    %450 = arith.addf %448, %449 : vector<2x32xf32>
    %451 = arith.negf %450 : vector<2x32xf32>
    %452 = math.exp %451 : vector<2x32xf32>
    %cst_78 = arith.constant 1.000000e+00 : f32
    %453 = vector.broadcast %cst_78 : f32 to vector<2x32xf32>
    %454 = arith.addf %453, %452 : vector<2x32xf32>
    %455 = arith.divf %453, %454 : vector<2x32xf32>
    %456 = vector.extract_strided_slice %438 {offsets = [0, 64], sizes = [2, 32], strides = [1, 1]} : vector<2x96xf32> to vector<2x32xf32>
    %457 = vector.extract_strided_slice %439 {offsets = [0, 64], sizes = [2, 32], strides = [1, 1]} : vector<2x96xf32> to vector<2x32xf32>
    %458 = vector.broadcast %253 : vector<1x32xf32> to vector<2x32xf32>
    %459 = arith.addf %457, %458 : vector<2x32xf32>
    %460 = arith.mulf %447, %459 : vector<2x32xf32>
    %461 = arith.addf %456, %460 : vector<2x32xf32>
    %462 = math.tanh %461 : vector<2x32xf32>
    %cst_79 = arith.constant 1.000000e+00 : f32
    %463 = vector.broadcast %cst_79 : f32 to vector<2x32xf32>
    %464 = arith.subf %463, %455 : vector<2x32xf32>
    %465 = arith.mulf %464, %462 : vector<2x32xf32>
    %466 = arith.mulf %455, %437 : vector<2x32xf32>
    %467 = arith.addf %465, %466 : vector<2x32xf32>
    %468 = vector.extract_strided_slice %256 {offsets = [14, 0], sizes = [2, 96], strides = [1, 1]} : vector<16x96xf32> to vector<2x96xf32>
    %cst_80 = arith.constant dense<0.000000e+00> : vector<2x96xf32>
    %469 = tpu.matmul %467, %251, %cst_80 {dimension_numbers = #tpu.dot_dimension_numbers<[1], [0], [0], [1], [0, 0, 1, 1], [], []>} : vector<2x32xf32>, vector<32x96xf32>, vector<2x96xf32> -> vector<2x96xf32>
    %470 = vector.extract_strided_slice %468 {offsets = [0, 0], sizes = [2, 32], strides = [1, 1]} : vector<2x96xf32> to vector<2x32xf32>
    %471 = vector.extract_strided_slice %469 {offsets = [0, 0], sizes = [2, 32], strides = [1, 1]} : vector<2x96xf32> to vector<2x32xf32>
    %472 = arith.addf %470, %471 : vector<2x32xf32>
    %473 = arith.negf %472 : vector<2x32xf32>
    %474 = math.exp %473 : vector<2x32xf32>
    %cst_81 = arith.constant 1.000000e+00 : f32
    %475 = vector.broadcast %cst_81 : f32 to vector<2x32xf32>
    %476 = arith.addf %475, %474 : vector<2x32xf32>
    %477 = arith.divf %475, %476 : vector<2x32xf32>
    %478 = vector.extract_strided_slice %468 {offsets = [0, 32], sizes = [2, 32], strides = [1, 1]} : vector<2x96xf32> to vector<2x32xf32>
    %479 = vector.extract_strided_slice %469 {offsets = [0, 32], sizes = [2, 32], strides = [1, 1]} : vector<2x96xf32> to vector<2x32xf32>
    %480 = arith.addf %478, %479 : vector<2x32xf32>
    %481 = arith.negf %480 : vector<2x32xf32>
    %482 = math.exp %481 : vector<2x32xf32>
    %cst_82 = arith.constant 1.000000e+00 : f32
    %483 = vector.broadcast %cst_82 : f32 to vector<2x32xf32>
    %484 = arith.addf %483, %482 : vector<2x32xf32>
    %485 = arith.divf %483, %484 : vector<2x32xf32>
    %486 = vector.extract_strided_slice %468 {offsets = [0, 64], sizes = [2, 32], strides = [1, 1]} : vector<2x96xf32> to vector<2x32xf32>
    %487 = vector.extract_strided_slice %469 {offsets = [0, 64], sizes = [2, 32], strides = [1, 1]} : vector<2x96xf32> to vector<2x32xf32>
    %488 = vector.broadcast %253 : vector<1x32xf32> to vector<2x32xf32>
    %489 = arith.addf %487, %488 : vector<2x32xf32>
    %490 = arith.mulf %477, %489 : vector<2x32xf32>
    %491 = arith.addf %486, %490 : vector<2x32xf32>
    %492 = math.tanh %491 : vector<2x32xf32>
    %cst_83 = arith.constant 1.000000e+00 : f32
    %493 = vector.broadcast %cst_83 : f32 to vector<2x32xf32>
    %494 = arith.subf %493, %485 : vector<2x32xf32>
    %495 = arith.mulf %494, %492 : vector<2x32xf32>
    %496 = arith.mulf %485, %467 : vector<2x32xf32>
    %497 = arith.addf %495, %496 : vector<2x32xf32>
    %498 = tpu.concatenate %287, %317, %347, %377, %407, %437, %467, %497 in 0 : vector<2x32xf32>, vector<2x32xf32>, vector<2x32xf32>, vector<2x32xf32>, vector<2x32xf32>, vector<2x32xf32>, vector<2x32xf32>, vector<2x32xf32> -> vector<16x32xf32>
    %c0_84 = arith.constant 0 : index
    %c0_85 = arith.constant 0 : index
    %499 = vector.load %arg9[%c0_84, %c0_85] : memref<32x96xf32, #tpu.memory_space<vmem>>, vector<32x96xf32>
    %c0_86 = arith.constant 0 : index
    %c0_87 = arith.constant 0 : index
    %500 = vector.load %arg10[%c0_86, %c0_87] : memref<32x96xf32, #tpu.memory_space<vmem>>, vector<32x96xf32>
    %c0_88 = arith.constant 0 : index
    %c0_89 = arith.constant 0 : index
    %501 = vector.load %arg11[%c0_88, %c0_89] : memref<1x96xf32, #tpu.memory_space<vmem>>, vector<1x96xf32>
    %c0_90 = arith.constant 0 : index
    %c0_91 = arith.constant 0 : index
    %502 = vector.load %arg12[%c0_90, %c0_91] : memref<1x32xf32, #tpu.memory_space<vmem>>, vector<1x32xf32>
    %cst_92 = arith.constant dense<0.000000e+00> : vector<16x96xf32>
    %503 = tpu.matmul %498, %499, %cst_92 {dimension_numbers = #tpu.dot_dimension_numbers<[1], [0], [0], [1], [0, 0, 1, 1], [], []>} : vector<16x32xf32>, vector<32x96xf32>, vector<16x96xf32> -> vector<16x96xf32>
    %504 = vector.broadcast %501 : vector<1x96xf32> to vector<16x96xf32>
    %505 = arith.addf %503, %504 : vector<16x96xf32>
    %cst_93 = arith.constant 0.000000e+00 : f32
    %506 = vector.broadcast %cst_93 : f32 to vector<2x32xf32>
    %507 = vector.extract_strided_slice %505 {offsets = [0, 0], sizes = [2, 96], strides = [1, 1]} : vector<16x96xf32> to vector<2x96xf32>
    %cst_94 = arith.constant dense<0.000000e+00> : vector<2x96xf32>
    %508 = tpu.matmul %506, %500, %cst_94 {dimension_numbers = #tpu.dot_dimension_numbers<[1], [0], [0], [1], [0, 0, 1, 1], [], []>} : vector<2x32xf32>, vector<32x96xf32>, vector<2x96xf32> -> vector<2x96xf32>
    %509 = vector.extract_strided_slice %507 {offsets = [0, 0], sizes = [2, 32], strides = [1, 1]} : vector<2x96xf32> to vector<2x32xf32>
    %510 = vector.extract_strided_slice %508 {offsets = [0, 0], sizes = [2, 32], strides = [1, 1]} : vector<2x96xf32> to vector<2x32xf32>
    %511 = arith.addf %509, %510 : vector<2x32xf32>
    %512 = arith.negf %511 : vector<2x32xf32>
    %513 = math.exp %512 : vector<2x32xf32>
    %cst_95 = arith.constant 1.000000e+00 : f32
    %514 = vector.broadcast %cst_95 : f32 to vector<2x32xf32>
    %515 = arith.addf %514, %513 : vector<2x32xf32>
    %516 = arith.divf %514, %515 : vector<2x32xf32>
    %517 = vector.extract_strided_slice %507 {offsets = [0, 32], sizes = [2, 32], strides = [1, 1]} : vector<2x96xf32> to vector<2x32xf32>
    %518 = vector.extract_strided_slice %508 {offsets = [0, 32], sizes = [2, 32], strides = [1, 1]} : vector<2x96xf32> to vector<2x32xf32>
    %519 = arith.addf %517, %518 : vector<2x32xf32>
    %520 = arith.negf %519 : vector<2x32xf32>
    %521 = math.exp %520 : vector<2x32xf32>
    %cst_96 = arith.constant 1.000000e+00 : f32
    %522 = vector.broadcast %cst_96 : f32 to vector<2x32xf32>
    %523 = arith.addf %522, %521 : vector<2x32xf32>
    %524 = arith.divf %522, %523 : vector<2x32xf32>
    %525 = vector.extract_strided_slice %507 {offsets = [0, 64], sizes = [2, 32], strides = [1, 1]} : vector<2x96xf32> to vector<2x32xf32>
    %526 = vector.extract_strided_slice %508 {offsets = [0, 64], sizes = [2, 32], strides = [1, 1]} : vector<2x96xf32> to vector<2x32xf32>
    %527 = vector.broadcast %502 : vector<1x32xf32> to vector<2x32xf32>
    %528 = arith.addf %526, %527 : vector<2x32xf32>
    %529 = arith.mulf %516, %528 : vector<2x32xf32>
    %530 = arith.addf %525, %529 : vector<2x32xf32>
    %531 = math.tanh %530 : vector<2x32xf32>
    %cst_97 = arith.constant 1.000000e+00 : f32
    %532 = vector.broadcast %cst_97 : f32 to vector<2x32xf32>
    %533 = arith.subf %532, %524 : vector<2x32xf32>
    %534 = arith.mulf %533, %531 : vector<2x32xf32>
    %535 = arith.mulf %524, %506 : vector<2x32xf32>
    %536 = arith.addf %534, %535 : vector<2x32xf32>
    %537 = vector.extract_strided_slice %505 {offsets = [2, 0], sizes = [2, 96], strides = [1, 1]} : vector<16x96xf32> to vector<2x96xf32>
    %cst_98 = arith.constant dense<0.000000e+00> : vector<2x96xf32>
    %538 = tpu.matmul %536, %500, %cst_98 {dimension_numbers = #tpu.dot_dimension_numbers<[1], [0], [0], [1], [0, 0, 1, 1], [], []>} : vector<2x32xf32>, vector<32x96xf32>, vector<2x96xf32> -> vector<2x96xf32>
    %539 = vector.extract_strided_slice %537 {offsets = [0, 0], sizes = [2, 32], strides = [1, 1]} : vector<2x96xf32> to vector<2x32xf32>
    %540 = vector.extract_strided_slice %538 {offsets = [0, 0], sizes = [2, 32], strides = [1, 1]} : vector<2x96xf32> to vector<2x32xf32>
    %541 = arith.addf %539, %540 : vector<2x32xf32>
    %542 = arith.negf %541 : vector<2x32xf32>
    %543 = math.exp %542 : vector<2x32xf32>
    %cst_99 = arith.constant 1.000000e+00 : f32
    %544 = vector.broadcast %cst_99 : f32 to vector<2x32xf32>
    %545 = arith.addf %544, %543 : vector<2x32xf32>
    %546 = arith.divf %544, %545 : vector<2x32xf32>
    %547 = vector.extract_strided_slice %537 {offsets = [0, 32], sizes = [2, 32], strides = [1, 1]} : vector<2x96xf32> to vector<2x32xf32>
    %548 = vector.extract_strided_slice %538 {offsets = [0, 32], sizes = [2, 32], strides = [1, 1]} : vector<2x96xf32> to vector<2x32xf32>
    %549 = arith.addf %547, %548 : vector<2x32xf32>
    %550 = arith.negf %549 : vector<2x32xf32>
    %551 = math.exp %550 : vector<2x32xf32>
    %cst_100 = arith.constant 1.000000e+00 : f32
    %552 = vector.broadcast %cst_100 : f32 to vector<2x32xf32>
    %553 = arith.addf %552, %551 : vector<2x32xf32>
    %554 = arith.divf %552, %553 : vector<2x32xf32>
    %555 = vector.extract_strided_slice %537 {offsets = [0, 64], sizes = [2, 32], strides = [1, 1]} : vector<2x96xf32> to vector<2x32xf32>
    %556 = vector.extract_strided_slice %538 {offsets = [0, 64], sizes = [2, 32], strides = [1, 1]} : vector<2x96xf32> to vector<2x32xf32>
    %557 = vector.broadcast %502 : vector<1x32xf32> to vector<2x32xf32>
    %558 = arith.addf %556, %557 : vector<2x32xf32>
    %559 = arith.mulf %546, %558 : vector<2x32xf32>
    %560 = arith.addf %555, %559 : vector<2x32xf32>
    %561 = math.tanh %560 : vector<2x32xf32>
    %cst_101 = arith.constant 1.000000e+00 : f32
    %562 = vector.broadcast %cst_101 : f32 to vector<2x32xf32>
    %563 = arith.subf %562, %554 : vector<2x32xf32>
    %564 = arith.mulf %563, %561 : vector<2x32xf32>
    %565 = arith.mulf %554, %536 : vector<2x32xf32>
    %566 = arith.addf %564, %565 : vector<2x32xf32>
    %567 = vector.extract_strided_slice %505 {offsets = [4, 0], sizes = [2, 96], strides = [1, 1]} : vector<16x96xf32> to vector<2x96xf32>
    %cst_102 = arith.constant dense<0.000000e+00> : vector<2x96xf32>
    %568 = tpu.matmul %566, %500, %cst_102 {dimension_numbers = #tpu.dot_dimension_numbers<[1], [0], [0], [1], [0, 0, 1, 1], [], []>} : vector<2x32xf32>, vector<32x96xf32>, vector<2x96xf32> -> vector<2x96xf32>
    %569 = vector.extract_strided_slice %567 {offsets = [0, 0], sizes = [2, 32], strides = [1, 1]} : vector<2x96xf32> to vector<2x32xf32>
    %570 = vector.extract_strided_slice %568 {offsets = [0, 0], sizes = [2, 32], strides = [1, 1]} : vector<2x96xf32> to vector<2x32xf32>
    %571 = arith.addf %569, %570 : vector<2x32xf32>
    %572 = arith.negf %571 : vector<2x32xf32>
    %573 = math.exp %572 : vector<2x32xf32>
    %cst_103 = arith.constant 1.000000e+00 : f32
    %574 = vector.broadcast %cst_103 : f32 to vector<2x32xf32>
    %575 = arith.addf %574, %573 : vector<2x32xf32>
    %576 = arith.divf %574, %575 : vector<2x32xf32>
    %577 = vector.extract_strided_slice %567 {offsets = [0, 32], sizes = [2, 32], strides = [1, 1]} : vector<2x96xf32> to vector<2x32xf32>
    %578 = vector.extract_strided_slice %568 {offsets = [0, 32], sizes = [2, 32], strides = [1, 1]} : vector<2x96xf32> to vector<2x32xf32>
    %579 = arith.addf %577, %578 : vector<2x32xf32>
    %580 = arith.negf %579 : vector<2x32xf32>
    %581 = math.exp %580 : vector<2x32xf32>
    %cst_104 = arith.constant 1.000000e+00 : f32
    %582 = vector.broadcast %cst_104 : f32 to vector<2x32xf32>
    %583 = arith.addf %582, %581 : vector<2x32xf32>
    %584 = arith.divf %582, %583 : vector<2x32xf32>
    %585 = vector.extract_strided_slice %567 {offsets = [0, 64], sizes = [2, 32], strides = [1, 1]} : vector<2x96xf32> to vector<2x32xf32>
    %586 = vector.extract_strided_slice %568 {offsets = [0, 64], sizes = [2, 32], strides = [1, 1]} : vector<2x96xf32> to vector<2x32xf32>
    %587 = vector.broadcast %502 : vector<1x32xf32> to vector<2x32xf32>
    %588 = arith.addf %586, %587 : vector<2x32xf32>
    %589 = arith.mulf %576, %588 : vector<2x32xf32>
    %590 = arith.addf %585, %589 : vector<2x32xf32>
    %591 = math.tanh %590 : vector<2x32xf32>
    %cst_105 = arith.constant 1.000000e+00 : f32
    %592 = vector.broadcast %cst_105 : f32 to vector<2x32xf32>
    %593 = arith.subf %592, %584 : vector<2x32xf32>
    %594 = arith.mulf %593, %591 : vector<2x32xf32>
    %595 = arith.mulf %584, %566 : vector<2x32xf32>
    %596 = arith.addf %594, %595 : vector<2x32xf32>
    %597 = vector.extract_strided_slice %505 {offsets = [6, 0], sizes = [2, 96], strides = [1, 1]} : vector<16x96xf32> to vector<2x96xf32>
    %cst_106 = arith.constant dense<0.000000e+00> : vector<2x96xf32>
    %598 = tpu.matmul %596, %500, %cst_106 {dimension_numbers = #tpu.dot_dimension_numbers<[1], [0], [0], [1], [0, 0, 1, 1], [], []>} : vector<2x32xf32>, vector<32x96xf32>, vector<2x96xf32> -> vector<2x96xf32>
    %599 = vector.extract_strided_slice %597 {offsets = [0, 0], sizes = [2, 32], strides = [1, 1]} : vector<2x96xf32> to vector<2x32xf32>
    %600 = vector.extract_strided_slice %598 {offsets = [0, 0], sizes = [2, 32], strides = [1, 1]} : vector<2x96xf32> to vector<2x32xf32>
    %601 = arith.addf %599, %600 : vector<2x32xf32>
    %602 = arith.negf %601 : vector<2x32xf32>
    %603 = math.exp %602 : vector<2x32xf32>
    %cst_107 = arith.constant 1.000000e+00 : f32
    %604 = vector.broadcast %cst_107 : f32 to vector<2x32xf32>
    %605 = arith.addf %604, %603 : vector<2x32xf32>
    %606 = arith.divf %604, %605 : vector<2x32xf32>
    %607 = vector.extract_strided_slice %597 {offsets = [0, 32], sizes = [2, 32], strides = [1, 1]} : vector<2x96xf32> to vector<2x32xf32>
    %608 = vector.extract_strided_slice %598 {offsets = [0, 32], sizes = [2, 32], strides = [1, 1]} : vector<2x96xf32> to vector<2x32xf32>
    %609 = arith.addf %607, %608 : vector<2x32xf32>
    %610 = arith.negf %609 : vector<2x32xf32>
    %611 = math.exp %610 : vector<2x32xf32>
    %cst_108 = arith.constant 1.000000e+00 : f32
    %612 = vector.broadcast %cst_108 : f32 to vector<2x32xf32>
    %613 = arith.addf %612, %611 : vector<2x32xf32>
    %614 = arith.divf %612, %613 : vector<2x32xf32>
    %615 = vector.extract_strided_slice %597 {offsets = [0, 64], sizes = [2, 32], strides = [1, 1]} : vector<2x96xf32> to vector<2x32xf32>
    %616 = vector.extract_strided_slice %598 {offsets = [0, 64], sizes = [2, 32], strides = [1, 1]} : vector<2x96xf32> to vector<2x32xf32>
    %617 = vector.broadcast %502 : vector<1x32xf32> to vector<2x32xf32>
    %618 = arith.addf %616, %617 : vector<2x32xf32>
    %619 = arith.mulf %606, %618 : vector<2x32xf32>
    %620 = arith.addf %615, %619 : vector<2x32xf32>
    %621 = math.tanh %620 : vector<2x32xf32>
    %cst_109 = arith.constant 1.000000e+00 : f32
    %622 = vector.broadcast %cst_109 : f32 to vector<2x32xf32>
    %623 = arith.subf %622, %614 : vector<2x32xf32>
    %624 = arith.mulf %623, %621 : vector<2x32xf32>
    %625 = arith.mulf %614, %596 : vector<2x32xf32>
    %626 = arith.addf %624, %625 : vector<2x32xf32>
    %627 = vector.extract_strided_slice %505 {offsets = [8, 0], sizes = [2, 96], strides = [1, 1]} : vector<16x96xf32> to vector<2x96xf32>
    %cst_110 = arith.constant dense<0.000000e+00> : vector<2x96xf32>
    %628 = tpu.matmul %626, %500, %cst_110 {dimension_numbers = #tpu.dot_dimension_numbers<[1], [0], [0], [1], [0, 0, 1, 1], [], []>} : vector<2x32xf32>, vector<32x96xf32>, vector<2x96xf32> -> vector<2x96xf32>
    %629 = vector.extract_strided_slice %627 {offsets = [0, 0], sizes = [2, 32], strides = [1, 1]} : vector<2x96xf32> to vector<2x32xf32>
    %630 = vector.extract_strided_slice %628 {offsets = [0, 0], sizes = [2, 32], strides = [1, 1]} : vector<2x96xf32> to vector<2x32xf32>
    %631 = arith.addf %629, %630 : vector<2x32xf32>
    %632 = arith.negf %631 : vector<2x32xf32>
    %633 = math.exp %632 : vector<2x32xf32>
    %cst_111 = arith.constant 1.000000e+00 : f32
    %634 = vector.broadcast %cst_111 : f32 to vector<2x32xf32>
    %635 = arith.addf %634, %633 : vector<2x32xf32>
    %636 = arith.divf %634, %635 : vector<2x32xf32>
    %637 = vector.extract_strided_slice %627 {offsets = [0, 32], sizes = [2, 32], strides = [1, 1]} : vector<2x96xf32> to vector<2x32xf32>
    %638 = vector.extract_strided_slice %628 {offsets = [0, 32], sizes = [2, 32], strides = [1, 1]} : vector<2x96xf32> to vector<2x32xf32>
    %639 = arith.addf %637, %638 : vector<2x32xf32>
    %640 = arith.negf %639 : vector<2x32xf32>
    %641 = math.exp %640 : vector<2x32xf32>
    %cst_112 = arith.constant 1.000000e+00 : f32
    %642 = vector.broadcast %cst_112 : f32 to vector<2x32xf32>
    %643 = arith.addf %642, %641 : vector<2x32xf32>
    %644 = arith.divf %642, %643 : vector<2x32xf32>
    %645 = vector.extract_strided_slice %627 {offsets = [0, 64], sizes = [2, 32], strides = [1, 1]} : vector<2x96xf32> to vector<2x32xf32>
    %646 = vector.extract_strided_slice %628 {offsets = [0, 64], sizes = [2, 32], strides = [1, 1]} : vector<2x96xf32> to vector<2x32xf32>
    %647 = vector.broadcast %502 : vector<1x32xf32> to vector<2x32xf32>
    %648 = arith.addf %646, %647 : vector<2x32xf32>
    %649 = arith.mulf %636, %648 : vector<2x32xf32>
    %650 = arith.addf %645, %649 : vector<2x32xf32>
    %651 = math.tanh %650 : vector<2x32xf32>
    %cst_113 = arith.constant 1.000000e+00 : f32
    %652 = vector.broadcast %cst_113 : f32 to vector<2x32xf32>
    %653 = arith.subf %652, %644 : vector<2x32xf32>
    %654 = arith.mulf %653, %651 : vector<2x32xf32>
    %655 = arith.mulf %644, %626 : vector<2x32xf32>
    %656 = arith.addf %654, %655 : vector<2x32xf32>
    %657 = vector.extract_strided_slice %505 {offsets = [10, 0], sizes = [2, 96], strides = [1, 1]} : vector<16x96xf32> to vector<2x96xf32>
    %cst_114 = arith.constant dense<0.000000e+00> : vector<2x96xf32>
    %658 = tpu.matmul %656, %500, %cst_114 {dimension_numbers = #tpu.dot_dimension_numbers<[1], [0], [0], [1], [0, 0, 1, 1], [], []>} : vector<2x32xf32>, vector<32x96xf32>, vector<2x96xf32> -> vector<2x96xf32>
    %659 = vector.extract_strided_slice %657 {offsets = [0, 0], sizes = [2, 32], strides = [1, 1]} : vector<2x96xf32> to vector<2x32xf32>
    %660 = vector.extract_strided_slice %658 {offsets = [0, 0], sizes = [2, 32], strides = [1, 1]} : vector<2x96xf32> to vector<2x32xf32>
    %661 = arith.addf %659, %660 : vector<2x32xf32>
    %662 = arith.negf %661 : vector<2x32xf32>
    %663 = math.exp %662 : vector<2x32xf32>
    %cst_115 = arith.constant 1.000000e+00 : f32
    %664 = vector.broadcast %cst_115 : f32 to vector<2x32xf32>
    %665 = arith.addf %664, %663 : vector<2x32xf32>
    %666 = arith.divf %664, %665 : vector<2x32xf32>
    %667 = vector.extract_strided_slice %657 {offsets = [0, 32], sizes = [2, 32], strides = [1, 1]} : vector<2x96xf32> to vector<2x32xf32>
    %668 = vector.extract_strided_slice %658 {offsets = [0, 32], sizes = [2, 32], strides = [1, 1]} : vector<2x96xf32> to vector<2x32xf32>
    %669 = arith.addf %667, %668 : vector<2x32xf32>
    %670 = arith.negf %669 : vector<2x32xf32>
    %671 = math.exp %670 : vector<2x32xf32>
    %cst_116 = arith.constant 1.000000e+00 : f32
    %672 = vector.broadcast %cst_116 : f32 to vector<2x32xf32>
    %673 = arith.addf %672, %671 : vector<2x32xf32>
    %674 = arith.divf %672, %673 : vector<2x32xf32>
    %675 = vector.extract_strided_slice %657 {offsets = [0, 64], sizes = [2, 32], strides = [1, 1]} : vector<2x96xf32> to vector<2x32xf32>
    %676 = vector.extract_strided_slice %658 {offsets = [0, 64], sizes = [2, 32], strides = [1, 1]} : vector<2x96xf32> to vector<2x32xf32>
    %677 = vector.broadcast %502 : vector<1x32xf32> to vector<2x32xf32>
    %678 = arith.addf %676, %677 : vector<2x32xf32>
    %679 = arith.mulf %666, %678 : vector<2x32xf32>
    %680 = arith.addf %675, %679 : vector<2x32xf32>
    %681 = math.tanh %680 : vector<2x32xf32>
    %cst_117 = arith.constant 1.000000e+00 : f32
    %682 = vector.broadcast %cst_117 : f32 to vector<2x32xf32>
    %683 = arith.subf %682, %674 : vector<2x32xf32>
    %684 = arith.mulf %683, %681 : vector<2x32xf32>
    %685 = arith.mulf %674, %656 : vector<2x32xf32>
    %686 = arith.addf %684, %685 : vector<2x32xf32>
    %687 = vector.extract_strided_slice %505 {offsets = [12, 0], sizes = [2, 96], strides = [1, 1]} : vector<16x96xf32> to vector<2x96xf32>
    %cst_118 = arith.constant dense<0.000000e+00> : vector<2x96xf32>
    %688 = tpu.matmul %686, %500, %cst_118 {dimension_numbers = #tpu.dot_dimension_numbers<[1], [0], [0], [1], [0, 0, 1, 1], [], []>} : vector<2x32xf32>, vector<32x96xf32>, vector<2x96xf32> -> vector<2x96xf32>
    %689 = vector.extract_strided_slice %687 {offsets = [0, 0], sizes = [2, 32], strides = [1, 1]} : vector<2x96xf32> to vector<2x32xf32>
    %690 = vector.extract_strided_slice %688 {offsets = [0, 0], sizes = [2, 32], strides = [1, 1]} : vector<2x96xf32> to vector<2x32xf32>
    %691 = arith.addf %689, %690 : vector<2x32xf32>
    %692 = arith.negf %691 : vector<2x32xf32>
    %693 = math.exp %692 : vector<2x32xf32>
    %cst_119 = arith.constant 1.000000e+00 : f32
    %694 = vector.broadcast %cst_119 : f32 to vector<2x32xf32>
    %695 = arith.addf %694, %693 : vector<2x32xf32>
    %696 = arith.divf %694, %695 : vector<2x32xf32>
    %697 = vector.extract_strided_slice %687 {offsets = [0, 32], sizes = [2, 32], strides = [1, 1]} : vector<2x96xf32> to vector<2x32xf32>
    %698 = vector.extract_strided_slice %688 {offsets = [0, 32], sizes = [2, 32], strides = [1, 1]} : vector<2x96xf32> to vector<2x32xf32>
    %699 = arith.addf %697, %698 : vector<2x32xf32>
    %700 = arith.negf %699 : vector<2x32xf32>
    %701 = math.exp %700 : vector<2x32xf32>
    %cst_120 = arith.constant 1.000000e+00 : f32
    %702 = vector.broadcast %cst_120 : f32 to vector<2x32xf32>
    %703 = arith.addf %702, %701 : vector<2x32xf32>
    %704 = arith.divf %702, %703 : vector<2x32xf32>
    %705 = vector.extract_strided_slice %687 {offsets = [0, 64], sizes = [2, 32], strides = [1, 1]} : vector<2x96xf32> to vector<2x32xf32>
    %706 = vector.extract_strided_slice %688 {offsets = [0, 64], sizes = [2, 32], strides = [1, 1]} : vector<2x96xf32> to vector<2x32xf32>
    %707 = vector.broadcast %502 : vector<1x32xf32> to vector<2x32xf32>
    %708 = arith.addf %706, %707 : vector<2x32xf32>
    %709 = arith.mulf %696, %708 : vector<2x32xf32>
    %710 = arith.addf %705, %709 : vector<2x32xf32>
    %711 = math.tanh %710 : vector<2x32xf32>
    %cst_121 = arith.constant 1.000000e+00 : f32
    %712 = vector.broadcast %cst_121 : f32 to vector<2x32xf32>
    %713 = arith.subf %712, %704 : vector<2x32xf32>
    %714 = arith.mulf %713, %711 : vector<2x32xf32>
    %715 = arith.mulf %704, %686 : vector<2x32xf32>
    %716 = arith.addf %714, %715 : vector<2x32xf32>
    %717 = vector.extract_strided_slice %505 {offsets = [14, 0], sizes = [2, 96], strides = [1, 1]} : vector<16x96xf32> to vector<2x96xf32>
    %cst_122 = arith.constant dense<0.000000e+00> : vector<2x96xf32>
    %718 = tpu.matmul %716, %500, %cst_122 {dimension_numbers = #tpu.dot_dimension_numbers<[1], [0], [0], [1], [0, 0, 1, 1], [], []>} : vector<2x32xf32>, vector<32x96xf32>, vector<2x96xf32> -> vector<2x96xf32>
    %719 = vector.extract_strided_slice %717 {offsets = [0, 0], sizes = [2, 32], strides = [1, 1]} : vector<2x96xf32> to vector<2x32xf32>
    %720 = vector.extract_strided_slice %718 {offsets = [0, 0], sizes = [2, 32], strides = [1, 1]} : vector<2x96xf32> to vector<2x32xf32>
    %721 = arith.addf %719, %720 : vector<2x32xf32>
    %722 = arith.negf %721 : vector<2x32xf32>
    %723 = math.exp %722 : vector<2x32xf32>
    %cst_123 = arith.constant 1.000000e+00 : f32
    %724 = vector.broadcast %cst_123 : f32 to vector<2x32xf32>
    %725 = arith.addf %724, %723 : vector<2x32xf32>
    %726 = arith.divf %724, %725 : vector<2x32xf32>
    %727 = vector.extract_strided_slice %717 {offsets = [0, 32], sizes = [2, 32], strides = [1, 1]} : vector<2x96xf32> to vector<2x32xf32>
    %728 = vector.extract_strided_slice %718 {offsets = [0, 32], sizes = [2, 32], strides = [1, 1]} : vector<2x96xf32> to vector<2x32xf32>
    %729 = arith.addf %727, %728 : vector<2x32xf32>
    %730 = arith.negf %729 : vector<2x32xf32>
    %731 = math.exp %730 : vector<2x32xf32>
    %cst_124 = arith.constant 1.000000e+00 : f32
    %732 = vector.broadcast %cst_124 : f32 to vector<2x32xf32>
    %733 = arith.addf %732, %731 : vector<2x32xf32>
    %734 = arith.divf %732, %733 : vector<2x32xf32>
    %735 = vector.extract_strided_slice %717 {offsets = [0, 64], sizes = [2, 32], strides = [1, 1]} : vector<2x96xf32> to vector<2x32xf32>
    %736 = vector.extract_strided_slice %718 {offsets = [0, 64], sizes = [2, 32], strides = [1, 1]} : vector<2x96xf32> to vector<2x32xf32>
    %737 = vector.broadcast %502 : vector<1x32xf32> to vector<2x32xf32>
    %738 = arith.addf %736, %737 : vector<2x32xf32>
    %739 = arith.mulf %726, %738 : vector<2x32xf32>
    %740 = arith.addf %735, %739 : vector<2x32xf32>
    %741 = math.tanh %740 : vector<2x32xf32>
    %cst_125 = arith.constant 1.000000e+00 : f32
    %742 = vector.broadcast %cst_125 : f32 to vector<2x32xf32>
    %743 = arith.subf %742, %734 : vector<2x32xf32>
    %744 = arith.mulf %743, %741 : vector<2x32xf32>
    %745 = arith.mulf %734, %716 : vector<2x32xf32>
    %746 = arith.addf %744, %745 : vector<2x32xf32>
    %747 = tpu.concatenate %536, %566, %596, %626, %656, %686, %716, %746 in 0 : vector<2x32xf32>, vector<2x32xf32>, vector<2x32xf32>, vector<2x32xf32>, vector<2x32xf32>, vector<2x32xf32>, vector<2x32xf32>, vector<2x32xf32> -> vector<16x32xf32>
    %c0_126 = arith.constant 0 : index
    %c0_127 = arith.constant 0 : index
    %748 = vector.load %arg13[%c0_126, %c0_127] : memref<32x96xf32, #tpu.memory_space<vmem>>, vector<32x96xf32>
    %c0_128 = arith.constant 0 : index
    %c0_129 = arith.constant 0 : index
    %749 = vector.load %arg14[%c0_128, %c0_129] : memref<32x96xf32, #tpu.memory_space<vmem>>, vector<32x96xf32>
    %c0_130 = arith.constant 0 : index
    %c0_131 = arith.constant 0 : index
    %750 = vector.load %arg15[%c0_130, %c0_131] : memref<1x96xf32, #tpu.memory_space<vmem>>, vector<1x96xf32>
    %c0_132 = arith.constant 0 : index
    %c0_133 = arith.constant 0 : index
    %751 = vector.load %arg16[%c0_132, %c0_133] : memref<1x32xf32, #tpu.memory_space<vmem>>, vector<1x32xf32>
    %cst_134 = arith.constant dense<0.000000e+00> : vector<16x96xf32>
    %752 = tpu.matmul %747, %748, %cst_134 {dimension_numbers = #tpu.dot_dimension_numbers<[1], [0], [0], [1], [0, 0, 1, 1], [], []>} : vector<16x32xf32>, vector<32x96xf32>, vector<16x96xf32> -> vector<16x96xf32>
    %753 = vector.broadcast %750 : vector<1x96xf32> to vector<16x96xf32>
    %754 = arith.addf %752, %753 : vector<16x96xf32>
    %cst_135 = arith.constant 0.000000e+00 : f32
    %755 = vector.broadcast %cst_135 : f32 to vector<2x32xf32>
    %756 = vector.extract_strided_slice %754 {offsets = [0, 0], sizes = [2, 96], strides = [1, 1]} : vector<16x96xf32> to vector<2x96xf32>
    %cst_136 = arith.constant dense<0.000000e+00> : vector<2x96xf32>
    %757 = tpu.matmul %755, %749, %cst_136 {dimension_numbers = #tpu.dot_dimension_numbers<[1], [0], [0], [1], [0, 0, 1, 1], [], []>} : vector<2x32xf32>, vector<32x96xf32>, vector<2x96xf32> -> vector<2x96xf32>
    %758 = vector.extract_strided_slice %756 {offsets = [0, 0], sizes = [2, 32], strides = [1, 1]} : vector<2x96xf32> to vector<2x32xf32>
    %759 = vector.extract_strided_slice %757 {offsets = [0, 0], sizes = [2, 32], strides = [1, 1]} : vector<2x96xf32> to vector<2x32xf32>
    %760 = arith.addf %758, %759 : vector<2x32xf32>
    %761 = arith.negf %760 : vector<2x32xf32>
    %762 = math.exp %761 : vector<2x32xf32>
    %cst_137 = arith.constant 1.000000e+00 : f32
    %763 = vector.broadcast %cst_137 : f32 to vector<2x32xf32>
    %764 = arith.addf %763, %762 : vector<2x32xf32>
    %765 = arith.divf %763, %764 : vector<2x32xf32>
    %766 = vector.extract_strided_slice %756 {offsets = [0, 32], sizes = [2, 32], strides = [1, 1]} : vector<2x96xf32> to vector<2x32xf32>
    %767 = vector.extract_strided_slice %757 {offsets = [0, 32], sizes = [2, 32], strides = [1, 1]} : vector<2x96xf32> to vector<2x32xf32>
    %768 = arith.addf %766, %767 : vector<2x32xf32>
    %769 = arith.negf %768 : vector<2x32xf32>
    %770 = math.exp %769 : vector<2x32xf32>
    %cst_138 = arith.constant 1.000000e+00 : f32
    %771 = vector.broadcast %cst_138 : f32 to vector<2x32xf32>
    %772 = arith.addf %771, %770 : vector<2x32xf32>
    %773 = arith.divf %771, %772 : vector<2x32xf32>
    %774 = vector.extract_strided_slice %756 {offsets = [0, 64], sizes = [2, 32], strides = [1, 1]} : vector<2x96xf32> to vector<2x32xf32>
    %775 = vector.extract_strided_slice %757 {offsets = [0, 64], sizes = [2, 32], strides = [1, 1]} : vector<2x96xf32> to vector<2x32xf32>
    %776 = vector.broadcast %751 : vector<1x32xf32> to vector<2x32xf32>
    %777 = arith.addf %775, %776 : vector<2x32xf32>
    %778 = arith.mulf %765, %777 : vector<2x32xf32>
    %779 = arith.addf %774, %778 : vector<2x32xf32>
    %780 = math.tanh %779 : vector<2x32xf32>
    %cst_139 = arith.constant 1.000000e+00 : f32
    %781 = vector.broadcast %cst_139 : f32 to vector<2x32xf32>
    %782 = arith.subf %781, %773 : vector<2x32xf32>
    %783 = arith.mulf %782, %780 : vector<2x32xf32>
    %784 = arith.mulf %773, %755 : vector<2x32xf32>
    %785 = arith.addf %783, %784 : vector<2x32xf32>
    %786 = vector.extract_strided_slice %754 {offsets = [2, 0], sizes = [2, 96], strides = [1, 1]} : vector<16x96xf32> to vector<2x96xf32>
    %cst_140 = arith.constant dense<0.000000e+00> : vector<2x96xf32>
    %787 = tpu.matmul %785, %749, %cst_140 {dimension_numbers = #tpu.dot_dimension_numbers<[1], [0], [0], [1], [0, 0, 1, 1], [], []>} : vector<2x32xf32>, vector<32x96xf32>, vector<2x96xf32> -> vector<2x96xf32>
    %788 = vector.extract_strided_slice %786 {offsets = [0, 0], sizes = [2, 32], strides = [1, 1]} : vector<2x96xf32> to vector<2x32xf32>
    %789 = vector.extract_strided_slice %787 {offsets = [0, 0], sizes = [2, 32], strides = [1, 1]} : vector<2x96xf32> to vector<2x32xf32>
    %790 = arith.addf %788, %789 : vector<2x32xf32>
    %791 = arith.negf %790 : vector<2x32xf32>
    %792 = math.exp %791 : vector<2x32xf32>
    %cst_141 = arith.constant 1.000000e+00 : f32
    %793 = vector.broadcast %cst_141 : f32 to vector<2x32xf32>
    %794 = arith.addf %793, %792 : vector<2x32xf32>
    %795 = arith.divf %793, %794 : vector<2x32xf32>
    %796 = vector.extract_strided_slice %786 {offsets = [0, 32], sizes = [2, 32], strides = [1, 1]} : vector<2x96xf32> to vector<2x32xf32>
    %797 = vector.extract_strided_slice %787 {offsets = [0, 32], sizes = [2, 32], strides = [1, 1]} : vector<2x96xf32> to vector<2x32xf32>
    %798 = arith.addf %796, %797 : vector<2x32xf32>
    %799 = arith.negf %798 : vector<2x32xf32>
    %800 = math.exp %799 : vector<2x32xf32>
    %cst_142 = arith.constant 1.000000e+00 : f32
    %801 = vector.broadcast %cst_142 : f32 to vector<2x32xf32>
    %802 = arith.addf %801, %800 : vector<2x32xf32>
    %803 = arith.divf %801, %802 : vector<2x32xf32>
    %804 = vector.extract_strided_slice %786 {offsets = [0, 64], sizes = [2, 32], strides = [1, 1]} : vector<2x96xf32> to vector<2x32xf32>
    %805 = vector.extract_strided_slice %787 {offsets = [0, 64], sizes = [2, 32], strides = [1, 1]} : vector<2x96xf32> to vector<2x32xf32>
    %806 = vector.broadcast %751 : vector<1x32xf32> to vector<2x32xf32>
    %807 = arith.addf %805, %806 : vector<2x32xf32>
    %808 = arith.mulf %795, %807 : vector<2x32xf32>
    %809 = arith.addf %804, %808 : vector<2x32xf32>
    %810 = math.tanh %809 : vector<2x32xf32>
    %cst_143 = arith.constant 1.000000e+00 : f32
    %811 = vector.broadcast %cst_143 : f32 to vector<2x32xf32>
    %812 = arith.subf %811, %803 : vector<2x32xf32>
    %813 = arith.mulf %812, %810 : vector<2x32xf32>
    %814 = arith.mulf %803, %785 : vector<2x32xf32>
    %815 = arith.addf %813, %814 : vector<2x32xf32>
    %816 = vector.extract_strided_slice %754 {offsets = [4, 0], sizes = [2, 96], strides = [1, 1]} : vector<16x96xf32> to vector<2x96xf32>
    %cst_144 = arith.constant dense<0.000000e+00> : vector<2x96xf32>
    %817 = tpu.matmul %815, %749, %cst_144 {dimension_numbers = #tpu.dot_dimension_numbers<[1], [0], [0], [1], [0, 0, 1, 1], [], []>} : vector<2x32xf32>, vector<32x96xf32>, vector<2x96xf32> -> vector<2x96xf32>
    %818 = vector.extract_strided_slice %816 {offsets = [0, 0], sizes = [2, 32], strides = [1, 1]} : vector<2x96xf32> to vector<2x32xf32>
    %819 = vector.extract_strided_slice %817 {offsets = [0, 0], sizes = [2, 32], strides = [1, 1]} : vector<2x96xf32> to vector<2x32xf32>
    %820 = arith.addf %818, %819 : vector<2x32xf32>
    %821 = arith.negf %820 : vector<2x32xf32>
    %822 = math.exp %821 : vector<2x32xf32>
    %cst_145 = arith.constant 1.000000e+00 : f32
    %823 = vector.broadcast %cst_145 : f32 to vector<2x32xf32>
    %824 = arith.addf %823, %822 : vector<2x32xf32>
    %825 = arith.divf %823, %824 : vector<2x32xf32>
    %826 = vector.extract_strided_slice %816 {offsets = [0, 32], sizes = [2, 32], strides = [1, 1]} : vector<2x96xf32> to vector<2x32xf32>
    %827 = vector.extract_strided_slice %817 {offsets = [0, 32], sizes = [2, 32], strides = [1, 1]} : vector<2x96xf32> to vector<2x32xf32>
    %828 = arith.addf %826, %827 : vector<2x32xf32>
    %829 = arith.negf %828 : vector<2x32xf32>
    %830 = math.exp %829 : vector<2x32xf32>
    %cst_146 = arith.constant 1.000000e+00 : f32
    %831 = vector.broadcast %cst_146 : f32 to vector<2x32xf32>
    %832 = arith.addf %831, %830 : vector<2x32xf32>
    %833 = arith.divf %831, %832 : vector<2x32xf32>
    %834 = vector.extract_strided_slice %816 {offsets = [0, 64], sizes = [2, 32], strides = [1, 1]} : vector<2x96xf32> to vector<2x32xf32>
    %835 = vector.extract_strided_slice %817 {offsets = [0, 64], sizes = [2, 32], strides = [1, 1]} : vector<2x96xf32> to vector<2x32xf32>
    %836 = vector.broadcast %751 : vector<1x32xf32> to vector<2x32xf32>
    %837 = arith.addf %835, %836 : vector<2x32xf32>
    %838 = arith.mulf %825, %837 : vector<2x32xf32>
    %839 = arith.addf %834, %838 : vector<2x32xf32>
    %840 = math.tanh %839 : vector<2x32xf32>
    %cst_147 = arith.constant 1.000000e+00 : f32
    %841 = vector.broadcast %cst_147 : f32 to vector<2x32xf32>
    %842 = arith.subf %841, %833 : vector<2x32xf32>
    %843 = arith.mulf %842, %840 : vector<2x32xf32>
    %844 = arith.mulf %833, %815 : vector<2x32xf32>
    %845 = arith.addf %843, %844 : vector<2x32xf32>
    %846 = vector.extract_strided_slice %754 {offsets = [6, 0], sizes = [2, 96], strides = [1, 1]} : vector<16x96xf32> to vector<2x96xf32>
    %cst_148 = arith.constant dense<0.000000e+00> : vector<2x96xf32>
    %847 = tpu.matmul %845, %749, %cst_148 {dimension_numbers = #tpu.dot_dimension_numbers<[1], [0], [0], [1], [0, 0, 1, 1], [], []>} : vector<2x32xf32>, vector<32x96xf32>, vector<2x96xf32> -> vector<2x96xf32>
    %848 = vector.extract_strided_slice %846 {offsets = [0, 0], sizes = [2, 32], strides = [1, 1]} : vector<2x96xf32> to vector<2x32xf32>
    %849 = vector.extract_strided_slice %847 {offsets = [0, 0], sizes = [2, 32], strides = [1, 1]} : vector<2x96xf32> to vector<2x32xf32>
    %850 = arith.addf %848, %849 : vector<2x32xf32>
    %851 = arith.negf %850 : vector<2x32xf32>
    %852 = math.exp %851 : vector<2x32xf32>
    %cst_149 = arith.constant 1.000000e+00 : f32
    %853 = vector.broadcast %cst_149 : f32 to vector<2x32xf32>
    %854 = arith.addf %853, %852 : vector<2x32xf32>
    %855 = arith.divf %853, %854 : vector<2x32xf32>
    %856 = vector.extract_strided_slice %846 {offsets = [0, 32], sizes = [2, 32], strides = [1, 1]} : vector<2x96xf32> to vector<2x32xf32>
    %857 = vector.extract_strided_slice %847 {offsets = [0, 32], sizes = [2, 32], strides = [1, 1]} : vector<2x96xf32> to vector<2x32xf32>
    %858 = arith.addf %856, %857 : vector<2x32xf32>
    %859 = arith.negf %858 : vector<2x32xf32>
    %860 = math.exp %859 : vector<2x32xf32>
    %cst_150 = arith.constant 1.000000e+00 : f32
    %861 = vector.broadcast %cst_150 : f32 to vector<2x32xf32>
    %862 = arith.addf %861, %860 : vector<2x32xf32>
    %863 = arith.divf %861, %862 : vector<2x32xf32>
    %864 = vector.extract_strided_slice %846 {offsets = [0, 64], sizes = [2, 32], strides = [1, 1]} : vector<2x96xf32> to vector<2x32xf32>
    %865 = vector.extract_strided_slice %847 {offsets = [0, 64], sizes = [2, 32], strides = [1, 1]} : vector<2x96xf32> to vector<2x32xf32>
    %866 = vector.broadcast %751 : vector<1x32xf32> to vector<2x32xf32>
    %867 = arith.addf %865, %866 : vector<2x32xf32>
    %868 = arith.mulf %855, %867 : vector<2x32xf32>
    %869 = arith.addf %864, %868 : vector<2x32xf32>
    %870 = math.tanh %869 : vector<2x32xf32>
    %cst_151 = arith.constant 1.000000e+00 : f32
    %871 = vector.broadcast %cst_151 : f32 to vector<2x32xf32>
    %872 = arith.subf %871, %863 : vector<2x32xf32>
    %873 = arith.mulf %872, %870 : vector<2x32xf32>
    %874 = arith.mulf %863, %845 : vector<2x32xf32>
    %875 = arith.addf %873, %874 : vector<2x32xf32>
    %876 = vector.extract_strided_slice %754 {offsets = [8, 0], sizes = [2, 96], strides = [1, 1]} : vector<16x96xf32> to vector<2x96xf32>
    %cst_152 = arith.constant dense<0.000000e+00> : vector<2x96xf32>
    %877 = tpu.matmul %875, %749, %cst_152 {dimension_numbers = #tpu.dot_dimension_numbers<[1], [0], [0], [1], [0, 0, 1, 1], [], []>} : vector<2x32xf32>, vector<32x96xf32>, vector<2x96xf32> -> vector<2x96xf32>
    %878 = vector.extract_strided_slice %876 {offsets = [0, 0], sizes = [2, 32], strides = [1, 1]} : vector<2x96xf32> to vector<2x32xf32>
    %879 = vector.extract_strided_slice %877 {offsets = [0, 0], sizes = [2, 32], strides = [1, 1]} : vector<2x96xf32> to vector<2x32xf32>
    %880 = arith.addf %878, %879 : vector<2x32xf32>
    %881 = arith.negf %880 : vector<2x32xf32>
    %882 = math.exp %881 : vector<2x32xf32>
    %cst_153 = arith.constant 1.000000e+00 : f32
    %883 = vector.broadcast %cst_153 : f32 to vector<2x32xf32>
    %884 = arith.addf %883, %882 : vector<2x32xf32>
    %885 = arith.divf %883, %884 : vector<2x32xf32>
    %886 = vector.extract_strided_slice %876 {offsets = [0, 32], sizes = [2, 32], strides = [1, 1]} : vector<2x96xf32> to vector<2x32xf32>
    %887 = vector.extract_strided_slice %877 {offsets = [0, 32], sizes = [2, 32], strides = [1, 1]} : vector<2x96xf32> to vector<2x32xf32>
    %888 = arith.addf %886, %887 : vector<2x32xf32>
    %889 = arith.negf %888 : vector<2x32xf32>
    %890 = math.exp %889 : vector<2x32xf32>
    %cst_154 = arith.constant 1.000000e+00 : f32
    %891 = vector.broadcast %cst_154 : f32 to vector<2x32xf32>
    %892 = arith.addf %891, %890 : vector<2x32xf32>
    %893 = arith.divf %891, %892 : vector<2x32xf32>
    %894 = vector.extract_strided_slice %876 {offsets = [0, 64], sizes = [2, 32], strides = [1, 1]} : vector<2x96xf32> to vector<2x32xf32>
    %895 = vector.extract_strided_slice %877 {offsets = [0, 64], sizes = [2, 32], strides = [1, 1]} : vector<2x96xf32> to vector<2x32xf32>
    %896 = vector.broadcast %751 : vector<1x32xf32> to vector<2x32xf32>
    %897 = arith.addf %895, %896 : vector<2x32xf32>
    %898 = arith.mulf %885, %897 : vector<2x32xf32>
    %899 = arith.addf %894, %898 : vector<2x32xf32>
    %900 = math.tanh %899 : vector<2x32xf32>
    %cst_155 = arith.constant 1.000000e+00 : f32
    %901 = vector.broadcast %cst_155 : f32 to vector<2x32xf32>
    %902 = arith.subf %901, %893 : vector<2x32xf32>
    %903 = arith.mulf %902, %900 : vector<2x32xf32>
    %904 = arith.mulf %893, %875 : vector<2x32xf32>
    %905 = arith.addf %903, %904 : vector<2x32xf32>
    %906 = vector.extract_strided_slice %754 {offsets = [10, 0], sizes = [2, 96], strides = [1, 1]} : vector<16x96xf32> to vector<2x96xf32>
    %cst_156 = arith.constant dense<0.000000e+00> : vector<2x96xf32>
    %907 = tpu.matmul %905, %749, %cst_156 {dimension_numbers = #tpu.dot_dimension_numbers<[1], [0], [0], [1], [0, 0, 1, 1], [], []>} : vector<2x32xf32>, vector<32x96xf32>, vector<2x96xf32> -> vector<2x96xf32>
    %908 = vector.extract_strided_slice %906 {offsets = [0, 0], sizes = [2, 32], strides = [1, 1]} : vector<2x96xf32> to vector<2x32xf32>
    %909 = vector.extract_strided_slice %907 {offsets = [0, 0], sizes = [2, 32], strides = [1, 1]} : vector<2x96xf32> to vector<2x32xf32>
    %910 = arith.addf %908, %909 : vector<2x32xf32>
    %911 = arith.negf %910 : vector<2x32xf32>
    %912 = math.exp %911 : vector<2x32xf32>
    %cst_157 = arith.constant 1.000000e+00 : f32
    %913 = vector.broadcast %cst_157 : f32 to vector<2x32xf32>
    %914 = arith.addf %913, %912 : vector<2x32xf32>
    %915 = arith.divf %913, %914 : vector<2x32xf32>
    %916 = vector.extract_strided_slice %906 {offsets = [0, 32], sizes = [2, 32], strides = [1, 1]} : vector<2x96xf32> to vector<2x32xf32>
    %917 = vector.extract_strided_slice %907 {offsets = [0, 32], sizes = [2, 32], strides = [1, 1]} : vector<2x96xf32> to vector<2x32xf32>
    %918 = arith.addf %916, %917 : vector<2x32xf32>
    %919 = arith.negf %918 : vector<2x32xf32>
    %920 = math.exp %919 : vector<2x32xf32>
    %cst_158 = arith.constant 1.000000e+00 : f32
    %921 = vector.broadcast %cst_158 : f32 to vector<2x32xf32>
    %922 = arith.addf %921, %920 : vector<2x32xf32>
    %923 = arith.divf %921, %922 : vector<2x32xf32>
    %924 = vector.extract_strided_slice %906 {offsets = [0, 64], sizes = [2, 32], strides = [1, 1]} : vector<2x96xf32> to vector<2x32xf32>
    %925 = vector.extract_strided_slice %907 {offsets = [0, 64], sizes = [2, 32], strides = [1, 1]} : vector<2x96xf32> to vector<2x32xf32>
    %926 = vector.broadcast %751 : vector<1x32xf32> to vector<2x32xf32>
    %927 = arith.addf %925, %926 : vector<2x32xf32>
    %928 = arith.mulf %915, %927 : vector<2x32xf32>
    %929 = arith.addf %924, %928 : vector<2x32xf32>
    %930 = math.tanh %929 : vector<2x32xf32>
    %cst_159 = arith.constant 1.000000e+00 : f32
    %931 = vector.broadcast %cst_159 : f32 to vector<2x32xf32>
    %932 = arith.subf %931, %923 : vector<2x32xf32>
    %933 = arith.mulf %932, %930 : vector<2x32xf32>
    %934 = arith.mulf %923, %905 : vector<2x32xf32>
    %935 = arith.addf %933, %934 : vector<2x32xf32>
    %936 = vector.extract_strided_slice %754 {offsets = [12, 0], sizes = [2, 96], strides = [1, 1]} : vector<16x96xf32> to vector<2x96xf32>
    %cst_160 = arith.constant dense<0.000000e+00> : vector<2x96xf32>
    %937 = tpu.matmul %935, %749, %cst_160 {dimension_numbers = #tpu.dot_dimension_numbers<[1], [0], [0], [1], [0, 0, 1, 1], [], []>} : vector<2x32xf32>, vector<32x96xf32>, vector<2x96xf32> -> vector<2x96xf32>
    %938 = vector.extract_strided_slice %936 {offsets = [0, 0], sizes = [2, 32], strides = [1, 1]} : vector<2x96xf32> to vector<2x32xf32>
    %939 = vector.extract_strided_slice %937 {offsets = [0, 0], sizes = [2, 32], strides = [1, 1]} : vector<2x96xf32> to vector<2x32xf32>
    %940 = arith.addf %938, %939 : vector<2x32xf32>
    %941 = arith.negf %940 : vector<2x32xf32>
    %942 = math.exp %941 : vector<2x32xf32>
    %cst_161 = arith.constant 1.000000e+00 : f32
    %943 = vector.broadcast %cst_161 : f32 to vector<2x32xf32>
    %944 = arith.addf %943, %942 : vector<2x32xf32>
    %945 = arith.divf %943, %944 : vector<2x32xf32>
    %946 = vector.extract_strided_slice %936 {offsets = [0, 32], sizes = [2, 32], strides = [1, 1]} : vector<2x96xf32> to vector<2x32xf32>
    %947 = vector.extract_strided_slice %937 {offsets = [0, 32], sizes = [2, 32], strides = [1, 1]} : vector<2x96xf32> to vector<2x32xf32>
    %948 = arith.addf %946, %947 : vector<2x32xf32>
    %949 = arith.negf %948 : vector<2x32xf32>
    %950 = math.exp %949 : vector<2x32xf32>
    %cst_162 = arith.constant 1.000000e+00 : f32
    %951 = vector.broadcast %cst_162 : f32 to vector<2x32xf32>
    %952 = arith.addf %951, %950 : vector<2x32xf32>
    %953 = arith.divf %951, %952 : vector<2x32xf32>
    %954 = vector.extract_strided_slice %936 {offsets = [0, 64], sizes = [2, 32], strides = [1, 1]} : vector<2x96xf32> to vector<2x32xf32>
    %955 = vector.extract_strided_slice %937 {offsets = [0, 64], sizes = [2, 32], strides = [1, 1]} : vector<2x96xf32> to vector<2x32xf32>
    %956 = vector.broadcast %751 : vector<1x32xf32> to vector<2x32xf32>
    %957 = arith.addf %955, %956 : vector<2x32xf32>
    %958 = arith.mulf %945, %957 : vector<2x32xf32>
    %959 = arith.addf %954, %958 : vector<2x32xf32>
    %960 = math.tanh %959 : vector<2x32xf32>
    %cst_163 = arith.constant 1.000000e+00 : f32
    %961 = vector.broadcast %cst_163 : f32 to vector<2x32xf32>
    %962 = arith.subf %961, %953 : vector<2x32xf32>
    %963 = arith.mulf %962, %960 : vector<2x32xf32>
    %964 = arith.mulf %953, %935 : vector<2x32xf32>
    %965 = arith.addf %963, %964 : vector<2x32xf32>
    %966 = vector.extract_strided_slice %754 {offsets = [14, 0], sizes = [2, 96], strides = [1, 1]} : vector<16x96xf32> to vector<2x96xf32>
    %cst_164 = arith.constant dense<0.000000e+00> : vector<2x96xf32>
    %967 = tpu.matmul %965, %749, %cst_164 {dimension_numbers = #tpu.dot_dimension_numbers<[1], [0], [0], [1], [0, 0, 1, 1], [], []>} : vector<2x32xf32>, vector<32x96xf32>, vector<2x96xf32> -> vector<2x96xf32>
    %968 = vector.extract_strided_slice %966 {offsets = [0, 0], sizes = [2, 32], strides = [1, 1]} : vector<2x96xf32> to vector<2x32xf32>
    %969 = vector.extract_strided_slice %967 {offsets = [0, 0], sizes = [2, 32], strides = [1, 1]} : vector<2x96xf32> to vector<2x32xf32>
    %970 = arith.addf %968, %969 : vector<2x32xf32>
    %971 = arith.negf %970 : vector<2x32xf32>
    %972 = math.exp %971 : vector<2x32xf32>
    %cst_165 = arith.constant 1.000000e+00 : f32
    %973 = vector.broadcast %cst_165 : f32 to vector<2x32xf32>
    %974 = arith.addf %973, %972 : vector<2x32xf32>
    %975 = arith.divf %973, %974 : vector<2x32xf32>
    %976 = vector.extract_strided_slice %966 {offsets = [0, 32], sizes = [2, 32], strides = [1, 1]} : vector<2x96xf32> to vector<2x32xf32>
    %977 = vector.extract_strided_slice %967 {offsets = [0, 32], sizes = [2, 32], strides = [1, 1]} : vector<2x96xf32> to vector<2x32xf32>
    %978 = arith.addf %976, %977 : vector<2x32xf32>
    %979 = arith.negf %978 : vector<2x32xf32>
    %980 = math.exp %979 : vector<2x32xf32>
    %cst_166 = arith.constant 1.000000e+00 : f32
    %981 = vector.broadcast %cst_166 : f32 to vector<2x32xf32>
    %982 = arith.addf %981, %980 : vector<2x32xf32>
    %983 = arith.divf %981, %982 : vector<2x32xf32>
    %984 = vector.extract_strided_slice %966 {offsets = [0, 64], sizes = [2, 32], strides = [1, 1]} : vector<2x96xf32> to vector<2x32xf32>
    %985 = vector.extract_strided_slice %967 {offsets = [0, 64], sizes = [2, 32], strides = [1, 1]} : vector<2x96xf32> to vector<2x32xf32>
    %986 = vector.broadcast %751 : vector<1x32xf32> to vector<2x32xf32>
    %987 = arith.addf %985, %986 : vector<2x32xf32>
    %988 = arith.mulf %975, %987 : vector<2x32xf32>
    %989 = arith.addf %984, %988 : vector<2x32xf32>
    %990 = math.tanh %989 : vector<2x32xf32>
    %cst_167 = arith.constant 1.000000e+00 : f32
    %991 = vector.broadcast %cst_167 : f32 to vector<2x32xf32>
    %992 = arith.subf %991, %983 : vector<2x32xf32>
    %993 = arith.mulf %992, %990 : vector<2x32xf32>
    %994 = arith.mulf %983, %965 : vector<2x32xf32>
    %995 = arith.addf %993, %994 : vector<2x32xf32>
    %996 = tpu.concatenate %785, %815, %845, %875, %905, %935, %965, %995 in 0 : vector<2x32xf32>, vector<2x32xf32>, vector<2x32xf32>, vector<2x32xf32>, vector<2x32xf32>, vector<2x32xf32>, vector<2x32xf32>, vector<2x32xf32> -> vector<16x32xf32>
    %997 = vector.extract_strided_slice %996 {offsets = [14, 0], sizes = [2, 32], strides = [1, 1]} : vector<16x32xf32> to vector<2x32xf32>
    %c0_168 = arith.constant 0 : index
    %c0_169 = arith.constant 0 : index
    %998 = vector.load %arg17[%c0_168, %c0_169] : memref<32x1xf32, #tpu.memory_space<vmem>>, vector<32x1xf32>
    %cst_170 = arith.constant dense<0.000000e+00> : vector<2x1xf32>
    %999 = tpu.matmul %997, %998, %cst_170 {dimension_numbers = #tpu.dot_dimension_numbers<[1], [0], [0], [1], [0, 0, 1, 1], [], []>} : vector<2x32xf32>, vector<32x1xf32>, vector<2x1xf32> -> vector<2x1xf32>
    %c0_171 = arith.constant 0 : index
    %c0_172 = arith.constant 0 : index
    %1000 = vector.load %arg18[%c0_171, %c0_172] : memref<1x1xf32, #tpu.memory_space<vmem>>, vector<1x1xf32>
    %1001 = vector.broadcast %1000 : vector<1x1xf32> to vector<2x1xf32>
    %1002 = arith.addf %999, %1001 : vector<2x1xf32>
    %c0_173 = arith.constant 0 : index
    %c0_174 = arith.constant 0 : index
    %1003 = vector.load %arg19[%c0_173, %c0_174] : memref<2x1xf32, #tpu.memory_space<vmem>>, vector<2x1xf32>
    tpu.vector_store %arg19[%c0_173, %c0_174], %1002 {strides = array<i32>} : memref<2x1xf32, #tpu.memory_space<vmem>>, vector<2x1xf32>,
    return
  }
}

</mosaic_0001>

<bundles_post_ra>
// kernel: gru_forward.1
= control target key start
LH: loop header
LB: loop body
LE: loop exit
PB: predicated region body
PF: predicated region fallthrough
CT: control target
= control target key end

     0   :  { %s6379_s0 = inlined_call_operand.vmem [shape: f32[16,16], index: 0, kind: input, shape index: {}]   ;;  %s6380_s1 = inlined_call_operand.hbm [shape: f32[16,96], index: 1, kind: input, shape index: {}]   ;;  %s6381_s2 = inlined_call_operand.vmem [shape: f32[32,96], index: 2, kind: input, shape index: {}]   ;;  %s6382_s3 = inlined_call_operand.vmem [shape: f32[1,96], index: 3, kind: input, shape index: {}]   ;;  %s6383_s4 = inlined_call_operand.hbm [shape: f32[1,32], index: 4, kind: input, shape index: {}]   ;;  %s6384_s5 = inlined_call_operand.vmem [shape: f32[32,96], index: 5, kind: input, shape index: {}]   ;;  %s6385_s6 = inlined_call_operand.vmem [shape: f32[32,96], index: 6, kind: input, shape index: {}]   ;;  %s6386_s7 = inlined_call_operand.hbm [shape: f32[1,96], index: 7, kind: input, shape index: {}]   ;;  %s6387_s8 = inlined_call_operand.hbm [shape: f32[1,32], index: 8, kind: input, shape index: {}]   ;;  %s6388_s9 = inlined_call_operand.hbm [shape: f32[32,96], index: 9, kind: input, shape index: {}]   ;;  %s6389_s10 = inlined_call_operand.hbm [shape: f32[32,96], index: 10, kind: input, shape index: {}]   ;;  %s6390_s11 = inlined_call_operand.hbm [shape: f32[1,96], index: 11, kind: input, shape index: {}]   ;;  %s6391_s12 = inlined_call_operand.hbm [shape: f32[1,32], index: 12, kind: input, shape index: {}]   ;;  %s6392_s13 = inlined_call_operand.vmem [shape: f32[32,96], index: 13, kind: input, shape index: {}]   ;;  %s6393_s14 = inlined_call_operand.hbm [shape: f32[32,96], index: 14, kind: input, shape index: {}]   ;;  %s6394_s15 = inlined_call_operand.vmem [shape: f32[1,96], index: 15, kind: input, shape index: {}]   ;;  %s6395_s16 = inlined_call_operand.vmem [shape: f32[1,32], index: 16, kind: input, shape index: {}]   ;;  %s6396_s17 = inlined_call_operand.vmem [shape: f32[32,1], index: 17, kind: input, shape index: {}]   ;;  %s6397_s18 = inlined_call_operand.<no memory space> [shape: f32[1,1], index: 18, kind: input, shape index: {}]   ;;  %s6398_s19 = inlined_call_operand.vmem [shape: f32[2,1], index: 19, kind: output, shape index: {}]  }
   0x1   :  { %6402 = sst [smem:[#allocation22_spill]] %s6379_s0  ;;  %v24_v0 = vstv %s6397_s18 }
   0x2   :  { %6403 = sst [smem:[#allocation23_spill]] %s6380_s1  ;;  %25 = vst [vmem:[#allocation2] sm:$0x1] %v24_v0 }
   0x3   :  { %6404 = sst [smem:[#allocation24_spill]] %s6381_s2 }
   0x4   :  { %6405 = sst [smem:[#allocation25_spill]] %s6382_s3 }
   0x5   :  { %26 = vsyncpa [#allocation4], 0 }
   0x6   :  { %27 = vsyncpa [#allocation6], 0 }
   0x7   :  { %28 = vsyncpa [#allocation9], 0 }
   0x8   :  { %29 = vsyncpa [#allocation12], 0 }
   0x9   :  { %30 = vsyncpa [#allocation15], 0  ;;  %s5457_s20 = smov [#allocation5]   ;;  %s5458_s1 = smov [#allocation8]  }
   0xa   :  { %s55_s21 = sshll.u32 %s5457_s20, 4  ;;  %s79_s22 = sshll.u32 %s5458_s1, 4  ;;  %s56_s21 = int_to_ptr.vmem [resolvable:$true] %s55_s21  ;;  %s80_s22 = int_to_ptr.vmem [resolvable:$true] %s79_s22 }
   0xb   :  { %s5249_s24 = scalar_lea.hbm %s6383_s4, 16 }
   0xc   :  { %p5250_p0 = scmp.ne.s32.totalorder %s6383_s4, %s5249_s24  ;;  %p5253_p1 = scmp.lt.u32.totalorder %s5249_s24, %s6383_s4 }
   0xe   :  { %p5255_p2 = pnand %p5253_p1, %p5250_p0 }
  0x10   :  { %5258 = shalt.err (!%p5255_p2)
}
  0x11   :  { %s5259_s27 = scalar_lea.vmem %s56_s21, 16  ;;  %s5263_s28 = scalar_lea.vmem %s56_s21, 32 }
  0x12   :  { %p5260_p3 = scmp.ne.s32.totalorder %s56_s21, %s5259_s27  ;;  %p5264_p4 = scmp.lt.s32.totalorder %s56_s21, %s56_s21 }
  0x13   :  { %p5265_p5 = scmp.lt.s32.totalorder %s5263_s28, %s5259_s27 }
  0x15   :  { %p5266_p6 = por %p5265_p5, %p5264_p4 }
  0x17   :  { %p5267_p7 = pnand %p5266_p6, %p5260_p3 }
  0x19   :  { %5270 = shalt.err (!%p5267_p7)
}
  0x1a   :  { %58 = dma.hbm_to_vmem [thread:$0]  %s6383_s4, 16, %s56_s21, [#allocation6]  }
  0x1b   :  { %s5271_s1 = scalar_lea.hbm %s6387_s8, 16 }
  0x1c   :  { %p5272_p8 = scmp.ne.s32.totalorder %s6387_s8, %s5271_s1  ;;  %p5275_p9 = scmp.lt.u32.totalorder %s5271_s1, %s6387_s8 }
  0x1e   :  { %p5277_p10 = pnand %p5275_p9, %p5272_p8 }
  0x20   :  { %5280 = shalt.err (!%p5277_p10)
}
  0x21   :  { %s5281_s3 = scalar_lea.vmem %s80_s22, 16  ;;  %s5285_s18 = scalar_lea.vmem %s80_s22, 32 }
  0x22   :  { %p5282_p11 = scmp.ne.s32.totalorder %s80_s22, %s5281_s3  ;;  %p5286_p12 = scmp.lt.s32.totalorder %s80_s22, %s80_s22 }
  0x23   :  { %p5287_p13 = scmp.lt.s32.totalorder %s5285_s18, %s5281_s3 }
  0x25   :  { %p5288_p0 = por %p5287_p13, %p5286_p12 }
  0x27   :  { %p5289_p1 = pnand %p5288_p0, %p5282_p11 }
  0x29   :  { %5292 = shalt.err (!%p5289_p1)
}
  0x2a   :  { %82 = dma.hbm_to_vmem [thread:$0]  %s6387_s8, 16, %s80_s22, [#allocation9]  }
  0x2b   :  { %s5459_s26 = smov [#allocation11]   ;;  %s5460_s28 = smov [#allocation14]  }
  0x2c   :  { %s100_s27 = sshll.u32 %s5459_s26, 4  ;;  %s123_s29 = sshll.u32 %s5460_s28, 4  ;;  %s101_s27 = int_to_ptr.vmem [resolvable:$true] %s100_s27  ;;  %s5600_s29 = int_to_ptr.vmem [resolvable:$true] %s123_s29 }
  0x2d   :  { %s5293_s20 = scalar_lea.hbm %s6389_s10, 512 }
  0x2e   :  { %p5294_p2 = scmp.ne.s32.totalorder %s6389_s10, %s5293_s20  ;;  %p5297_p3 = scmp.lt.u32.totalorder %s5293_s20, %s6389_s10 }
  0x30   :  { %p5299_p4 = pnand %p5297_p3, %p5294_p2 }
  0x32   :  { %5302 = shalt.err (!%p5299_p4)
}
  0x33   :  { %s5303_s8 = scalar_lea.vmem %s101_s27, 512  ;;  %p5308_p6 = scmp.lt.s32.totalorder %s101_s27, %s101_s27 }
  0x34   :  { %p5304_p5 = scmp.ne.s32.totalorder %s101_s27, %s5303_s8  ;;  %p5309_p7 = scmp.lt.s32.totalorder %s5303_s8, %s5303_s8 }
  0x36   :  { %p5310_p8 = por %p5309_p7, %p5308_p6 }
  0x38   :  { %p5311_p9 = pnand %p5310_p8, %p5304_p5 }
  0x3a   :  { %5314 = shalt.err (!%p5311_p9)
}
  0x3b   :  { %s5461_s22 = smov 128   ;;  %s5462_s25 = smov 8  }
  0x3c   :  { %106 = dma.hbm_to_vmem [thread:$0]  %s6389_s10, 512, %s101_s27, [#allocation12], %s5461_s22, %s5461_s22, %s5462_s25  }
  0x3d   :  { %s5315_s26 = scalar_lea.hbm %s6391_s12, 16 }
  0x3e   :  { %p5316_p10 = scmp.ne.s32.totalorder %s6391_s12, %s5315_s26  ;;  %p5319_p11 = scmp.lt.u32.totalorder %s5315_s26, %s6391_s12 }
  0x40   :  { %p5321_p12 = pnand %p5319_p11, %p5316_p10 }
  0x42   :  { %5324 = shalt.err (!%p5321_p12)
}
  0x43   :  { %s5325_s1 = scalar_lea.vmem %s5600_s29, 16  ;;  %s5329_s10 = scalar_lea.vmem %s5600_s29, 32 }
  0x44   :  { %p5326_p13 = scmp.ne.s32.totalorder %s5600_s29, %s5325_s1  ;;  %p5330_p0 = scmp.lt.s32.totalorder %s5600_s29, %s5600_s29 }
  0x45   :  { %p5331_p1 = scmp.lt.s32.totalorder %s5329_s10, %s5325_s1 }
  0x47   :  { %p5332_p2 = por %p5331_p1, %p5330_p0 }
  0x49   :  { %p5333_p3 = pnand %p5332_p2, %p5326_p13 }
  0x4b   :  { %5336 = shalt.err (!%p5333_p3)
}
  0x4c   :  { %126 = dma.hbm_to_vmem [thread:$0]  %s6391_s12, 16, %s5600_s29, [#allocation15]  }
  0x4d   :  { %s5463_s23 = smov [#allocation3]   ;;  %s5464_s8 = smov [#allocation7]  }
  0x4e   :  { %s38_s24 = sshll.u32 %s5463_s23, 4  ;;  %s69_s3 = sshll.u32 %s5464_s8, 4  ;;  %s39_s24 = int_to_ptr.vmem [resolvable:$true] %s38_s24  ;;  %s70_s3 = int_to_ptr.vmem [resolvable:$true] %s69_s3 }
  0x4f   :  { %s6406_s21 = sld [smem:[#allocation23_spill]] }
  0x55   :  { %s5337_s26 = scalar_lea.hbm %s6406_s21, 256 }
  0x56   :  { %p5338_p4 = scmp.ne.s32.totalorder %s6406_s21, %s5337_s26  ;;  %p5341_p5 = scmp.lt.u32.totalorder %s5337_s26, %s6406_s21 }
  0x58   :  { %p5343_p6 = pnand %p5341_p5, %p5338_p4 }
  0x5a   :  { %5346 = shalt.err (!%p5343_p6)
}
  0x5b   :  { %s5347_s12 = scalar_lea.vmem %s39_s24, 256  ;;  %p5352_p8 = scmp.lt.s32.totalorder %s39_s24, %s39_s24 }
  0x5c   :  { %p5348_p7 = scmp.ne.s32.totalorder %s39_s24, %s5347_s12  ;;  %p5353_p9 = scmp.lt.s32.totalorder %s5347_s12, %s5347_s12 }
  0x5e   :  { %p5354_p10 = por %p5353_p9, %p5352_p8 }
  0x60   :  { %p5355_p11 = pnand %p5354_p10, %p5348_p7 }
  0x62   :  { %5358 = shalt.err (!%p5355_p11)
}
  0x63   :  { %44 = dma.hbm_to_vmem [thread:$0]  %s6406_s21, 256, %s39_s24, [#allocation4], %s5461_s22, %s5461_s22, %s5462_s25  }
  0x64   :  { %s5359_s2 = scalar_lea.hbm %s6386_s7, 16 }
  0x65   :  { %p5360_p12 = scmp.ne.s32.totalorder %s6386_s7, %s5359_s2  ;;  %p5363_p13 = scmp.lt.u32.totalorder %s5359_s2, %s6386_s7 }
  0x67   :  { %p5365_p0 = pnand %p5363_p13, %p5360_p12 }
  0x69   :  { %5368 = shalt.err (!%p5365_p0)
}
  0x6a   :  { %s5369_s26 = scalar_lea.vmem %s70_s3, 16  ;;  %s5373_s28 = scalar_lea.vmem %s70_s3, 32 }
  0x6b   :  { %p5370_p1 = scmp.ne.s32.totalorder %s70_s3, %s5369_s26  ;;  %p5374_p2 = scmp.lt.s32.totalorder %s70_s3, %s70_s3 }
  0x6c   :  { %p5375_p3 = scmp.lt.s32.totalorder %s5373_s28, %s5369_s26 }
  0x6e   :  { %p5376_p4 = por %p5375_p3, %p5374_p2 }
  0x70   :  { %p5377_p5 = pnand %p5376_p4, %p5370_p1 }
  0x72   :  { %5380 = shalt.err (!%p5377_p5)
}
  0x73   :  { %72 = dma.hbm_to_vmem [thread:$0]  %s6386_s7, 16, %s70_s3, [#allocation6]  }
  0x74   :  { %s5465_s0 = smov [#allocation10]   ;;  %s5466_s20 = smov [#allocation13]  }
  0x75   :  { %s88_s30 = sshll.u32 %s5465_s0, 4  ;;  %s113_s12 = sshll.u32 %s5466_s20, 4  ;;  %s89_s30 = int_to_ptr.vmem [resolvable:$true] %s88_s30  ;;  %s114_s12 = int_to_ptr.vmem [resolvable:$true] %s113_s12 }
  0x76   :  { %s5381_s10 = scalar_lea.hbm %s6388_s9, 512 }
  0x77   :  { %p5382_p6 = scmp.ne.s32.totalorder %s6388_s9, %s5381_s10  ;;  %p5385_p7 = scmp.lt.u32.totalorder %s5381_s10, %s6388_s9 }
  0x79   :  { %p5387_p8 = pnand %p5385_p7, %p5382_p6 }
  0x7b   :  { %5390 = shalt.err (!%p5387_p8)
}
  0x7c   :  { %s5391_s7 = scalar_lea.vmem %s89_s30, 512  ;;  %p5396_p10 = scmp.lt.s32.totalorder %s89_s30, %s89_s30 }
  0x7d   :  { %p5392_p9 = scmp.ne.s32.totalorder %s89_s30, %s5391_s7  ;;  %p5397_p11 = scmp.lt.s32.totalorder %s5391_s7, %s5391_s7 }
  0x7f   :  { %p5398_p12 = por %p5397_p11, %p5396_p10 }
  0x81   :  { %p5399_p13 = pnand %p5398_p12, %p5392_p9 }
  0x83   :  { %5402 = shalt.err (!%p5399_p13)
}
  0x84   :  { %94 = dma.hbm_to_vmem [thread:$0]  %s6388_s9, 512, %s89_s30, [#allocation9], %s5461_s22, %s5461_s22, %s5462_s25  }
  0x85   :  { %s5403_s28 = scalar_lea.hbm %s6390_s11, 16 }
  0x86   :  { %p5404_p0 = scmp.ne.s32.totalorder %s6390_s11, %s5403_s28  ;;  %p5407_p1 = scmp.lt.u32.totalorder %s5403_s28, %s6390_s11 }
  0x88   :  { %p5409_p2 = pnand %p5407_p1, %p5404_p0 }
  0x8a   :  { %5412 = shalt.err (!%p5409_p2)
}
  0x8b   :  { %s5413_s29 = scalar_lea.vmem %s114_s12, 16  ;;  %s5417_s1 = scalar_lea.vmem %s114_s12, 32 }
  0x8c   :  { %p5414_p3 = scmp.ne.s32.totalorder %s114_s12, %s5413_s29  ;;  %p5418_p4 = scmp.lt.s32.totalorder %s114_s12, %s114_s12 }
  0x8d   :  { %p5419_p5 = scmp.lt.s32.totalorder %s5417_s1, %s5413_s29 }
  0x8f   :  { %p5420_p6 = por %p5419_p5, %p5418_p4 }
  0x91   :  { %p5421_p7 = pnand %p5420_p6, %p5414_p3 }
  0x93   :  { %5424 = shalt.err (!%p5421_p7)
}
  0x94   :  { %116 = dma.hbm_to_vmem [thread:$0]  %s6390_s11, 16, %s114_s12, [#allocation12]  }
  0x95   :  { %s5467_s10 = smov [#allocation16]   ;;  %s5425_s8 = scalar_lea.hbm %s6393_s14, 512 }
  0x96   :  { %s134_s27 = sshll.u32 %s5467_s10, 4  ;;  %p5426_p8 = scmp.ne.s32.totalorder %s6393_s14, %s5425_s8  ;;  %s135_s27 = int_to_ptr.vmem [resolvable:$true] %s134_s27 }
  0x97   :  { %p5429_p9 = scmp.lt.u32.totalorder %s5425_s8, %s6393_s14 }
  0x99   :  { %p5431_p10 = pnand %p5429_p9, %p5426_p8 }
  0x9b   :  { %5434 = shalt.err (!%p5431_p10)
}
  0x9c   :  { %s5435_s26 = scalar_lea.vmem %s135_s27, 512  ;;  %p5440_p12 = scmp.lt.s32.totalorder %s135_s27, %s135_s27 }
  0x9d   :  { %p5436_p11 = scmp.ne.s32.totalorder %s135_s27, %s5435_s26  ;;  %p5441_p13 = scmp.lt.s32.totalorder %s5435_s26, %s5435_s26 }
  0x9f   :  { %p5442_p0 = por %p5441_p13, %p5440_p12 }
  0xa1   :  { %p5443_p1 = pnand %p5442_p0, %p5436_p11 }
  0xa3   :  { %5446 = shalt.err (!%p5443_p1)
}
  0xa4   :  { %140 = dma.hbm_to_vmem [thread:$0]  %s6393_s14, 512, %s135_s27, [#allocation15], %s5461_s22, %s5461_s22, %s5462_s25  }
  0xa5   :  { %5447 = dma.done.wait [#allocation4], 256  }
  0xa6   :  { %5448 = vsyncadd [#allocation4], 4294967040 }
  0xa7   :  { %5449 = dma.done.wait [#allocation6], 32  }
  0xa8   :  { %5450 = vsyncadd [#allocation6], 4294967264 }
  0xa9   :  { %5451 = dma.done.wait [#allocation9], 528  }
  0xaa   :  { %5452 = vsyncadd [#allocation9], 4294966768 }
  0xab   :  { %5453 = dma.done.wait [#allocation12], 528  }
  0xac   :  { %5454 = vsyncadd [#allocation12], 4294966768 }
  0xad   :  { %5455 = dma.done.wait [#allocation15], 528  }
  0xae   :  { %5456 = vsyncadd [#allocation15], 4294966768  ;;  %v5468_v1 = vmov 0.0|0.0   ;;  %vm5469_vm0 = vmmov 0   ;;  %v5470_v2 = vmov 0.0   ;;  %vm192_vm1 = vcmask 130048  }
  0xaf   :  { %4819 = vmatprep.subr.bf16.mxu1 %v5468_v1  ;;  %4427 = vmatprep.mubr.msk.f32.mxu1 %vm5469_vm0, %v5470_v2  ;;  %v178_v3 = vld [vmem:[#allocation3] sm:$0xff]  ;;  %v179_v4 = vld [vmem:[#allocation3 + $0x8] sm:$0xff]  ;;  %s6407_s25 = sld [smem:[#allocation24_spill]]  ;;  %s6408_s20 = sld [smem:[#allocation22_spill]]  ;;  %v4151_v12 = vld [vmem:[#allocation5] ss:$0 sm:$0xff] }
  0xb0   :  { %v4815_v6 = vpack.c.bf16 %v179_v4, %v178_v3  ;;  %s5471_s10 = smov 64   ;;  %s6409_s7 = sld [smem:[#allocation25_spill]]  ;;  %vm274_vm2 = vcmask 261120   ;;  %vm1139_vm3 = vcmask 1041408   ;;  %vm1141_vm4 = vcmask 1043456  }
  0xb1   :  { %360 = vrot.lane.b32.xlu0 %v4151_v12, %s5471_s10  ;;  %s5472_s3 = smov 96   ;;  %vm1143_vm5 = vcmask 1045504   ;;  %vm4136_vm6 = vcmask 1024  }
  0xb2   :  { %4816 = vmatprep.subr.bf16.mxu0 %v4815_v6 }
  0xb3   :  { %4818 = vmatpush3.bf16.msra.mxu0 %v4815_v6 }
  0xb4   :  { %4825 = vmatprep.subr.bf16.mxu0 %v5468_v1 }
  0xb5   :  { %v180_v5 = vld [vmem:[%s6407_s25] sm:$0xff]  ;;  %v181_v7 = vld [vmem:[%s6407_s25 + $0x8] sm:$0xff]  ;;  %v182_v10 = vld [vmem:[%s6407_s25 + $0x10] sm:$0xff] }
  0xb6   :  { %v176_v8 = vld [vmem:[%s6408_s20] sm:$0xff]  ;;  %v5716_v9 = vpack.c.bf16 %v181_v7, %v180_v5  ;;  %v183_v11 = vld [vmem:[%s6407_s25 + $0x18] sm:$0xff]  ;;  %v177_v13 = vld [vmem:[%s6408_s20 + $0x8] sm:$0xff] }
  0xb7   :  { %4416 = vmatprep.mubr.msk.f32.mxu0 %vm192_vm1, %v176_v8  ;;  %v5730_v14 = vpack.c.bf16 %v183_v11, %v182_v10  ;;  %v4147_v16 = vld [vmem:[%s6409_s7] ss:$0 sm:$0xff] }
  0xb8   :  { %4821 = vmatpush3.bf16.msra.mxu1 %v5716_v9  ;;  %4417 = vmatmul.mubr.msk.f32.vlgmr.msra.gmra.mrb[0].mxu0 %vm192_vm1, %v177_v13 }
  0xb9   :  { %4822 = vmatprep.subr.bf16.mxu1 %v5468_v1  ;;  %4827 = vmatpush3.bf16.msra.mxu0 %v5716_v9 }
  0xba   :  { %4828 = vmatprep.subr.bf16.mxu0 %v5468_v1  ;;  %4438 = vmatprep.mubr.msk.f32.mxu0 %vm5469_vm0, %v5470_v2 }
  0xbc   :  { %4824 = vmatpush3.bf16.msra.mxu1 %v5730_v14 }
  0xbd   :  { %4831 = vmatprep.subr.bf16.mxu1 %v5468_v1  ;;  %4830 = vmatpush3.bf16.msra.mxu0 %v5730_v14 }
  0xbe   :  { %4837 = vmatprep.subr.bf16.mxu0 %v5468_v1 }
  0xbf   :  { %4428 = vmatmul.mubr.f32.vlgmr.msra.gmra.mrb[0].mxu1 %v5470_v2 }
  0xc0   :  { %4833 = vmatpush3.bf16.msra.mxu1 %v5716_v9  ;;  %4449 = vmatprep.mubr.msk.f32.mxu1 %vm5469_vm0, %v5470_v2 }
  0xc1   :  { %4834 = vmatprep.subr.bf16.mxu1 %v5468_v1 }
  0xc4   :  { %4836 = vmatpush3.bf16.msra.mxu1 %v5730_v14 }
  0xc5   :  { %4843 = vmatprep.subr.bf16.mxu1 %v5468_v1 }
 0x123   :  { %v5755_v19 = vpop.permute.xlu0 %360 }
 0x18b   :  { %v4418_v15 = vpop.f32.mrb[0].mxu0 }
 0x18c   :  { %v5753_v17 = vadd.f32 %v4418_v15, %v4147_v16  ;;  %v265_v18 = vpop.f32.mrb[1].mxu0 }
 0x18d   :  { %v5759_v23 = vadd.f32 %v4147_v16, %v265_v18 }
 0x192   :  { %v344_v20 = vpop.f32.mrb[0].mxu1 }
 0x193   :  { %v363_v21 = vadd.f32 %v5755_v19, %v344_v20  ;;  %v4429_v22 = vpop.f32.mrb[1].mxu1  ;;  %v348_v24 = vadd.f32 %v344_v20, %v5759_v23 }
 0x195   :  { %365 = vrot.lane.b32.xlu0 %v363_v21, %s5471_s10  ;;  %v4150_v25 = vmul.f32 -1.442695, %v348_v24 }
 0x197   :  { %5057 = vpow2.f32 %v4150_v25 }
 0x1a1   :  { %v5058_v26 = vpop.eup %5057 }
 0x1a2   :  { %v352_v27 = vadd.f32 1.0, %v5058_v26 }
 0x1a4   :  { %5059 = vrcp.f32 %v352_v27 }
 0x1ae   :  { %v5060_v28 = vpop.eup %5059 }
 0x1af   :  { %v375_v34 = vsub.f32 1.0, %v5060_v28  ;;  %v381_v36 = vmul.f32 0.0, %v5060_v28 }
 0x207   :  { %v366_v29 = vpop.permute.xlu0 %365 }
 0x208   :  { %v368_v30 = vmul.f32 %v5060_v28, %v366_v29 }
 0x20a   :  { %370 = vrot.lane.b32.xlu1 %v368_v30, %s5471_s10 }
 0x27c   :  { %v371_v31 = vpop.permute.xlu1 %370 }
 0x27d   :  { %v373_v32 = vadd.f32 %v371_v31, %v5759_v23 }
 0x27f   :  { %5061 = vtanh.f32 %v373_v32 }
 0x289   :  { %v5062_v33 = vpop.eup %5061 }
 0x28a   :  { %377 = vrot.lane.b32.xlu1 %v5062_v33, %s5472_s3 }
 0x2fc   :  { %v378_v35 = vpop.permute.xlu1 %377 }
 0x2fd   :  { %v380_v37 = vmul.f32 %v378_v35, %v375_v34 }
 0x2ff   :  { %v5765_v38 = vadd.f32 %v381_v36, %v380_v37 }
 0x301   :  { %384 = vrot.lane.b32.xlu0 %v5765_v38, %s5472_s3  ;;  %v487_v56 = vrot.slane %v5765_v38, 6 }
 0x373   :  { %v385_v39 = vpop.permute.xlu0 %384 }
 0x374   :  { %4439 = vmatmul.mubr.msk.f32.vlgmr.msra.gmra.mrb[2].mxu0 %vm274_vm2, %v385_v39 }
 0x375   :  { %4839 = vmatpush3.bf16.msra.mxu0 %v5716_v9  ;;  %4460 = vmatprep.mubr.msk.f32.mxu0 %vm5469_vm0, %v5470_v2 }
 0x376   :  { %4840 = vmatprep.subr.bf16.mxu0 %v5468_v1 }
 0x379   :  { %4842 = vmatpush3.bf16.msra.mxu0 %v5730_v14 }
 0x37a   :  { %4849 = vmatprep.subr.bf16.mxu0 %v5468_v1 }
 0x447   :  { %v454_v40 = vpop.f32.mrb[2].mxu0 }
 0x448   :  { %v468_v41 = vadd.f32 %v454_v40, %v5755_v19  ;;  %v4440_v42 = vpop.f32.mrb[3].mxu0  ;;  %v459_v44 = vrot.slane %v454_v40, 6 }
 0x44a   :  { %v470_v43 = vrot.slane %v468_v41, 6  ;;  %v461_v45 = vadd.f32 %v459_v44, %v5759_v23 }
 0x44c   :  { %471 = vrot.lane.b32.xlu1 %v470_v43, %s5471_s10  ;;  %v4153_v46 = vmul.f32 -1.442695, %v461_v45 }
 0x44e   :  { %5063 = vpow2.f32 %v4153_v46 }
 0x458   :  { %v5064_v47 = vpop.eup %5063 }
 0x459   :  { %v465_v48 = vadd.f32 1.0, %v5064_v47 }
 0x45b   :  { %5065 = vrcp.f32 %v465_v48 }
 0x465   :  { %v5066_v49 = vpop.eup %5065 }
 0x466   :  { %v481_v55 = vsub.f32 1.0, %v5066_v49  ;;  %v489_v59 = vmul.f32 %v5066_v49, %v487_v56 }
 0x4be   :  { %v472_v50 = vpop.permute.xlu1 %471 }
 0x4bf   :  { %v474_v51 = vmul.f32 %v5066_v49, %v472_v50 }
 0x4c1   :  { %476 = vrot.lane.b32.xlu0 %v474_v51, %s5471_s10 }
 0x533   :  { %v477_v52 = vpop.permute.xlu0 %476 }
 0x534   :  { %v479_v53 = vadd.f32 %v477_v52, %v5759_v23 }
 0x536   :  { %5067 = vtanh.f32 %v479_v53 }
 0x540   :  { %v5068_v54 = vpop.eup %5067 }
 0x541   :  { %483 = vrot.lane.b32.xlu1 %v5068_v54, %s5472_s3 }
 0x5b3   :  { %v484_v57 = vpop.permute.xlu1 %483 }
 0x5b4   :  { %v486_v58 = vmul.f32 %v484_v57, %v481_v55 }
 0x5b6   :  { %v490_v60 = vadd.f32 %v489_v59, %v486_v58 }
 0x5b8   :  { %v492_v61 = vrot.slane %v490_v60, 2  ;;  %v596_v21 = vrot.slane %v490_v60, 6  ;;  %v1140_v27 = vsel %vm1139_vm3, %v5765_v38, %v490_v60 }
 0x5ba   :  { %493 = vrot.lane.b32.xlu0 %v492_v61, %s5472_s3 }
 0x62c   :  { %v494_v62 = vpop.permute.xlu0 %493 }
 0x62d   :  { %4450 = vmatmul.mubr.msk.f32.vlgmr.msra.gmra.mrb[2].mxu1 %vm274_vm2, %v494_v62 }
 0x62e   :  { %4845 = vmatpush3.bf16.msra.mxu1 %v5716_v9  ;;  %4471 = vmatprep.mubr.msk.f32.mxu1 %vm5469_vm0, %v5470_v2 }
 0x62f   :  { %4846 = vmatprep.subr.bf16.mxu1 %v5468_v1 }
 0x632   :  { %4848 = vmatpush3.bf16.msra.mxu1 %v5730_v14 }
 0x633   :  { %4855 = vmatprep.subr.bf16.mxu1 %v5468_v1 }
 0x700   :  { %v563_v63 = vpop.f32.mrb[2].mxu1 }
 0x701   :  { %v577_v0 = vadd.f32 %v563_v63, %v5755_v19  ;;  %v4451_v3 = vpop.f32.mrb[3].mxu1  ;;  %v568_v5 = vrot.slane %v563_v63, 4 }
 0x703   :  { %v579_v4 = vrot.slane %v577_v0, 4  ;;  %v570_v6 = vadd.f32 %v568_v5, %v5759_v23 }
 0x705   :  { %580 = vrot.lane.b32.xlu1 %v579_v4, %s5471_s10  ;;  %v4155_v7 = vmul.f32 -1.442695, %v570_v6 }
 0x707   :  { %5069 = vpow2.f32 %v4155_v7 }
 0x711   :  { %v5070_v8 = vpop.eup %5069 }
 0x712   :  { %v574_v10 = vadd.f32 1.0, %v5070_v8 }
 0x714   :  { %5071 = vrcp.f32 %v574_v10 }
 0x71e   :  { %v5072_v11 = vpop.eup %5071 }
 0x71f   :  { %v590_v20 = vsub.f32 1.0, %v5072_v11  ;;  %v598_v24 = vmul.f32 %v5072_v11, %v596_v21 }
 0x777   :  { %v581_v12 = vpop.permute.xlu1 %580 }
 0x778   :  { %v583_v13 = vmul.f32 %v5072_v11, %v581_v12 }
 0x77a   :  { %585 = vrot.lane.b32.xlu0 %v583_v13, %s5471_s10 }
 0x7ec   :  { %v586_v15 = vpop.permute.xlu0 %585 }
 0x7ed   :  { %v588_v16 = vadd.f32 %v586_v15, %v5759_v23 }
 0x7ef   :  { %5073 = vtanh.f32 %v588_v16 }
 0x7f9   :  { %v5074_v18 = vpop.eup %5073 }
 0x7fa   :  { %592 = vrot.lane.b32.xlu1 %v5074_v18, %s5472_s3 }
 0x86c   :  { %v593_v22 = vpop.permute.xlu1 %592 }
 0x86d   :  { %v595_v25 = vmul.f32 %v593_v22, %v590_v20 }
 0x86f   :  { %v599_v26 = vadd.f32 %v598_v24, %v595_v25 }
 0x871   :  { %v601_v28 = vrot.slane %v599_v26, 4  ;;  %v1142_v29 = vsel %vm1141_vm4, %v1140_v27, %v599_v26  ;;  %v705_v47 = vrot.slane %v599_v26, 6 }
 0x873   :  { %602 = vrot.lane.b32.xlu0 %v601_v28, %s5472_s3 }
 0x8e5   :  { %v603_v30 = vpop.permute.xlu0 %602 }
 0x8e6   :  { %4461 = vmatmul.mubr.msk.f32.vlgmr.msra.gmra.mrb[4].mxu0 %vm274_vm2, %v603_v30 }
 0x8e7   :  { %4851 = vmatpush3.bf16.msra.mxu0 %v5716_v9  ;;  %4482 = vmatprep.mubr.msk.f32.mxu0 %vm5469_vm0, %v5470_v2 }
 0x8e8   :  { %4852 = vmatprep.subr.bf16.mxu0 %v5468_v1 }
 0x8eb   :  { %4854 = vmatpush3.bf16.msra.mxu0 %v5730_v14 }
 0x8ec   :  { %4861 = vmatprep.subr.bf16.mxu0 %v5468_v1 }
 0x9b9   :  { %v672_v31 = vpop.f32.mrb[4].mxu0 }
 0x9ba   :  { %v686_v32 = vadd.f32 %v672_v31, %v5755_v19  ;;  %v4462_v33 = vpop.f32.mrb[5].mxu0  ;;  %v677_v35 = vrot.slane %v672_v31, 2 }
 0x9bc   :  { %v688_v34 = vrot.slane %v686_v32, 2  ;;  %v679_v36 = vadd.f32 %v677_v35, %v5759_v23 }
 0x9be   :  { %689 = vrot.lane.b32.xlu1 %v688_v34, %s5471_s10  ;;  %v4157_v37 = vmul.f32 -1.442695, %v679_v36 }
 0x9c0   :  { %5075 = vpow2.f32 %v4157_v37 }
 0x9ca   :  { %v5076_v38 = vpop.eup %5075 }
 0x9cb   :  { %v683_v39 = vadd.f32 1.0, %v5076_v38 }
 0x9cd   :  { %5077 = vrcp.f32 %v683_v39 }
 0x9d7   :  { %v5078_v40 = vpop.eup %5077 }
 0x9d8   :  { %v699_v46 = vsub.f32 1.0, %v5078_v40  ;;  %v707_v49 = vmul.f32 %v5078_v40, %v705_v47 }
 0xa30   :  { %v690_v41 = vpop.permute.xlu1 %689 }
 0xa31   :  { %v692_v42 = vmul.f32 %v5078_v40, %v690_v41 }
 0xa33   :  { %694 = vrot.lane.b32.xlu0 %v692_v42, %s5471_s10 }
 0xaa5   :  { %v695_v43 = vpop.permute.xlu0 %694 }
 0xaa6   :  { %v697_v44 = vadd.f32 %v695_v43, %v5759_v23 }
 0xaa8   :  { %5079 = vtanh.f32 %v697_v44 }
 0xab2   :  { %v5080_v45 = vpop.eup %5079 }
 0xab3   :  { %701 = vrot.lane.b32.xlu1 %v5080_v45, %s5472_s3 }
 0xb25   :  { %v702_v48 = vpop.permute.xlu1 %701 }
 0xb26   :  { %v704_v50 = vmul.f32 %v702_v48, %v699_v46 }
 0xb28   :  { %v708_v51 = vadd.f32 %v707_v49, %v704_v50 }
 0xb2a   :  { %v710_v52 = vrot.slane %v708_v51, 6  ;;  %v5815_v53 = vsel %vm1143_vm5, %v1142_v29, %v708_v51 }
 0xb2c   :  { %711 = vrot.lane.b32.xlu0 %v710_v52, %s5472_s3 }
 0xb9e   :  { %v712_v54 = vpop.permute.xlu0 %711 }
 0xb9f   :  { %4472 = vmatmul.mubr.msk.f32.vlgmr.msra.gmra.mrb[4].mxu1 %vm274_vm2, %v712_v54 }
 0xba0   :  { %4857 = vmatpush3.bf16.msra.mxu1 %v5716_v9  ;;  %4493 = vmatprep.mubr.msk.f32.mxu1 %vm5469_vm0, %v5470_v2 }
 0xba1   :  { %4858 = vmatprep.subr.bf16.mxu1 %v5468_v1 }
 0xba4   :  { %4860 = vmatpush3.bf16.msra.mxu1 %v5730_v14 }
 0xc72   :  { %v781_v23 = vpop.f32.mrb[4].mxu1 }
 0xc73   :  { %v792_v55 = vadd.f32 %v781_v23, %v5755_v19  ;;  %v4473_v56 = vpop.f32.mrb[5].mxu1  ;;  %v785_v57 = vadd.f32 %v781_v23, %v5753_v17 }
 0xc75   :  { %794 = vrot.lane.b32.xlu1 %v792_v55, %s5471_s10  ;;  %v4159_v58 = vmul.f32 -1.442695, %v785_v57 }
 0xc77   :  { %5081 = vpow2.f32 %v4159_v58 }
 0xc81   :  { %v5082_v59 = vpop.eup %5081 }
 0xc82   :  { %v789_v60 = vadd.f32 1.0, %v5082_v59 }
 0xc84   :  { %5083 = vrcp.f32 %v789_v60 }
 0xc8e   :  { %v5084_v61 = vpop.eup %5083 }
 0xc8f   :  { %v804_v5 = vsub.f32 1.0, %v5084_v61  ;;  %v811_v7 = vmul.f32 %v5084_v61, %v710_v52 }
 0xce7   :  { %v795_v62 = vpop.permute.xlu1 %794 }
 0xce8   :  { %v797_v63 = vmul.f32 %v5084_v61, %v795_v62 }
 0xcea   :  { %799 = vrot.lane.b32.xlu0 %v797_v63, %s5471_s10 }
 0xd5c   :  { %v800_v0 = vpop.permute.xlu0 %799 }
 0xd5d   :  { %v802_v3 = vadd.f32 %v800_v0, %v5753_v17 }
 0xd5f   :  { %5085 = vtanh.f32 %v802_v3 }
 0xd69   :  { %v5086_v4 = vpop.eup %5085 }
 0xd6a   :  { %806 = vrot.lane.b32.xlu1 %v5086_v4, %s5472_s3 }
 0xddc   :  { %v807_v6 = vpop.permute.xlu1 %806 }
 0xddd   :  { %v809_v8 = vmul.f32 %v807_v6, %v804_v5 }
 0xddf   :  { %v5830_v10 = vadd.f32 %v811_v7, %v809_v8 }
 0xde1   :  { %814 = vrot.lane.b32.xlu0 %v5830_v10, %s5472_s3  ;;  %v917_v30 = vrot.slane %v5830_v10, 6 }
 0xe53   :  { %v815_v11 = vpop.permute.xlu0 %814 }
 0xe54   :  { %4483 = vmatmul.mubr.msk.f32.vlgmr.msra.gmra.mrb[6].mxu0 %vm274_vm2, %v815_v11 }
 0xe55   :  { %4863 = vmatpush3.bf16.msra.mxu0 %v5716_v9  ;;  %4504 = vmatprep.mubr.msk.f32.mxu0 %vm5469_vm0, %v5470_v2 }
 0xe56   :  { %4864 = vmatprep.subr.bf16.mxu0 %v5468_v1 }
 0xe59   :  { %4866 = vmatpush3.bf16.msra.mxu0 %v5730_v14 }
 0xe5a   :  { %4875 = vmatprep.subr.bf16.mxu0 %v5468_v1 }
 0xf27   :  { %v884_v12 = vpop.f32.mrb[6].mxu0 }
 0xf28   :  { %v898_v13 = vadd.f32 %v884_v12, %v5755_v19  ;;  %v4484_v15 = vpop.f32.mrb[7].mxu0  ;;  %v889_v18 = vrot.slane %v884_v12, 6 }
 0xf2a   :  { %v900_v16 = vrot.slane %v898_v13, 6  ;;  %v891_v20 = vadd.f32 %v889_v18, %v5753_v17  ;;  %v1153_v18 = vld [vmem:[%s6385_s6 + $0x8] sm:$0xff] }
 0xf2c   :  { %901 = vrot.lane.b32.xlu1 %v900_v16, %s5471_s10  ;;  %v4161_v9 = vmul.f32 -1.442695, %v891_v20  ;;  %v1152_v16 = vld [vmem:[%s6385_s6] sm:$0xff]  ;;  %v1154_v20 = vld [vmem:[%s6385_s6 + $0x10] sm:$0xff] }
 0xf2e   :  { %5087 = vpow2.f32 %v4161_v9  ;;  %v1148_v9 = vld [vmem:[%s6384_s5] sm:$0xff] }
 0xf38   :  { %v5088_v21 = vpop.eup %5087 }
 0xf39   :  { %v895_v22 = vadd.f32 1.0, %v5088_v21  ;;  %v1149_v21 = vld [vmem:[%s6384_s5 + $0x8] sm:$0xff] }
 0xf3b   :  { %5089 = vrcp.f32 %v895_v22  ;;  %v4867_v22 = vpack.c.bf16 %v1149_v21, %v1148_v9 }
 0xf3d   :  { %4868 = vmatprep.subr.bf16.mxu1 %v4867_v22 }
 0xf45   :  { %v5090_v24 = vpop.eup %5089 }
 0xf46   :  { %v911_v29 = vsub.f32 1.0, %v5090_v24  ;;  %v919_v33 = vmul.f32 %v5090_v24, %v917_v30 }
 0xf9e   :  { %v902_v25 = vpop.permute.xlu1 %901 }
 0xf9f   :  { %v904_v14 = vmul.f32 %v5090_v24, %v902_v25  ;;  %v1150_v24 = vld [vmem:[%s6384_s5 + $0x10] sm:$0xff]  ;;  %v1151_v25 = vld [vmem:[%s6384_s5 + $0x18] sm:$0xff] }
 0xfa1   :  { %906 = vrot.lane.b32.xlu0 %v904_v14, %s5471_s10 }
0x1013   :  { %v907_v26 = vpop.permute.xlu0 %906 }
0x1014   :  { %v909_v27 = vadd.f32 %v907_v26, %v5753_v17  ;;  %v4871_v26 = vpack.c.bf16 %v1151_v25, %v1150_v24 }
0x1016   :  { %5091 = vtanh.f32 %v909_v27 }
0x1020   :  { %v5092_v28 = vpop.eup %5091 }
0x1021   :  { %913 = vrot.lane.b32.xlu1 %v5092_v28, %s5472_s3  ;;  %v4170_v28 = vld [vmem:[#allocation8] ss:$0 sm:$0xff] }
0x1093   :  { %v914_v31 = vpop.permute.xlu1 %913 }
0x1094   :  { %v916_v32 = vmul.f32 %v914_v31, %v911_v29 }
0x1096   :  { %v920_v34 = vadd.f32 %v919_v33, %v916_v32 }
0x1098   :  { %v922_v35 = vrot.slane %v920_v34, 2  ;;  %v1026_v54 = vrot.slane %v920_v34, 6  ;;  %v1145_v58 = vsel %vm1139_vm3, %v5830_v10, %v920_v34 }
0x109a   :  { %923 = vrot.lane.b32.xlu0 %v922_v35, %s5472_s3 }
0x110c   :  { %v924_v36 = vpop.permute.xlu0 %923 }
0x110d   :  { %4494 = vmatmul.mubr.msk.f32.vlgmr.msra.gmra.mrb[6].mxu1 %vm274_vm2, %v924_v36 }
0x110e   :  { %4870 = vmatpush3.bf16.msra.mxu1 %v4867_v22 }
0x110f   :  { %4872 = vmatprep.subr.bf16.mxu1 %v4871_v26 }
0x1112   :  { %4874 = vmatpush3.bf16.msra.mxu1 %v4871_v26 }
0x1113   :  { %4881 = vmatprep.subr.bf16.mxu1 %v5468_v1 }
0x11e0   :  { %v993_v37 = vpop.f32.mrb[6].mxu1 }
0x11e1   :  { %v1007_v38 = vadd.f32 %v993_v37, %v5755_v19  ;;  %v4495_v39 = vpop.f32.mrb[7].mxu1  ;;  %v998_v41 = vrot.slane %v993_v37, 4 }
0x11e3   :  { %v1009_v40 = vrot.slane %v1007_v38, 4  ;;  %v1000_v42 = vadd.f32 %v998_v41, %v5753_v17  ;;  %v4166_v41 = vld [vmem:[#allocation7] ss:$0 sm:$0xff] }
0x11e5   :  { %1010 = vrot.lane.b32.xlu1 %v1009_v40, %s5471_s10  ;;  %v4163_v43 = vmul.f32 -1.442695, %v1000_v42 }
0x11e7   :  { %5093 = vpow2.f32 %v4163_v43 }
0x11f1   :  { %v5094_v44 = vpop.eup %5093 }
0x11f2   :  { %v1004_v45 = vadd.f32 1.0, %v5094_v44 }
0x11f4   :  { %5095 = vrcp.f32 %v1004_v45 }
0x11fe   :  { %v5096_v46 = vpop.eup %5095 }
0x11ff   :  { %v1020_v52 = vsub.f32 1.0, %v5096_v46  ;;  %v1028_v55 = vmul.f32 %v5096_v46, %v1026_v54 }
0x1257   :  { %v1011_v47 = vpop.permute.xlu1 %1010 }
0x1258   :  { %v1013_v48 = vmul.f32 %v5096_v46, %v1011_v47 }
0x125a   :  { %1015 = vrot.lane.b32.xlu0 %v1013_v48, %s5471_s10 }
0x12cc   :  { %v1016_v49 = vpop.permute.xlu0 %1015 }
0x12cd   :  { %v1018_v50 = vadd.f32 %v1016_v49, %v5753_v17 }
0x12cf   :  { %5097 = vtanh.f32 %v1018_v50 }
0x12d9   :  { %v5098_v51 = vpop.eup %5097 }
0x12da   :  { %1022 = vrot.lane.b32.xlu1 %v5098_v51, %s5472_s3 }
0x134c   :  { %v1023_v23 = vpop.permute.xlu1 %1022 }
0x134d   :  { %v1025_v56 = vmul.f32 %v1023_v23, %v1020_v52 }
0x134f   :  { %v5856_v57 = vadd.f32 %v1028_v55, %v1025_v56 }
0x1351   :  { %v1031_v59 = vrot.slane %v5856_v57, 4  ;;  %v5863_v60 = vsel %vm1141_vm4, %v1145_v58, %v5856_v57  ;;  %v1135_v30 = vrot.slane %v5856_v57, 6 }
0x1353   :  { %1032 = vrot.lane.b32.xlu0 %v1031_v59, %s5472_s3 }
0x13c5   :  { %v1033_v61 = vpop.permute.xlu0 %1032 }
0x13c6   :  { %4505 = vmatmul.mubr.msk.f32.vlgmr.msra.gmra.mrb[8].mxu0 %vm274_vm2, %v1033_v61 }
0x13c7   :  { %4526 = vmatprep.mubr.msk.f32.mxu0 %vm5469_vm0, %v5470_v2 }
0x1499   :  { %v1102_v62 = vpop.f32.mrb[8].mxu0 }
0x149a   :  { %v1116_v63 = vadd.f32 %v1102_v62, %v5755_v19  ;;  %v4506_v0 = vpop.f32.mrb[9].mxu0  ;;  %v1107_v4 = vrot.slane %v1102_v62, 2 }
0x149c   :  { %v1118_v3 = vrot.slane %v1116_v63, 2  ;;  %v1109_v5 = vadd.f32 %v1107_v4, %v5753_v17 }
0x149e   :  { %1119 = vrot.lane.b32.xlu1 %v1118_v3, %s5471_s10  ;;  %v4165_v6 = vmul.f32 -1.442695, %v1109_v5 }
0x14a0   :  { %5099 = vpow2.f32 %v4165_v6 }
0x14aa   :  { %v5100_v7 = vpop.eup %5099 }
0x14ab   :  { %v1113_v8 = vadd.f32 1.0, %v5100_v7 }
0x14ad   :  { %5101 = vrcp.f32 %v1113_v8 }
0x14b7   :  { %v5102_v10 = vpop.eup %5101 }
0x14b8   :  { %v1129_v29 = vsub.f32 1.0, %v5102_v10  ;;  %v1137_v32 = vmul.f32 %v5102_v10, %v1135_v30 }
0x1510   :  { %v1120_v11 = vpop.permute.xlu1 %1119 }
0x1511   :  { %v1122_v12 = vmul.f32 %v5102_v10, %v1120_v11 }
0x1513   :  { %1124 = vrot.lane.b32.xlu0 %v1122_v12, %s5471_s10 }
0x1517   :  { %1166 = vrot.lane.b32.xlu0 %v5815_v53, %s5472_s3  ;;  %v5886_v53 = vpack.c.bf16 %v1153_v18, %v1152_v16 }
0x1519   :  { %4877 = vmatpush3.bf16.msra.mxu0 %v5886_v53 }
0x151a   :  { %4878 = vmatprep.subr.bf16.mxu0 %v5468_v1 }
0x151b   :  { %1331 = vrot.lane.b32.xlu0 %v4170_v28, %s5471_s10 }
0x1585   :  { %v1125_v19 = vpop.permute.xlu0 %1124 }
0x1586   :  { %v1127_v13 = vadd.f32 %v1125_v19, %v5753_v17  ;;  %v1155_v17 = vld [vmem:[%s6385_s6 + $0x18] sm:$0xff] }
0x1587   :  { %v5904_v14 = vpack.c.bf16 %v1155_v17, %v1154_v20 }
0x1588   :  { %5103 = vtanh.f32 %v1127_v13 }
0x1589   :  { %v1167_v15 = vpop.permute.xlu0 %1166  ;;  %4880 = vmatpush3.bf16.msra.mxu0 %v5904_v14 }
0x158a   :  { %4515 = vmatprep.mubr.msk.f32.mxu1 %vm274_vm2, %v1167_v15  ;;  %4887 = vmatprep.subr.bf16.mxu0 %v5468_v1 }
0x158c   :  { %4527 = vmatmul.mubr.f32.vlgmr.msra.gmra.mrb[10].mxu0 %v5470_v2 }
0x158d   :  { %4889 = vmatpush3.bf16.msra.mxu0 %v5886_v53  ;;  %4548 = vmatprep.mubr.msk.f32.mxu0 %vm5469_vm0, %v5470_v2  ;;  %v5923_v38 = vpop.permute.xlu0 %1331 }
0x158e   :  { %4890 = vmatprep.subr.bf16.mxu0 %v5468_v1 }
0x1591   :  { %4892 = vmatpush3.bf16.msra.mxu0 %v5904_v14 }
0x1592   :  { %v5104_v27 = vpop.eup %5103  ;;  %4899 = vmatprep.subr.bf16.mxu0 %v5468_v1 }
0x1593   :  { %1131 = vrot.lane.b32.xlu1 %v5104_v27, %s5472_s3 }
0x1605   :  { %v1132_v31 = vpop.permute.xlu1 %1131 }
0x1606   :  { %v1134_v33 = vmul.f32 %v1132_v31, %v1129_v29 }
0x1608   :  { %v1138_v34 = vadd.f32 %v1137_v32, %v1134_v33 }
0x160a   :  { %v1147_v35 = vsel %vm1143_vm5, %v5863_v60, %v1138_v34 }
0x160b   :  { %1168 = vrot.lane.b32.xlu1 %v1147_v35, %s5472_s3 }
0x165f   :  { %v1315_v36 = vpop.f32.mrb[10].mxu0 }
0x1660   :  { %v4528_v37 = vpop.f32.mrb[11].mxu0  ;;  %v1334_v39 = vadd.f32 %v5923_v38, %v1315_v36 }
0x1662   :  { %1336 = vrot.lane.b32.xlu1 %v1334_v39, %s5471_s10 }
0x167d   :  { %v1169_v40 = vpop.permute.xlu1 %1168 }
0x167e   :  { %4516 = vmatmul.mubr.msk.f32.vlgmr.msra.gmra.mrb[8].mxu1 %vm274_vm2, %v1169_v40 }
0x167f   :  { %4883 = vmatpush3.bf16.msra.mxu1 %v5886_v53  ;;  %4537 = vmatprep.mubr.msk.f32.mxu1 %vm5469_vm0, %v5470_v2 }
0x1680   :  { %4884 = vmatprep.subr.bf16.mxu1 %v5468_v1 }
0x1683   :  { %4886 = vmatpush3.bf16.msra.mxu1 %v5904_v14 }
0x1684   :  { %4893 = vmatprep.subr.bf16.mxu1 %v5468_v1 }
0x16d4   :  { %v1337_v50 = vpop.permute.xlu1 %1336 }
0x1751   :  { %v4517_v42 = vpop.f32.mrb[8].mxu1 }
0x1752   :  { %v5934_v43 = vadd.f32 %v4517_v42, %v4166_v41  ;;  %v1240_v44 = vpop.f32.mrb[9].mxu1 }
0x1753   :  { %v5936_v45 = vadd.f32 %v4166_v41, %v1240_v44 }
0x1755   :  { %v1319_v46 = vadd.f32 %v1315_v36, %v5936_v45 }
0x1757   :  { %v4169_v47 = vmul.f32 -1.442695, %v1319_v46 }
0x1759   :  { %5105 = vpow2.f32 %v4169_v47 }
0x1763   :  { %v5106_v48 = vpop.eup %5105 }
0x1764   :  { %v1323_v49 = vadd.f32 1.0, %v5106_v48 }
0x1766   :  { %5107 = vrcp.f32 %v1323_v49 }
0x1770   :  { %v5108_v51 = vpop.eup %5107 }
0x1771   :  { %v1339_v52 = vmul.f32 %v5108_v51, %v1337_v50  ;;  %v1346_v56 = vsub.f32 1.0, %v5108_v51  ;;  %v1352_v58 = vmul.f32 0.0, %v5108_v51 }
0x1773   :  { %1341 = vrot.lane.b32.xlu0 %v1339_v52, %s5471_s10 }
0x17e5   :  { %v1342_v54 = vpop.permute.xlu0 %1341 }
0x17e6   :  { %v1344_v23 = vadd.f32 %v1342_v54, %v5936_v45 }
0x17e8   :  { %5109 = vtanh.f32 %v1344_v23 }
0x17f2   :  { %v5110_v55 = vpop.eup %5109 }
0x17f3   :  { %1348 = vrot.lane.b32.xlu1 %v5110_v55, %s5472_s3 }
0x1865   :  { %v1349_v57 = vpop.permute.xlu1 %1348 }
0x1866   :  { %v1351_v59 = vmul.f32 %v1349_v57, %v1346_v56 }
0x1868   :  { %v5942_v60 = vadd.f32 %v1352_v58, %v1351_v59 }
0x186a   :  { %1355 = vrot.lane.b32.xlu0 %v5942_v60, %s5472_s3  ;;  %v1458_v18 = vrot.slane %v5942_v60, 6 }
0x18dc   :  { %v1356_v61 = vpop.permute.xlu0 %1355 }
0x18dd   :  { %4538 = vmatmul.mubr.msk.f32.vlgmr.msra.gmra.mrb[10].mxu1 %vm274_vm2, %v1356_v61 }
0x18de   :  { %4895 = vmatpush3.bf16.msra.mxu1 %v5886_v53  ;;  %4559 = vmatprep.mubr.msk.f32.mxu1 %vm5469_vm0, %v5470_v2 }
0x18df   :  { %4896 = vmatprep.subr.bf16.mxu1 %v5468_v1 }
0x18e2   :  { %4898 = vmatpush3.bf16.msra.mxu1 %v5904_v14 }
0x18e3   :  { %4905 = vmatprep.subr.bf16.mxu1 %v5468_v1 }
0x19b0   :  { %v1425_v62 = vpop.f32.mrb[10].mxu1 }
0x19b1   :  { %v1439_v63 = vadd.f32 %v1425_v62, %v5923_v38  ;;  %v4539_v0 = vpop.f32.mrb[11].mxu1  ;;  %v1430_v4 = vrot.slane %v1425_v62, 6 }
0x19b3   :  { %v1441_v3 = vrot.slane %v1439_v63, 6  ;;  %v1432_v5 = vadd.f32 %v1430_v4, %v5936_v45 }
0x19b5   :  { %1442 = vrot.lane.b32.xlu1 %v1441_v3, %s5471_s10  ;;  %v4172_v6 = vmul.f32 -1.442695, %v1432_v5 }
0x19b7   :  { %5111 = vpow2.f32 %v4172_v6 }
0x19c1   :  { %v5112_v7 = vpop.eup %5111 }
0x19c2   :  { %v1436_v8 = vadd.f32 1.0, %v5112_v7 }
0x19c4   :  { %5113 = vrcp.f32 %v1436_v8 }
0x19ce   :  { %v5114_v10 = vpop.eup %5113 }
0x19cf   :  { %v1452_v16 = vsub.f32 1.0, %v5114_v10  ;;  %v1460_v9 = vmul.f32 %v5114_v10, %v1458_v18 }
0x1a27   :  { %v1443_v11 = vpop.permute.xlu1 %1442 }
0x1a28   :  { %v1445_v12 = vmul.f32 %v5114_v10, %v1443_v11 }
0x1a2a   :  { %1447 = vrot.lane.b32.xlu0 %v1445_v12, %s5471_s10 }
0x1a9c   :  { %v1448_v19 = vpop.permute.xlu0 %1447 }
0x1a9d   :  { %v1450_v13 = vadd.f32 %v1448_v19, %v5936_v45 }
0x1a9f   :  { %5115 = vtanh.f32 %v1450_v13 }
0x1aa9   :  { %v5116_v15 = vpop.eup %5115 }
0x1aaa   :  { %1454 = vrot.lane.b32.xlu1 %v5116_v15, %s5472_s3 }
0x1b1c   :  { %v1455_v20 = vpop.permute.xlu1 %1454 }
0x1b1d   :  { %v1457_v17 = vmul.f32 %v1455_v20, %v1452_v16 }
0x1b1f   :  { %v1461_v21 = vadd.f32 %v1460_v9, %v1457_v17 }
0x1b21   :  { %v1463_v22 = vrot.slane %v1461_v21, 2  ;;  %v1567_v42 = vrot.slane %v1461_v21, 6  ;;  %v2110_v49 = vsel %vm1139_vm3, %v5942_v60, %v1461_v21 }
0x1b23   :  { %1464 = vrot.lane.b32.xlu0 %v1463_v22, %s5472_s3 }
0x1b95   :  { %v1465_v24 = vpop.permute.xlu0 %1464 }
0x1b96   :  { %4549 = vmatmul.mubr.msk.f32.vlgmr.msra.gmra.mrb[12].mxu0 %vm274_vm2, %v1465_v24 }
0x1b97   :  { %4901 = vmatpush3.bf16.msra.mxu0 %v5886_v53  ;;  %4570 = vmatprep.mubr.msk.f32.mxu0 %vm5469_vm0, %v5470_v2 }
0x1b98   :  { %4902 = vmatprep.subr.bf16.mxu0 %v5468_v1 }
0x1b9b   :  { %4904 = vmatpush3.bf16.msra.mxu0 %v5904_v14 }
0x1b9c   :  { %4911 = vmatprep.subr.bf16.mxu0 %v5468_v1 }
0x1c69   :  { %v1534_v25 = vpop.f32.mrb[12].mxu0 }
0x1c6a   :  { %v1548_v26 = vadd.f32 %v1534_v25, %v5923_v38  ;;  %v4550_v27 = vpop.f32.mrb[13].mxu0  ;;  %v1539_v29 = vrot.slane %v1534_v25, 4 }
0x1c6c   :  { %v1550_v28 = vrot.slane %v1548_v26, 4  ;;  %v1541_v30 = vadd.f32 %v1539_v29, %v5936_v45 }
0x1c6e   :  { %1551 = vrot.lane.b32.xlu1 %v1550_v28, %s5471_s10  ;;  %v4174_v31 = vmul.f32 -1.442695, %v1541_v30 }
0x1c70   :  { %5117 = vpow2.f32 %v4174_v31 }
0x1c7a   :  { %v5118_v32 = vpop.eup %5117 }
0x1c7b   :  { %v1545_v33 = vadd.f32 1.0, %v5118_v32 }
0x1c7d   :  { %5119 = vrcp.f32 %v1545_v33 }
0x1c87   :  { %v5120_v34 = vpop.eup %5119 }
0x1c88   :  { %v1561_v41 = vsub.f32 1.0, %v5120_v34  ;;  %v1569_v46 = vmul.f32 %v5120_v34, %v1567_v42 }
0x1ce0   :  { %v1552_v35 = vpop.permute.xlu1 %1551 }
0x1ce1   :  { %v1554_v36 = vmul.f32 %v5120_v34, %v1552_v35 }
0x1ce3   :  { %1556 = vrot.lane.b32.xlu0 %v1554_v36, %s5471_s10 }
0x1d55   :  { %v1557_v37 = vpop.permute.xlu0 %1556 }
0x1d56   :  { %v1559_v39 = vadd.f32 %v1557_v37, %v5936_v45 }
0x1d58   :  { %5121 = vtanh.f32 %v1559_v39 }
0x1d62   :  { %v5122_v40 = vpop.eup %5121 }
0x1d63   :  { %1563 = vrot.lane.b32.xlu1 %v5122_v40, %s5472_s3 }
0x1dd5   :  { %v1564_v44 = vpop.permute.xlu1 %1563 }
0x1dd6   :  { %v1566_v47 = vmul.f32 %v1564_v44, %v1561_v41 }
0x1dd8   :  { %v1570_v48 = vadd.f32 %v1569_v46, %v1566_v47 }
0x1dda   :  { %v1572_v50 = vrot.slane %v1570_v48, 4  ;;  %v2111_v51 = vsel %vm1141_vm4, %v2110_v49, %v1570_v48  ;;  %v1676_v7 = vrot.slane %v1570_v48, 6 }
0x1ddc   :  { %1573 = vrot.lane.b32.xlu0 %v1572_v50, %s5472_s3 }
0x1e4e   :  { %v1574_v52 = vpop.permute.xlu0 %1573 }
0x1e4f   :  { %4560 = vmatmul.mubr.msk.f32.vlgmr.msra.gmra.mrb[12].mxu1 %vm274_vm2, %v1574_v52 }
0x1e50   :  { %4907 = vmatpush3.bf16.msra.mxu1 %v5886_v53  ;;  %4581 = vmatprep.mubr.msk.f32.mxu1 %vm5469_vm0, %v5470_v2 }
0x1e51   :  { %4908 = vmatprep.subr.bf16.mxu1 %v5468_v1 }
0x1e54   :  { %4910 = vmatpush3.bf16.msra.mxu1 %v5904_v14 }
0x1e55   :  { %4917 = vmatprep.subr.bf16.mxu1 %v5468_v1 }
0x1f22   :  { %v1643_v54 = vpop.f32.mrb[12].mxu1 }
0x1f23   :  { %v1657_v23 = vadd.f32 %v1643_v54, %v5923_v38  ;;  %v4561_v55 = vpop.f32.mrb[13].mxu1  ;;  %v1648_v57 = vrot.slane %v1643_v54, 2 }
0x1f25   :  { %v1659_v56 = vrot.slane %v1657_v23, 2  ;;  %v1650_v58 = vadd.f32 %v1648_v57, %v5936_v45 }
0x1f27   :  { %1660 = vrot.lane.b32.xlu1 %v1659_v56, %s5471_s10  ;;  %v4176_v59 = vmul.f32 -1.442695, %v1650_v58 }
0x1f29   :  { %5123 = vpow2.f32 %v4176_v59 }
0x1f33   :  { %v5124_v60 = vpop.eup %5123 }
0x1f34   :  { %v1654_v61 = vadd.f32 1.0, %v5124_v60 }
0x1f36   :  { %5125 = vrcp.f32 %v1654_v61 }
0x1f40   :  { %v5126_v62 = vpop.eup %5125 }
0x1f41   :  { %v1670_v6 = vsub.f32 1.0, %v5126_v62  ;;  %v1678_v10 = vmul.f32 %v5126_v62, %v1676_v7 }
0x1f99   :  { %v1661_v63 = vpop.permute.xlu1 %1660 }
0x1f9a   :  { %v1663_v0 = vmul.f32 %v5126_v62, %v1661_v63 }
0x1f9c   :  { %1665 = vrot.lane.b32.xlu0 %v1663_v0, %s5471_s10 }
0x200e   :  { %v1666_v3 = vpop.permute.xlu0 %1665 }
0x200f   :  { %v1668_v4 = vadd.f32 %v1666_v3, %v5936_v45 }
0x2011   :  { %5127 = vtanh.f32 %v1668_v4 }
0x201b   :  { %v5128_v5 = vpop.eup %5127 }
0x201c   :  { %1672 = vrot.lane.b32.xlu1 %v5128_v5, %s5472_s3 }
0x208e   :  { %v1673_v8 = vpop.permute.xlu1 %1672 }
0x208f   :  { %v1675_v11 = vmul.f32 %v1673_v8, %v1670_v6 }
0x2091   :  { %v1679_v12 = vadd.f32 %v1678_v10, %v1675_v11 }
0x2093   :  { %v1681_v19 = vrot.slane %v1679_v12, 6  ;;  %v5992_v13 = vsel %vm1143_vm5, %v2111_v51, %v1679_v12 }
0x2095   :  { %1682 = vrot.lane.b32.xlu0 %v1681_v19, %s5472_s3 }
0x2107   :  { %v1683_v15 = vpop.permute.xlu0 %1682 }
0x2108   :  { %4571 = vmatmul.mubr.msk.f32.vlgmr.msra.gmra.mrb[14].mxu0 %vm274_vm2, %v1683_v15 }
0x2109   :  { %4913 = vmatpush3.bf16.msra.mxu0 %v5886_v53  ;;  %4592 = vmatprep.mubr.msk.f32.mxu0 %vm5469_vm0, %v5470_v2 }
0x210a   :  { %4914 = vmatprep.subr.bf16.mxu0 %v5468_v1 }
0x210d   :  { %4916 = vmatpush3.bf16.msra.mxu0 %v5904_v14 }
0x21db   :  { %v1752_v45 = vpop.f32.mrb[14].mxu0 }
0x21dc   :  { %v1763_v16 = vadd.f32 %v1752_v45, %v5923_v38  ;;  %v4572_v18 = vpop.f32.mrb[15].mxu0  ;;  %v1756_v20 = vadd.f32 %v1752_v45, %v5934_v43 }
0x21de   :  { %1765 = vrot.lane.b32.xlu1 %v1763_v16, %s5471_s10  ;;  %v4178_v17 = vmul.f32 -1.442695, %v1756_v20 }
0x21e0   :  { %5129 = vpow2.f32 %v4178_v17 }
0x21ea   :  { %v5130_v9 = vpop.eup %5129 }
0x21eb   :  { %v1760_v21 = vadd.f32 1.0, %v5130_v9 }
0x21ed   :  { %5131 = vrcp.f32 %v1760_v21 }
0x21f7   :  { %v5132_v22 = vpop.eup %5131 }
0x21f8   :  { %v1775_v29 = vsub.f32 1.0, %v5132_v22  ;;  %v1782_v31 = vmul.f32 %v5132_v22, %v1681_v19 }
0x2250   :  { %v1766_v24 = vpop.permute.xlu1 %1765 }
0x2251   :  { %v1768_v25 = vmul.f32 %v5132_v22, %v1766_v24 }
0x2253   :  { %1770 = vrot.lane.b32.xlu0 %v1768_v25, %s5471_s10 }
0x22c5   :  { %v1771_v26 = vpop.permute.xlu0 %1770 }
0x22c6   :  { %v1773_v27 = vadd.f32 %v1771_v26, %v5934_v43 }
0x22c8   :  { %5133 = vtanh.f32 %v1773_v27 }
0x22d2   :  { %v5134_v28 = vpop.eup %5133 }
0x22d3   :  { %1777 = vrot.lane.b32.xlu1 %v5134_v28, %s5472_s3 }
0x2345   :  { %v1778_v30 = vpop.permute.xlu1 %1777 }
0x2346   :  { %v1780_v32 = vmul.f32 %v1778_v30, %v1775_v29 }
0x2348   :  { %v6007_v33 = vadd.f32 %v1782_v31, %v1780_v32 }
0x234a   :  { %1785 = vrot.lane.b32.xlu0 %v6007_v33, %s5472_s3  ;;  %v1888_v52 = vrot.slane %v6007_v33, 6 }
0x23bc   :  { %v1786_v34 = vpop.permute.xlu0 %1785 }
0x23bd   :  { %4582 = vmatmul.mubr.msk.f32.vlgmr.msra.gmra.mrb[14].mxu1 %vm274_vm2, %v1786_v34 }
0x23be   :  { %4919 = vmatpush3.bf16.msra.mxu1 %v5886_v53  ;;  %4603 = vmatprep.mubr.msk.f32.mxu1 %vm5469_vm0, %v5470_v2 }
0x23bf   :  { %4920 = vmatprep.subr.bf16.mxu1 %v5468_v1 }
0x23c2   :  { %4922 = vmatpush3.bf16.msra.mxu1 %v5904_v14 }
0x23c3   :  { %4931 = vmatprep.subr.bf16.mxu1 %v5468_v1 }
0x2490   :  { %v1855_v35 = vpop.f32.mrb[14].mxu1 }
0x2491   :  { %v1869_v36 = vadd.f32 %v1855_v35, %v5923_v38  ;;  %v4583_v37 = vpop.f32.mrb[15].mxu1  ;;  %v1860_v40 = vrot.slane %v1855_v35, 6 }
0x2493   :  { %v1871_v39 = vrot.slane %v1869_v36, 6  ;;  %v1862_v41 = vadd.f32 %v1860_v40, %v5934_v43  ;;  %v2121_v40 = vld [vmem:[#allocation11 + $0x8] sm:$0xff] }
0x2495   :  { %1872 = vrot.lane.b32.xlu1 %v1871_v39, %s5471_s10  ;;  %v4180_v53 = vmul.f32 -1.442695, %v1862_v41  ;;  %v2120_v39 = vld [vmem:[#allocation11] sm:$0xff]  ;;  %v2122_v41 = vld [vmem:[#allocation11 + $0x10] sm:$0xff] }
0x2497   :  { %5135 = vpow2.f32 %v4180_v53  ;;  %v6054_v53 = vpack.c.bf16 %v2121_v40, %v2120_v39 }
0x24a1   :  { %v5136_v42 = vpop.eup %5135 }
0x24a2   :  { %v1866_v44 = vadd.f32 1.0, %v5136_v42  ;;  %v2123_v42 = vld [vmem:[#allocation11 + $0x18] sm:$0xff] }
0x24a4   :  { %5137 = vrcp.f32 %v1866_v44  ;;  %v2116_v44 = vld [vmem:[#allocation10] sm:$0xff] }
0x24ae   :  { %v5138_v46 = vpop.eup %5137 }
0x24af   :  { %v1882_v51 = vsub.f32 1.0, %v5138_v46  ;;  %v1890_v55 = vmul.f32 %v5138_v46, %v1888_v52 }
0x2507   :  { %v1873_v47 = vpop.permute.xlu1 %1872 }
0x2508   :  { %v1875_v14 = vmul.f32 %v5138_v46, %v1873_v47  ;;  %v2117_v46 = vld [vmem:[#allocation10 + $0x8] sm:$0xff] }
0x2509   :  { %v4923_v47 = vpack.c.bf16 %v2117_v46, %v2116_v44 }
0x250a   :  { %1877 = vrot.lane.b32.xlu0 %v1875_v14, %s5471_s10  ;;  %v2118_v14 = vld [vmem:[#allocation10 + $0x10] sm:$0xff] }
0x250b   :  { %4924 = vmatprep.subr.bf16.mxu0 %v4923_v47 }
0x257c   :  { %v1878_v48 = vpop.permute.xlu0 %1877 }
0x257d   :  { %v1880_v49 = vadd.f32 %v1878_v48, %v5934_v43  ;;  %v2119_v48 = vld [vmem:[#allocation10 + $0x18] sm:$0xff] }
0x257f   :  { %5139 = vtanh.f32 %v1880_v49 }
0x2589   :  { %v5140_v50 = vpop.eup %5139 }
0x258a   :  { %1884 = vrot.lane.b32.xlu1 %v5140_v50, %s5472_s3  ;;  %v4189_v50 = vld [vmem:[#allocation14] ss:$0 sm:$0xff] }
0x25fc   :  { %v1885_v54 = vpop.permute.xlu1 %1884 }
0x25fd   :  { %v1887_v23 = vmul.f32 %v1885_v54, %v1882_v51 }
0x25ff   :  { %v1891_v56 = vadd.f32 %v1890_v55, %v1887_v23 }
0x2601   :  { %v1893_v57 = vrot.slane %v1891_v56, 2  ;;  %v1997_v15 = vrot.slane %v1891_v56, 6  ;;  %v2113_v17 = vsel %vm1139_vm3, %v6007_v33, %v1891_v56 }
0x2603   :  { %1894 = vrot.lane.b32.xlu0 %v1893_v57, %s5472_s3 }
0x2675   :  { %v1895_v58 = vpop.permute.xlu0 %1894 }
0x2676   :  { %4593 = vmatmul.mubr.msk.f32.vlgmr.msra.gmra.mrb[16].mxu0 %vm274_vm2, %v1895_v58 }
0x2677   :  { %4926 = vmatpush3.bf16.msra.mxu0 %v4923_v47 }
0x2749   :  { %v1964_v59 = vpop.f32.mrb[16].mxu0 }
0x274a   :  { %v1978_v60 = vadd.f32 %v1964_v59, %v5923_v38  ;;  %v4594_v61 = vpop.f32.mrb[17].mxu0  ;;  %v1969_v63 = vrot.slane %v1964_v59, 4 }
0x274c   :  { %v1980_v62 = vrot.slane %v1978_v60, 4  ;;  %v1971_v0 = vadd.f32 %v1969_v63, %v5934_v43  ;;  %v4185_v63 = vld [vmem:[#allocation13] ss:$0 sm:$0xff] }
0x274e   :  { %1981 = vrot.lane.b32.xlu1 %v1980_v62, %s5471_s10  ;;  %v4182_v3 = vmul.f32 -1.442695, %v1971_v0 }
0x2750   :  { %5141 = vpow2.f32 %v4182_v3 }
0x275a   :  { %v5142_v4 = vpop.eup %5141 }
0x275b   :  { %v1975_v5 = vadd.f32 1.0, %v5142_v4 }
0x275d   :  { %5143 = vrcp.f32 %v1975_v5 }
0x2767   :  { %v5144_v6 = vpop.eup %5143 }
0x2768   :  { %v1991_v19 = vsub.f32 1.0, %v5144_v6  ;;  %v1999_v16 = vmul.f32 %v5144_v6, %v1997_v15 }
0x27c0   :  { %v1982_v7 = vpop.permute.xlu1 %1981 }
0x27c1   :  { %v1984_v8 = vmul.f32 %v5144_v6, %v1982_v7 }
0x27c3   :  { %1986 = vrot.lane.b32.xlu0 %v1984_v8, %s5471_s10 }
0x2835   :  { %v1987_v10 = vpop.permute.xlu0 %1986 }
0x2836   :  { %v1989_v11 = vadd.f32 %v1987_v10, %v5934_v43 }
0x2838   :  { %5145 = vtanh.f32 %v1989_v11 }
0x2842   :  { %v5146_v12 = vpop.eup %5145 }
0x2843   :  { %1993 = vrot.lane.b32.xlu1 %v5146_v12, %s5472_s3 }
0x28b5   :  { %v1994_v45 = vpop.permute.xlu1 %1993 }
0x28b6   :  { %v1996_v18 = vmul.f32 %v1994_v45, %v1991_v19 }
0x28b8   :  { %v6033_v20 = vadd.f32 %v1999_v16, %v1996_v18 }
0x28ba   :  { %v2002_v9 = vrot.slane %v6033_v20, 4  ;;  %v6040_v21 = vsel %vm1141_vm4, %v2113_v17, %v6033_v20  ;;  %v2106_v52 = vrot.slane %v6033_v20, 6 }
0x28bc   :  { %2003 = vrot.lane.b32.xlu0 %v2002_v9, %s5472_s3 }
0x292e   :  { %v2004_v22 = vpop.permute.xlu0 %2003 }
0x292f   :  { %4604 = vmatmul.mubr.msk.f32.vlgmr.msra.gmra.mrb[16].mxu1 %vm274_vm2, %v2004_v22 }
0x2930   :  { %4625 = vmatprep.mubr.msk.f32.mxu1 %vm5469_vm0, %v5470_v2  ;;  %4933 = vmatpush3.bf16.msra.mxu1 %v6054_v53 }
0x2931   :  { %4934 = vmatprep.subr.bf16.mxu1 %v5468_v1 }
0x2a02   :  { %v2073_v24 = vpop.f32.mrb[16].mxu1 }
0x2a03   :  { %v2087_v25 = vadd.f32 %v2073_v24, %v5923_v38  ;;  %v4605_v26 = vpop.f32.mrb[17].mxu1  ;;  %v2078_v28 = vrot.slane %v2073_v24, 2 }
0x2a05   :  { %v2089_v27 = vrot.slane %v2087_v25, 2  ;;  %v2080_v29 = vadd.f32 %v2078_v28, %v5934_v43 }
0x2a07   :  { %2090 = vrot.lane.b32.xlu1 %v2089_v27, %s5471_s10  ;;  %v4184_v30 = vmul.f32 -1.442695, %v2080_v29 }
0x2a09   :  { %5147 = vpow2.f32 %v4184_v30 }
0x2a13   :  { %v5148_v31 = vpop.eup %5147 }
0x2a14   :  { %v2084_v32 = vadd.f32 1.0, %v5148_v31 }
0x2a16   :  { %5149 = vrcp.f32 %v2084_v32 }
0x2a20   :  { %v5150_v33 = vpop.eup %5149 }
0x2a21   :  { %v2100_v51 = vsub.f32 1.0, %v5150_v33  ;;  %v2108_v23 = vmul.f32 %v5150_v33, %v2106_v52 }
0x2a79   :  { %v2091_v34 = vpop.permute.xlu1 %2090 }
0x2a7a   :  { %v2093_v35 = vmul.f32 %v5150_v33, %v2091_v34 }
0x2a7c   :  { %2095 = vrot.lane.b32.xlu0 %v2093_v35, %s5471_s10 }
0x2a80   :  { %2134 = vrot.lane.b32.xlu0 %v5992_v13, %s5472_s3  ;;  %v6057_v13 = vpack.c.bf16 %v2123_v42, %v2122_v41 }
0x2a82   :  { %4936 = vmatpush3.bf16.msra.mxu1 %v6057_v13 }
0x2a83   :  { %4943 = vmatprep.subr.bf16.mxu1 %v5468_v1 }
0x2a84   :  { %2299 = vrot.lane.b32.xlu0 %v4189_v50, %s5471_s10 }
0x2a85   :  { %4626 = vmatmul.mubr.f32.vlgmr.msra.gmra.mrb[18].mxu1 %v5470_v2 }
0x2a86   :  { %4945 = vmatpush3.bf16.msra.mxu1 %v6054_v53  ;;  %4647 = vmatprep.mubr.msk.f32.mxu1 %vm5469_vm0, %v5470_v2 }
0x2a87   :  { %4946 = vmatprep.subr.bf16.mxu1 %v5468_v1 }
0x2a8a   :  { %4948 = vmatpush3.bf16.msra.mxu1 %v6057_v13 }
0x2a8b   :  { %4955 = vmatprep.subr.bf16.mxu1 %v5468_v1 }
0x2aee   :  { %v2096_v38 = vpop.permute.xlu0 %2095 }
0x2aef   :  { %v2098_v36 = vadd.f32 %v2096_v38, %v5934_v43  ;;  %v4927_v43 = vpack.c.bf16 %v2119_v48, %v2118_v14 }
0x2af1   :  { %5151 = vtanh.f32 %v2098_v36  ;;  %4928 = vmatprep.subr.bf16.mxu0 %v4927_v43 }
0x2af2   :  { %v2135_v37 = vpop.permute.xlu0 %2134  ;;  %4930 = vmatpush3.bf16.msra.mxu0 %v4927_v43 }
0x2af3   :  { %4614 = vmatprep.mubr.msk.f32.mxu0 %vm274_vm2, %v2135_v37  ;;  %4937 = vmatprep.subr.bf16.mxu0 %v5468_v1 }
0x2af6   :  { %v6076_v60 = vpop.permute.xlu0 %2299 }
0x2afb   :  { %v5152_v49 = vpop.eup %5151 }
0x2afc   :  { %2102 = vrot.lane.b32.xlu1 %v5152_v49, %s5472_s3 }
0x2b58   :  { %v2283_v58 = vpop.f32.mrb[18].mxu1 }
0x2b59   :  { %v4627_v59 = vpop.f32.mrb[19].mxu1  ;;  %v2302_v61 = vadd.f32 %v6076_v60, %v2283_v58 }
0x2b6e   :  { %v2103_v54 = vpop.permute.xlu1 %2102 }
0x2b6f   :  { %v2105_v55 = vmul.f32 %v2103_v54, %v2100_v51 }
0x2b71   :  { %v2109_v56 = vadd.f32 %v2108_v23, %v2105_v55 }
0x2b73   :  { %v2115_v57 = vsel %vm1143_vm5, %v6040_v21, %v2109_v56 }
0x2b74   :  { %2136 = vrot.lane.b32.xlu1 %v2115_v57, %s5472_s3 }
0x2b78   :  { %2304 = vrot.lane.b32.xlu1 %v2302_v61, %s5471_s10 }
0x2be6   :  { %v2137_v62 = vpop.permute.xlu1 %2136 }
0x2be7   :  { %4615 = vmatmul.mubr.msk.f32.vlgmr.msra.gmra.mrb[18].mxu0 %vm274_vm2, %v2137_v62 }
0x2be8   :  { %4939 = vmatpush3.bf16.msra.mxu0 %v6054_v53  ;;  %4636 = vmatprep.mubr.msk.f32.mxu0 %vm5469_vm0, %v5470_v2 }
0x2be9   :  { %4940 = vmatprep.subr.bf16.mxu0 %v5468_v1 }
0x2bea   :  { %v2305_v11 = vpop.permute.xlu1 %2304 }
0x2bec   :  { %4942 = vmatpush3.bf16.msra.mxu0 %v6057_v13 }
0x2bed   :  { %4949 = vmatprep.subr.bf16.mxu0 %v5468_v1 }
0x2cba   :  { %v4616_v0 = vpop.f32.mrb[18].mxu0 }
0x2cbb   :  { %v6087_v3 = vadd.f32 %v4616_v0, %v4185_v63  ;;  %v2208_v4 = vpop.f32.mrb[19].mxu0 }
0x2cbc   :  { %v6089_v5 = vadd.f32 %v4185_v63, %v2208_v4 }
0x2cbe   :  { %v2287_v6 = vadd.f32 %v2283_v58, %v6089_v5 }
0x2cc0   :  { %v4188_v7 = vmul.f32 -1.442695, %v2287_v6 }
0x2cc2   :  { %5153 = vpow2.f32 %v4188_v7 }
0x2ccc   :  { %v5154_v8 = vpop.eup %5153 }
0x2ccd   :  { %v2291_v10 = vadd.f32 1.0, %v5154_v8 }
0x2ccf   :  { %5155 = vrcp.f32 %v2291_v10 }
0x2cd9   :  { %v5156_v12 = vpop.eup %5155 }
0x2cda   :  { %v2307_v19 = vmul.f32 %v5156_v12, %v2305_v11  ;;  %v2314_v18 = vsub.f32 1.0, %v5156_v12  ;;  %v2320_v17 = vmul.f32 0.0, %v5156_v12 }
0x2cdc   :  { %2309 = vrot.lane.b32.xlu0 %v2307_v19, %s5471_s10 }
0x2d4e   :  { %v2310_v15 = vpop.permute.xlu0 %2309 }
0x2d4f   :  { %v2312_v45 = vadd.f32 %v2310_v15, %v6089_v5 }
0x2d51   :  { %5157 = vtanh.f32 %v2312_v45 }
0x2d5b   :  { %v5158_v16 = vpop.eup %5157 }
0x2d5c   :  { %2316 = vrot.lane.b32.xlu1 %v5158_v16, %s5472_s3 }
0x2dce   :  { %v2317_v20 = vpop.permute.xlu1 %2316 }
0x2dcf   :  { %v2319_v9 = vmul.f32 %v2317_v20, %v2314_v18 }
0x2dd1   :  { %v6095_v21 = vadd.f32 %v2320_v17, %v2319_v9 }
0x2dd3   :  { %2323 = vrot.lane.b32.xlu0 %v6095_v21, %s5472_s3  ;;  %v2426_v40 = vrot.slane %v6095_v21, 6 }
0x2e45   :  { %v2324_v22 = vpop.permute.xlu0 %2323 }
0x2e46   :  { %4637 = vmatmul.mubr.msk.f32.vlgmr.msra.gmra.mrb[20].mxu0 %vm274_vm2, %v2324_v22 }
0x2e47   :  { %4951 = vmatpush3.bf16.msra.mxu0 %v6054_v53  ;;  %4658 = vmatprep.mubr.msk.f32.mxu0 %vm5469_vm0, %v5470_v2 }
0x2e48   :  { %4952 = vmatprep.subr.bf16.mxu0 %v5468_v1 }
0x2e4b   :  { %4954 = vmatpush3.bf16.msra.mxu0 %v6057_v13 }
0x2e4c   :  { %4961 = vmatprep.subr.bf16.mxu0 %v5468_v1 }
0x2f19   :  { %v2393_v24 = vpop.f32.mrb[20].mxu0 }
0x2f1a   :  { %v2407_v25 = vadd.f32 %v2393_v24, %v6076_v60  ;;  %v4638_v26 = vpop.f32.mrb[21].mxu0  ;;  %v2398_v28 = vrot.slane %v2393_v24, 6 }
0x2f1c   :  { %v2409_v27 = vrot.slane %v2407_v25, 6  ;;  %v2400_v29 = vadd.f32 %v2398_v28, %v6089_v5 }
0x2f1e   :  { %2410 = vrot.lane.b32.xlu1 %v2409_v27, %s5471_s10  ;;  %v4191_v30 = vmul.f32 -1.442695, %v2400_v29 }
0x2f20   :  { %5159 = vpow2.f32 %v4191_v30 }
0x2f2a   :  { %v5160_v31 = vpop.eup %5159 }
0x2f2b   :  { %v2404_v32 = vadd.f32 1.0, %v5160_v31 }
0x2f2d   :  { %5161 = vrcp.f32 %v2404_v32 }
0x2f37   :  { %v5162_v33 = vpop.eup %5161 }
0x2f38   :  { %v2420_v39 = vsub.f32 1.0, %v5162_v33  ;;  %v2428_v44 = vmul.f32 %v5162_v33, %v2426_v40 }
0x2f90   :  { %v2411_v34 = vpop.permute.xlu1 %2410 }
0x2f91   :  { %v2413_v35 = vmul.f32 %v5162_v33, %v2411_v34 }
0x2f93   :  { %2415 = vrot.lane.b32.xlu0 %v2413_v35, %s5471_s10 }
0x3005   :  { %v2416_v38 = vpop.permute.xlu0 %2415 }
0x3006   :  { %v2418_v36 = vadd.f32 %v2416_v38, %v6089_v5 }
0x3008   :  { %5163 = vtanh.f32 %v2418_v36 }
0x3012   :  { %v5164_v37 = vpop.eup %5163 }
0x3013   :  { %2422 = vrot.lane.b32.xlu1 %v5164_v37, %s5472_s3 }
0x3085   :  { %v2423_v41 = vpop.permute.xlu1 %2422 }
0x3086   :  { %v2425_v42 = vmul.f32 %v2423_v41, %v2420_v39 }
0x3088   :  { %v2429_v46 = vadd.f32 %v2428_v44, %v2425_v42 }
0x308a   :  { %v2431_v47 = vrot.slane %v2429_v46, 2  ;;  %v2535_v0 = vrot.slane %v2429_v46, 6  ;;  %v3078_v10 = vsel %vm1139_vm3, %v6095_v21, %v2429_v46 }
0x308c   :  { %2432 = vrot.lane.b32.xlu0 %v2431_v47, %s5472_s3 }
0x30fe   :  { %v2433_v14 = vpop.permute.xlu0 %2432 }
0x30ff   :  { %4648 = vmatmul.mubr.msk.f32.vlgmr.msra.gmra.mrb[20].mxu1 %vm274_vm2, %v2433_v14 }
0x3100   :  { %4957 = vmatpush3.bf16.msra.mxu1 %v6054_v53  ;;  %4669 = vmatprep.mubr.msk.f32.mxu1 %vm5469_vm0, %v5470_v2 }
0x3101   :  { %4958 = vmatprep.subr.bf16.mxu1 %v5468_v1 }
0x3104   :  { %4960 = vmatpush3.bf16.msra.mxu1 %v6057_v13 }
0x3105   :  { %4967 = vmatprep.subr.bf16.mxu1 %v5468_v1 }
0x31d2   :  { %v2502_v48 = vpop.f32.mrb[20].mxu1 }
0x31d3   :  { %v2516_v43 = vadd.f32 %v2502_v48, %v6076_v60  ;;  %v4649_v49 = vpop.f32.mrb[21].mxu1  ;;  %v2507_v51 = vrot.slane %v2502_v48, 4 }
0x31d5   :  { %v2518_v50 = vrot.slane %v2516_v43, 4  ;;  %v2509_v52 = vadd.f32 %v2507_v51, %v6089_v5 }
0x31d7   :  { %2519 = vrot.lane.b32.xlu1 %v2518_v50, %s5471_s10  ;;  %v4193_v54 = vmul.f32 -1.442695, %v2509_v52 }
0x31d9   :  { %5165 = vpow2.f32 %v4193_v54 }
0x31e3   :  { %v5166_v23 = vpop.eup %5165 }
0x31e4   :  { %v2513_v55 = vadd.f32 1.0, %v5166_v23 }
0x31e6   :  { %5167 = vrcp.f32 %v2513_v55 }
0x31f0   :  { %v5168_v56 = vpop.eup %5167 }
0x31f1   :  { %v2529_v63 = vsub.f32 1.0, %v5168_v56  ;;  %v2537_v6 = vmul.f32 %v5168_v56, %v2535_v0 }
0x3249   :  { %v2520_v57 = vpop.permute.xlu1 %2519 }
0x324a   :  { %v2522_v58 = vmul.f32 %v5168_v56, %v2520_v57 }
0x324c   :  { %2524 = vrot.lane.b32.xlu0 %v2522_v58, %s5471_s10 }
0x32be   :  { %v2525_v59 = vpop.permute.xlu0 %2524 }
0x32bf   :  { %v2527_v61 = vadd.f32 %v2525_v59, %v6089_v5 }
0x32c1   :  { %5169 = vtanh.f32 %v2527_v61 }
0x32cb   :  { %v5170_v62 = vpop.eup %5169 }
0x32cc   :  { %2531 = vrot.lane.b32.xlu1 %v5170_v62, %s5472_s3 }
0x333e   :  { %v2532_v4 = vpop.permute.xlu1 %2531 }
0x333f   :  { %v2534_v7 = vmul.f32 %v2532_v4, %v2529_v63 }
0x3341   :  { %v2538_v8 = vadd.f32 %v2537_v6, %v2534_v7 }
0x3343   :  { %v2540_v11 = vrot.slane %v2538_v8, 4  ;;  %v3079_v12 = vsel %vm1141_vm4, %v3078_v10, %v2538_v8  ;;  %v2644_v31 = vrot.slane %v2538_v8, 6 }
0x3345   :  { %2541 = vrot.lane.b32.xlu0 %v2540_v11, %s5472_s3 }
0x33b7   :  { %v2542_v19 = vpop.permute.xlu0 %2541 }
0x33b8   :  { %4659 = vmatmul.mubr.msk.f32.vlgmr.msra.gmra.mrb[22].mxu0 %vm274_vm2, %v2542_v19 }
0x33b9   :  { %4963 = vmatpush3.bf16.msra.mxu0 %v6054_v53  ;;  %4680 = vmatprep.mubr.msk.f32.mxu0 %vm5469_vm0, %v5470_v2 }
0x33ba   :  { %4964 = vmatprep.subr.bf16.mxu0 %v5468_v1 }
0x33bd   :  { %4966 = vmatpush3.bf16.msra.mxu0 %v6057_v13 }
0x33be   :  { %4973 = vmatprep.subr.bf16.mxu0 %v5468_v1 }
0x348b   :  { %v2611_v15 = vpop.f32.mrb[22].mxu0 }
0x348c   :  { %v2625_v45 = vadd.f32 %v2611_v15, %v6076_v60  ;;  %v4660_v16 = vpop.f32.mrb[23].mxu0  ;;  %v2616_v20 = vrot.slane %v2611_v15, 2 }
0x348e   :  { %v2627_v18 = vrot.slane %v2625_v45, 2  ;;  %v2618_v17 = vadd.f32 %v2616_v20, %v6089_v5 }
0x3490   :  { %2628 = vrot.lane.b32.xlu1 %v2627_v18, %s5471_s10  ;;  %v4195_v9 = vmul.f32 -1.442695, %v2618_v17 }
0x3492   :  { %5171 = vpow2.f32 %v4195_v9 }
0x349c   :  { %v5172_v21 = vpop.eup %5171 }
0x349d   :  { %v2622_v22 = vadd.f32 1.0, %v5172_v21 }
0x349f   :  { %5173 = vrcp.f32 %v2622_v22 }
0x34a9   :  { %v5174_v24 = vpop.eup %5173 }
0x34aa   :  { %v2638_v30 = vsub.f32 1.0, %v5174_v24  ;;  %v2646_v33 = vmul.f32 %v5174_v24, %v2644_v31 }
0x3502   :  { %v2629_v25 = vpop.permute.xlu1 %2628 }
0x3503   :  { %v2631_v26 = vmul.f32 %v5174_v24, %v2629_v25 }
0x3505   :  { %2633 = vrot.lane.b32.xlu0 %v2631_v26, %s5471_s10 }
0x3577   :  { %v2634_v27 = vpop.permute.xlu0 %2633 }
0x3578   :  { %v2636_v28 = vadd.f32 %v2634_v27, %v6089_v5 }
0x357a   :  { %5175 = vtanh.f32 %v2636_v28 }
0x3584   :  { %v5176_v29 = vpop.eup %5175 }
0x3585   :  { %2640 = vrot.lane.b32.xlu1 %v5176_v29, %s5472_s3 }
0x35f7   :  { %v2641_v32 = vpop.permute.xlu1 %2640 }
0x35f8   :  { %v2643_v34 = vmul.f32 %v2641_v32, %v2638_v30 }
0x35fa   :  { %v2647_v35 = vadd.f32 %v2646_v33, %v2643_v34 }
0x35fc   :  { %v2649_v38 = vrot.slane %v2647_v35, 6  ;;  %v6145_v36 = vsel %vm1143_vm5, %v3079_v12, %v2647_v35 }
0x35fe   :  { %2650 = vrot.lane.b32.xlu0 %v2649_v38, %s5472_s3 }
0x3670   :  { %v2651_v37 = vpop.permute.xlu0 %2650 }
0x3671   :  { %4670 = vmatmul.mubr.msk.f32.vlgmr.msra.gmra.mrb[22].mxu1 %vm274_vm2, %v2651_v37 }
0x3672   :  { %4969 = vmatpush3.bf16.msra.mxu1 %v6054_v53  ;;  %4691 = vmatprep.mubr.msk.f32.mxu1 %vm5469_vm0, %v5470_v2 }
0x3673   :  { %4970 = vmatprep.subr.bf16.mxu1 %v5468_v1 }
0x3676   :  { %4972 = vmatpush3.bf16.msra.mxu1 %v6057_v13 }
0x3744   :  { %v2720_v5 = vpop.f32.mrb[22].mxu1 }
0x3745   :  { %v2731_v39 = vadd.f32 %v2720_v5, %v6076_v60  ;;  %v4671_v40 = vpop.f32.mrb[23].mxu1  ;;  %v2724_v41 = vadd.f32 %v2720_v5, %v6087_v3 }
0x3747   :  { %2733 = vrot.lane.b32.xlu1 %v2731_v39, %s5471_s10  ;;  %v4197_v42 = vmul.f32 -1.442695, %v2724_v41 }
0x3749   :  { %5177 = vpow2.f32 %v4197_v42 }
0x3753   :  { %v5178_v44 = vpop.eup %5177 }
0x3754   :  { %v2728_v46 = vadd.f32 1.0, %v5178_v44 }
0x3756   :  { %5179 = vrcp.f32 %v2728_v46 }
0x3760   :  { %v5180_v47 = vpop.eup %5179 }
0x3761   :  { %v2743_v51 = vsub.f32 1.0, %v5180_v47  ;;  %v2750_v54 = vmul.f32 %v5180_v47, %v2649_v38 }
0x37b9   :  { %v2734_v14 = vpop.permute.xlu1 %2733 }
0x37ba   :  { %v2736_v48 = vmul.f32 %v5180_v47, %v2734_v14 }
0x37bc   :  { %2738 = vrot.lane.b32.xlu0 %v2736_v48, %s5471_s10 }
0x382e   :  { %v2739_v43 = vpop.permute.xlu0 %2738 }
0x382f   :  { %v2741_v49 = vadd.f32 %v2739_v43, %v6087_v3 }
0x3831   :  { %5181 = vtanh.f32 %v2741_v49 }
0x383b   :  { %v5182_v50 = vpop.eup %5181 }
0x383c   :  { %2745 = vrot.lane.b32.xlu1 %v5182_v50, %s5472_s3 }
0x38ae   :  { %v2746_v52 = vpop.permute.xlu1 %2745 }
0x38af   :  { %v2748_v23 = vmul.f32 %v2746_v52, %v2743_v51 }
0x38b1   :  { %v6160_v55 = vadd.f32 %v2750_v54, %v2748_v23 }
0x38b3   :  { %2753 = vrot.lane.b32.xlu0 %v6160_v55, %s5472_s3  ;;  %v2856_v19 = vrot.slane %v6160_v55, 6 }
0x3925   :  { %v2754_v56 = vpop.permute.xlu0 %2753 }
0x3926   :  { %4681 = vmatmul.mubr.msk.f32.vlgmr.msra.gmra.mrb[24].mxu0 %vm274_vm2, %v2754_v56 }
0x3927   :  { %4975 = vmatpush3.bf16.msra.mxu0 %v6054_v53  ;;  %4702 = vmatprep.mubr.msk.f32.mxu0 %vm5469_vm0, %v5470_v2 }
0x3928   :  { %4976 = vmatprep.subr.bf16.mxu0 %v5468_v1 }
0x392b   :  { %4978 = vmatpush3.bf16.msra.mxu0 %v6057_v13 }
0x392c   :  { %4987 = vmatprep.subr.bf16.mxu0 %v5468_v1 }
0x39f9   :  { %v2823_v57 = vpop.f32.mrb[24].mxu0 }
0x39fa   :  { %v2837_v58 = vadd.f32 %v2823_v57, %v6076_v60  ;;  %v4682_v59 = vpop.f32.mrb[25].mxu0  ;;  %v2828_v62 = vrot.slane %v2823_v57, 6 }
0x39fc   :  { %v2839_v61 = vrot.slane %v2837_v58, 6  ;;  %v2830_v63 = vadd.f32 %v2828_v62, %v6087_v3  ;;  %v3089_v62 = vld [vmem:[#allocation16 + $0x8] sm:$0xff] }
0x39fe   :  { %2840 = vrot.lane.b32.xlu1 %v2839_v61, %s5471_s10  ;;  %v4199_v53 = vmul.f32 -1.442695, %v2830_v63  ;;  %v3088_v61 = vld [vmem:[#allocation16] sm:$0xff]  ;;  %v3090_v63 = vld [vmem:[#allocation16 + $0x10] sm:$0xff] }
0x3a00   :  { %5183 = vpow2.f32 %v4199_v53  ;;  %v6207_v53 = vpack.c.bf16 %v3089_v62, %v3088_v61 }
0x3a0a   :  { %v5184_v0 = vpop.eup %5183 }
0x3a0b   :  { %v2834_v4 = vadd.f32 1.0, %v5184_v0  ;;  %v3091_v0 = vld [vmem:[#allocation16 + $0x18] sm:$0xff] }
0x3a0d   :  { %5185 = vrcp.f32 %v2834_v4  ;;  %v3084_v4 = vld [vmem:[%s6392_s13] sm:$0xff] }
0x3a17   :  { %v5186_v6 = vpop.eup %5185 }
0x3a18   :  { %v2850_v12 = vsub.f32 1.0, %v5186_v6  ;;  %v2858_v16 = vmul.f32 %v5186_v6, %v2856_v19 }
0x3a70   :  { %v2841_v7 = vpop.permute.xlu1 %2840 }
0x3a71   :  { %v2843_v13 = vmul.f32 %v5186_v6, %v2841_v7  ;;  %v3087_v7 = vld [vmem:[%s6392_s13 + $0x18] sm:$0xff] }
0x3a73   :  { %2845 = vrot.lane.b32.xlu0 %v2843_v13, %s5471_s10  ;;  %v6222_v13 = vpack.c.bf16 %v3091_v0, %v3090_v63 }
0x3ae5   :  { %v2846_v8 = vpop.permute.xlu0 %2845 }
0x3ae6   :  { %v2848_v10 = vadd.f32 %v2846_v8, %v6087_v3 }
0x3ae8   :  { %5187 = vtanh.f32 %v2848_v10 }
0x3af2   :  { %v5188_v11 = vpop.eup %5187 }
0x3af3   :  { %2852 = vrot.lane.b32.xlu1 %v5188_v11, %s5472_s3  ;;  %v4208_v11 = vld [vmem:[%s6395_s16] ss:$0 sm:$0xff] }
0x3b65   :  { %v2853_v15 = vpop.permute.xlu1 %2852 }
0x3b66   :  { %v2855_v45 = vmul.f32 %v2853_v15, %v2850_v12 }
0x3b68   :  { %v2859_v18 = vadd.f32 %v2858_v16, %v2855_v45 }
0x3b6a   :  { %v2861_v20 = vrot.slane %v2859_v18, 2  ;;  %v2965_v37 = vrot.slane %v2859_v18, 6  ;;  %v3081_v42 = vsel %vm1139_vm3, %v6160_v55, %v2859_v18 }
0x3b6c   :  { %2862 = vrot.lane.b32.xlu0 %v2861_v20, %s5472_s3 }
0x3bde   :  { %v2863_v17 = vpop.permute.xlu0 %2862 }
0x3bdf   :  { %4692 = vmatmul.mubr.msk.f32.vlgmr.msra.gmra.mrb[24].mxu1 %vm274_vm2, %v2863_v17 }
0x3cb2   :  { %v2932_v9 = vpop.f32.mrb[24].mxu1 }
0x3cb3   :  { %v2946_v21 = vadd.f32 %v2932_v9, %v6076_v60  ;;  %v4693_v22 = vpop.f32.mrb[25].mxu1  ;;  %v2937_v25 = vrot.slane %v2932_v9, 4 }
0x3cb5   :  { %v2948_v24 = vrot.slane %v2946_v21, 4  ;;  %v2939_v26 = vadd.f32 %v2937_v25, %v6087_v3  ;;  %v4204_v25 = vld [vmem:[%s6394_s15] ss:$0 sm:$0xff] }
0x3cb7   :  { %2949 = vrot.lane.b32.xlu1 %v2948_v24, %s5471_s10  ;;  %v4201_v27 = vmul.f32 -1.442695, %v2939_v26 }
0x3cb9   :  { %5189 = vpow2.f32 %v4201_v27 }
0x3cc3   :  { %v5190_v28 = vpop.eup %5189 }
0x3cc4   :  { %v2943_v29 = vadd.f32 1.0, %v5190_v28 }
0x3cc6   :  { %5191 = vrcp.f32 %v2943_v29 }
0x3cd0   :  { %v5192_v30 = vpop.eup %5191 }
0x3cd1   :  { %v2959_v38 = vsub.f32 1.0, %v5192_v30  ;;  %v2967_v39 = vmul.f32 %v5192_v30, %v2965_v37 }
0x3d29   :  { %v2950_v31 = vpop.permute.xlu1 %2949 }
0x3d2a   :  { %v2952_v32 = vmul.f32 %v5192_v30, %v2950_v31 }
0x3d2c   :  { %2954 = vrot.lane.b32.xlu0 %v2952_v32, %s5471_s10 }
0x3d9e   :  { %v2955_v33 = vpop.permute.xlu0 %2954 }
0x3d9f   :  { %v2957_v34 = vadd.f32 %v2955_v33, %v6087_v3 }
0x3da1   :  { %5193 = vtanh.f32 %v2957_v34 }
0x3dab   :  { %v5194_v35 = vpop.eup %5193 }
0x3dac   :  { %2961 = vrot.lane.b32.xlu1 %v5194_v35, %s5472_s3 }
0x3e1e   :  { %v2962_v5 = vpop.permute.xlu1 %2961 }
0x3e1f   :  { %v2964_v40 = vmul.f32 %v2962_v5, %v2959_v38 }
0x3e21   :  { %v6186_v41 = vadd.f32 %v2967_v39, %v2964_v40 }
0x3e23   :  { %v2970_v44 = vrot.slane %v6186_v41, 4  ;;  %v6193_v46 = vsel %vm1141_vm4, %v3081_v42, %v6186_v41  ;;  %v3074_v19 = vrot.slane %v6186_v41, 6 }
0x3e25   :  { %2971 = vrot.lane.b32.xlu0 %v2970_v44, %s5472_s3 }
0x3e97   :  { %v2972_v47 = vpop.permute.xlu0 %2971 }
0x3e98   :  { %4703 = vmatmul.mubr.msk.f32.vlgmr.msra.gmra.mrb[26].mxu0 %vm274_vm2, %v2972_v47 }
0x3e99   :  { %4724 = vmatprep.mubr.msk.f32.mxu0 %vm5469_vm0, %v5470_v2  ;;  %4989 = vmatpush3.bf16.msra.mxu0 %v6207_v53 }
0x3e9a   :  { %4990 = vmatprep.subr.bf16.mxu0 %v5468_v1 }
0x3e9d   :  { %4992 = vmatpush3.bf16.msra.mxu0 %v6222_v13 }
0x3e9e   :  { %4999 = vmatprep.subr.bf16.mxu0 %v5468_v1 }
0x3ea0   :  { %4725 = vmatmul.mubr.f32.vlgmr.msra.gmra.mrb[28].mxu0 %v5470_v2 }
0x3ea1   :  { %5001 = vmatpush3.bf16.msra.mxu0 %v6207_v53  ;;  %4746 = vmatprep.mubr.msk.f32.mxu0 %vm5469_vm0, %v5470_v2 }
0x3ea2   :  { %5002 = vmatprep.subr.bf16.mxu0 %v5468_v1 }
0x3ea5   :  { %5004 = vmatpush3.bf16.msra.mxu0 %v6222_v13 }
0x3ea6   :  { %5011 = vmatprep.subr.bf16.mxu0 %v5468_v1 }
0x3f6b   :  { %v3041_v14 = vpop.f32.mrb[26].mxu0 }
0x3f6c   :  { %v3055_v48 = vadd.f32 %v3041_v14, %v6076_v60  ;;  %v4704_v43 = vpop.f32.mrb[27].mxu0  ;;  %v3046_v50 = vrot.slane %v3041_v14, 2 }
0x3f6e   :  { %v3057_v49 = vrot.slane %v3055_v48, 2  ;;  %v3048_v51 = vadd.f32 %v3046_v50, %v6087_v3 }
0x3f70   :  { %3058 = vrot.lane.b32.xlu1 %v3057_v49, %s5471_s10  ;;  %v4203_v52 = vmul.f32 -1.442695, %v3048_v51 }
0x3f72   :  { %5195 = vpow2.f32 %v4203_v52 }
0x3f73   :  { %v3251_v17 = vpop.f32.mrb[28].mxu0 }
0x3f74   :  { %v4726_v9 = vpop.f32.mrb[29].mxu0 }
0x3f7c   :  { %v5196_v54 = vpop.eup %5195 }
0x3f7d   :  { %v3052_v23 = vadd.f32 1.0, %v5196_v54 }
0x3f7f   :  { %5197 = vrcp.f32 %v3052_v23 }
0x3f89   :  { %v5198_v55 = vpop.eup %5197 }
0x3f8a   :  { %v3068_v12 = vsub.f32 1.0, %v5198_v55  ;;  %v3076_v45 = vmul.f32 %v5198_v55, %v3074_v19 }
0x3fe2   :  { %v3059_v56 = vpop.permute.xlu1 %3058 }
0x3fe3   :  { %v3061_v57 = vmul.f32 %v5198_v55, %v3059_v56 }
0x3fe5   :  { %3063 = vrot.lane.b32.xlu0 %v3061_v57, %s5471_s10 }
0x3fe9   :  { %3102 = vrot.lane.b32.xlu0 %v6145_v36, %s5472_s3  ;;  %v3085_v36 = vld [vmem:[%s6392_s13 + $0x8] sm:$0xff] }
0x3fea   :  { %v4979_v6 = vpack.c.bf16 %v3085_v36, %v3084_v4 }
0x3fec   :  { %4980 = vmatprep.subr.bf16.mxu1 %v4979_v6 }
0x3fed   :  { %4982 = vmatpush3.bf16.msra.mxu1 %v4979_v6  ;;  %3267 = vrot.lane.b32.xlu0 %v4208_v11, %s5471_s10 }
0x4057   :  { %v3064_v60 = vpop.permute.xlu0 %3063 }
0x4058   :  { %v3066_v58 = vadd.f32 %v3064_v60, %v6087_v3  ;;  %v3086_v3 = vld [vmem:[%s6392_s13 + $0x10] sm:$0xff] }
0x4059   :  { %v4983_v8 = vpack.c.bf16 %v3087_v7, %v3086_v3 }
0x405a   :  { %5199 = vtanh.f32 %v3066_v58 }
0x405b   :  { %v3103_v59 = vpop.permute.xlu0 %3102  ;;  %4984 = vmatprep.subr.bf16.mxu1 %v4983_v8 }
0x405c   :  { %4713 = vmatprep.mubr.msk.f32.mxu1 %vm274_vm2, %v3103_v59  ;;  %4986 = vmatpush3.bf16.msra.mxu1 %v4983_v8 }
0x405d   :  { %4993 = vmatprep.subr.bf16.mxu1 %v5468_v1 }
0x405f   :  { %v6244_v21 = vpop.permute.xlu0 %3267 }
0x4060   :  { %v3270_v22 = vadd.f32 %v6244_v21, %v3251_v17 }
0x4064   :  { %v5200_v10 = vpop.eup %5199 }
0x4065   :  { %3070 = vrot.lane.b32.xlu1 %v5200_v10, %s5472_s3 }
0x40d7   :  { %v3071_v15 = vpop.permute.xlu1 %3070 }
0x40d8   :  { %v3073_v16 = vmul.f32 %v3071_v15, %v3068_v12 }
0x40da   :  { %v3077_v18 = vadd.f32 %v3076_v45, %v3073_v16 }
0x40dc   :  { %v3083_v20 = vsel %vm1143_vm5, %v6193_v46, %v3077_v18 }
0x40dd   :  { %3104 = vrot.lane.b32.xlu1 %v3083_v20, %s5472_s3 }
0x40e1   :  { %3272 = vrot.lane.b32.xlu1 %v3270_v22, %s5471_s10 }
0x414f   :  { %v3105_v24 = vpop.permute.xlu1 %3104 }
0x4150   :  { %4714 = vmatmul.mubr.msk.f32.vlgmr.msra.gmra.mrb[26].mxu1 %vm274_vm2, %v3105_v24 }
0x4151   :  { %4995 = vmatpush3.bf16.msra.mxu1 %v6207_v53  ;;  %4735 = vmatprep.mubr.msk.f32.mxu1 %vm5469_vm0, %v5470_v2 }
0x4152   :  { %4996 = vmatprep.subr.bf16.mxu1 %v5468_v1 }
0x4153   :  { %v3273_v34 = vpop.permute.xlu1 %3272 }
0x4155   :  { %4998 = vmatpush3.bf16.msra.mxu1 %v6222_v13 }
0x4156   :  { %5005 = vmatprep.subr.bf16.mxu1 %v5468_v1 }
0x4223   :  { %v4715_v26 = vpop.f32.mrb[26].mxu1 }
0x4224   :  { %v6258_v27 = vadd.f32 %v4715_v26, %v4204_v25  ;;  %v3176_v28 = vpop.f32.mrb[27].mxu1 }
0x4225   :  { %v6260_v29 = vadd.f32 %v4204_v25, %v3176_v28 }
0x4227   :  { %v3255_v30 = vadd.f32 %v3251_v17, %v6260_v29 }
0x4229   :  { %v4207_v31 = vmul.f32 -1.442695, %v3255_v30 }
0x422b   :  { %5201 = vpow2.f32 %v4207_v31 }
0x4235   :  { %v5202_v32 = vpop.eup %5201 }
0x4236   :  { %v3259_v33 = vadd.f32 1.0, %v5202_v32 }
0x4238   :  { %5203 = vrcp.f32 %v3259_v33 }
0x4242   :  { %v5204_v35 = vpop.eup %5203 }
0x4243   :  { %v3275_v38 = vmul.f32 %v5204_v35, %v3273_v34  ;;  %v3282_v40 = vsub.f32 1.0, %v5204_v35  ;;  %v3288_v42 = vmul.f32 0.0, %v5204_v35 }
0x4245   :  { %3277 = vrot.lane.b32.xlu0 %v3275_v38, %s5471_s10 }
0x42b7   :  { %v3278_v37 = vpop.permute.xlu0 %3277 }
0x42b8   :  { %v3280_v5 = vadd.f32 %v3278_v37, %v6260_v29 }
0x42ba   :  { %5205 = vtanh.f32 %v3280_v5 }
0x42c4   :  { %v5206_v39 = vpop.eup %5205 }
0x42c5   :  { %3284 = vrot.lane.b32.xlu1 %v5206_v39, %s5472_s3 }
0x4337   :  { %v3285_v41 = vpop.permute.xlu1 %3284 }
0x4338   :  { %v3287_v44 = vmul.f32 %v3285_v41, %v3282_v40 }
0x433a   :  { %v3289_v46 = vadd.f32 %v3288_v42, %v3287_v44 }
0x433c   :  { %3291 = vrot.lane.b32.xlu0 %v3289_v46, %s5472_s3  ;;  %v3394_v61 = vrot.slane %v3289_v46, 6 }
0x43ae   :  { %v3292_v47 = vpop.permute.xlu0 %3291 }
0x43af   :  { %4736 = vmatmul.mubr.msk.f32.vlgmr.msra.gmra.mrb[28].mxu1 %vm274_vm2, %v3292_v47 }
0x43b0   :  { %5007 = vmatpush3.bf16.msra.mxu1 %v6207_v53  ;;  %4757 = vmatprep.mubr.msk.f32.mxu1 %vm5469_vm0, %v5470_v2 }
0x43b1   :  { %5008 = vmatprep.subr.bf16.mxu1 %v5468_v1 }
0x43b4   :  { %5010 = vmatpush3.bf16.msra.mxu1 %v6222_v13 }
0x43b5   :  { %5017 = vmatprep.subr.bf16.mxu1 %v5468_v1 }
0x4482   :  { %v3361_v14 = vpop.f32.mrb[28].mxu1 }
0x4483   :  { %v3375_v48 = vadd.f32 %v3361_v14, %v6244_v21  ;;  %v4737_v43 = vpop.f32.mrb[29].mxu1  ;;  %v3366_v50 = vrot.slane %v3361_v14, 6 }
0x4485   :  { %v3377_v49 = vrot.slane %v3375_v48, 6  ;;  %v3368_v51 = vadd.f32 %v3366_v50, %v6260_v29 }
0x4487   :  { %3378 = vrot.lane.b32.xlu1 %v3377_v49, %s5471_s10  ;;  %v4210_v52 = vmul.f32 -1.442695, %v3368_v51 }
0x4489   :  { %5207 = vpow2.f32 %v4210_v52 }
0x4493   :  { %v5208_v54 = vpop.eup %5207 }
0x4494   :  { %v3372_v23 = vadd.f32 1.0, %v5208_v54 }
0x4496   :  { %5209 = vrcp.f32 %v3372_v23 }
0x44a0   :  { %v5210_v55 = vpop.eup %5209 }
0x44a1   :  { %v3388_v62 = vsub.f32 1.0, %v5210_v55  ;;  %v3396_v4 = vmul.f32 %v5210_v55, %v3394_v61 }
0x44f9   :  { %v3379_v56 = vpop.permute.xlu1 %3378 }
0x44fa   :  { %v3381_v57 = vmul.f32 %v5210_v55, %v3379_v56 }
0x44fc   :  { %3383 = vrot.lane.b32.xlu0 %v3381_v57, %s5471_s10 }
0x456e   :  { %v3384_v60 = vpop.permute.xlu0 %3383 }
0x456f   :  { %v3386_v58 = vadd.f32 %v3384_v60, %v6260_v29 }
0x4571   :  { %5211 = vtanh.f32 %v3386_v58 }
0x457b   :  { %v5212_v59 = vpop.eup %5211 }
0x457c   :  { %3390 = vrot.lane.b32.xlu1 %v5212_v59, %s5472_s3 }
0x45ee   :  { %v3391_v63 = vpop.permute.xlu1 %3390 }
0x45ef   :  { %v3393_v0 = vmul.f32 %v3391_v63, %v3388_v62 }
0x45f1   :  { %v3397_v36 = vadd.f32 %v3396_v4, %v3393_v0 }
0x45f3   :  { %v3399_v6 = vrot.slane %v3397_v36, 2  ;;  %v3503_v25 = vrot.slane %v3397_v36, 6 }
0x45f5   :  { %3400 = vrot.lane.b32.xlu0 %v3399_v6, %s5472_s3 }
0x4667   :  { %v3401_v3 = vpop.permute.xlu0 %3400 }
0x4668   :  { %4747 = vmatmul.mubr.msk.f32.vlgmr.msra.gmra.mrb[30].mxu0 %vm274_vm2, %v3401_v3 }
0x4669   :  { %5013 = vmatpush3.bf16.msra.mxu0 %v6207_v53  ;;  %4768 = vmatprep.mubr.msk.f32.mxu0 %vm5469_vm0, %v5470_v2 }
0x466a   :  { %5014 = vmatprep.subr.bf16.mxu0 %v5468_v1 }
0x466d   :  { %5016 = vmatpush3.bf16.msra.mxu0 %v6222_v13 }
0x466e   :  { %5023 = vmatprep.subr.bf16.mxu0 %v5468_v1 }
0x473b   :  { %v3470_v7 = vpop.f32.mrb[30].mxu0 }
0x473c   :  { %v3484_v8 = vadd.f32 %v3470_v7, %v6244_v21  ;;  %v4748_v10 = vpop.f32.mrb[31].mxu0  ;;  %v3475_v12 = vrot.slane %v3470_v7, 4 }
0x473e   :  { %v3486_v11 = vrot.slane %v3484_v8, 4  ;;  %v3477_v19 = vadd.f32 %v3475_v12, %v6260_v29 }
0x4740   :  { %3487 = vrot.lane.b32.xlu1 %v3486_v11, %s5471_s10  ;;  %v4212_v15 = vmul.f32 -1.442695, %v3477_v19 }
0x4742   :  { %5213 = vpow2.f32 %v4212_v15 }
0x474c   :  { %v5214_v45 = vpop.eup %5213 }
0x474d   :  { %v3481_v16 = vadd.f32 1.0, %v5214_v45 }
0x474f   :  { %5215 = vrcp.f32 %v3481_v16 }
0x4759   :  { %v5216_v18 = vpop.eup %5215 }
0x475a   :  { %v3497_v26 = vsub.f32 1.0, %v5216_v18  ;;  %v3505_v30 = vmul.f32 %v5216_v18, %v3503_v25 }
0x47b2   :  { %v3488_v20 = vpop.permute.xlu1 %3487 }
0x47b3   :  { %v3490_v17 = vmul.f32 %v5216_v18, %v3488_v20 }
0x47b5   :  { %3492 = vrot.lane.b32.xlu0 %v3490_v17, %s5471_s10 }
0x4827   :  { %v3493_v9 = vpop.permute.xlu0 %3492 }
0x4828   :  { %v3495_v22 = vadd.f32 %v3493_v9, %v6260_v29 }
0x482a   :  { %5217 = vtanh.f32 %v3495_v22 }
0x4834   :  { %v5218_v24 = vpop.eup %5217 }
0x4835   :  { %3499 = vrot.lane.b32.xlu1 %v5218_v24, %s5472_s3 }
0x48a7   :  { %v3500_v28 = vpop.permute.xlu1 %3499 }
0x48a8   :  { %v3502_v31 = vmul.f32 %v3500_v28, %v3497_v26 }
0x48aa   :  { %v3506_v32 = vadd.f32 %v3505_v30, %v3502_v31 }
0x48ac   :  { %v3508_v33 = vrot.slane %v3506_v32, 4  ;;  %v3612_v50 = vrot.slane %v3506_v32, 6 }
0x48ae   :  { %3509 = vrot.lane.b32.xlu0 %v3508_v33, %s5472_s3 }
0x4920   :  { %v3510_v34 = vpop.permute.xlu0 %3509 }
0x4921   :  { %4758 = vmatmul.mubr.msk.f32.vlgmr.msra.gmra.mrb[30].mxu1 %vm274_vm2, %v3510_v34 }
0x4922   :  { %5019 = vmatpush3.bf16.msra.mxu1 %v6207_v53  ;;  %4779 = vmatprep.mubr.msk.f32.mxu1 %vm5469_vm0, %v5470_v2 }
0x4923   :  { %5020 = vmatprep.subr.bf16.mxu1 %v5468_v1 }
0x4926   :  { %5022 = vmatpush3.bf16.msra.mxu1 %v6222_v13 }
0x4927   :  { %5029 = vmatprep.subr.bf16.mxu1 %v5468_v1 }
0x49f4   :  { %v3579_v35 = vpop.f32.mrb[30].mxu1 }
0x49f5   :  { %v3593_v38 = vadd.f32 %v3579_v35, %v6244_v21  ;;  %v4759_v37 = vpop.f32.mrb[31].mxu1  ;;  %v3584_v39 = vrot.slane %v3579_v35, 2 }
0x49f7   :  { %v3595_v5 = vrot.slane %v3593_v38, 2  ;;  %v3586_v40 = vadd.f32 %v3584_v39, %v6260_v29 }
0x49f9   :  { %3596 = vrot.lane.b32.xlu1 %v3595_v5, %s5471_s10  ;;  %v4214_v41 = vmul.f32 -1.442695, %v3586_v40 }
0x49fb   :  { %5219 = vpow2.f32 %v4214_v41 }
0x4a05   :  { %v5220_v42 = vpop.eup %5219 }
0x4a06   :  { %v3590_v44 = vadd.f32 1.0, %v5220_v42 }
0x4a08   :  { %5221 = vrcp.f32 %v3590_v44 }
0x4a12   :  { %v5222_v46 = vpop.eup %5221 }
0x4a13   :  { %v3606_v51 = vsub.f32 1.0, %v5222_v46  ;;  %v3614_v54 = vmul.f32 %v5222_v46, %v3612_v50 }
0x4a6b   :  { %v3597_v47 = vpop.permute.xlu1 %3596 }
0x4a6c   :  { %v3599_v14 = vmul.f32 %v5222_v46, %v3597_v47 }
0x4a6e   :  { %3601 = vrot.lane.b32.xlu0 %v3599_v14, %s5471_s10 }
0x4ae0   :  { %v3602_v48 = vpop.permute.xlu0 %3601 }
0x4ae1   :  { %v3604_v43 = vadd.f32 %v3602_v48, %v6260_v29 }
0x4ae3   :  { %5223 = vtanh.f32 %v3604_v43 }
0x4aed   :  { %v5224_v49 = vpop.eup %5223 }
0x4aee   :  { %3608 = vrot.lane.b32.xlu1 %v5224_v49, %s5472_s3 }
0x4b60   :  { %v3609_v52 = vpop.permute.xlu1 %3608 }
0x4b61   :  { %v3611_v23 = vmul.f32 %v3609_v52, %v3606_v51 }
0x4b63   :  { %v3615_v55 = vadd.f32 %v3614_v54, %v3611_v23 }
0x4b65   :  { %v3617_v56 = vrot.slane %v3615_v55, 6 }
0x4b67   :  { %3618 = vrot.lane.b32.xlu0 %v3617_v56, %s5472_s3 }
0x4bd9   :  { %v3619_v57 = vpop.permute.xlu0 %3618 }
0x4bda   :  { %4769 = vmatmul.mubr.msk.f32.vlgmr.msra.gmra.mrb[32].mxu0 %vm274_vm2, %v3619_v57 }
0x4bdb   :  { %5025 = vmatpush3.bf16.msra.mxu0 %v6207_v53  ;;  %4790 = vmatprep.mubr.msk.f32.mxu0 %vm5469_vm0, %v5470_v2 }
0x4bdc   :  { %5026 = vmatprep.subr.bf16.mxu0 %v5468_v1 }
0x4bdf   :  { %5028 = vmatpush3.bf16.msra.mxu0 %v6222_v13 }
0x4be0   :  { %5035 = vmatprep.subr.bf16.mxu0 %v5468_v1 }
0x4cad   :  { %v3688_v29 = vpop.f32.mrb[32].mxu0 }
0x4cae   :  { %v3699_v60 = vadd.f32 %v3688_v29, %v6244_v21  ;;  %v4770_v58 = vpop.f32.mrb[33].mxu0  ;;  %v3692_v59 = vadd.f32 %v3688_v29, %v6258_v27 }
0x4cb0   :  { %3701 = vrot.lane.b32.xlu1 %v3699_v60, %s5471_s10  ;;  %v4216_v61 = vmul.f32 -1.442695, %v3692_v59 }
0x4cb2   :  { %5225 = vpow2.f32 %v4216_v61 }
0x4cbc   :  { %v5226_v62 = vpop.eup %5225 }
0x4cbd   :  { %v3696_v63 = vadd.f32 1.0, %v5226_v62 }
0x4cbf   :  { %5227 = vrcp.f32 %v3696_v63 }
0x4cc9   :  { %v5228_v0 = vpop.eup %5227 }
0x4cca   :  { %v3711_v8 = vsub.f32 1.0, %v5228_v0  ;;  %v3718_v11 = vmul.f32 %v5228_v0, %v3617_v56 }
0x4d22   :  { %v3702_v4 = vpop.permute.xlu1 %3701 }
0x4d23   :  { %v3704_v36 = vmul.f32 %v5228_v0, %v3702_v4 }
0x4d25   :  { %3706 = vrot.lane.b32.xlu0 %v3704_v36, %s5471_s10 }
0x4d97   :  { %v3707_v6 = vpop.permute.xlu0 %3706 }
0x4d98   :  { %v3709_v3 = vadd.f32 %v3707_v6, %v6258_v27 }
0x4d9a   :  { %5229 = vtanh.f32 %v3709_v3 }
0x4da4   :  { %v5230_v7 = vpop.eup %5229 }
0x4da5   :  { %3713 = vrot.lane.b32.xlu1 %v5230_v7, %s5472_s3 }
0x4e17   :  { %v3714_v10 = vpop.permute.xlu1 %3713 }
0x4e18   :  { %v3716_v12 = vmul.f32 %v3714_v10, %v3711_v8 }
0x4e1a   :  { %v6322_v19 = vadd.f32 %v3718_v11, %v3716_v12 }
0x4e1c   :  { %3721 = vrot.lane.b32.xlu0 %v6322_v19, %s5472_s3  ;;  %v3824_v33 = vrot.slane %v6322_v19, 6 }
0x4e8e   :  { %v3722_v15 = vpop.permute.xlu0 %3721 }
0x4e8f   :  { %4780 = vmatmul.mubr.msk.f32.vlgmr.msra.gmra.mrb[32].mxu1 %vm274_vm2, %v3722_v15 }
0x4e90   :  { %5031 = vmatpush3.bf16.msra.mxu1 %v6207_v53  ;;  %4801 = vmatprep.mubr.msk.f32.mxu1 %vm5469_vm0, %v5470_v2 }
0x4e91   :  { %5032 = vmatprep.subr.bf16.mxu1 %v5468_v1 }
0x4e94   :  { %5034 = vmatpush3.bf16.msra.mxu1 %v6222_v13 }
0x4f62   :  { %v3791_v45 = vpop.f32.mrb[32].mxu1 }
0x4f63   :  { %v3805_v16 = vadd.f32 %v3791_v45, %v6244_v21  ;;  %v4781_v18 = vpop.f32.mrb[33].mxu1  ;;  %v3796_v17 = vrot.slane %v3791_v45, 6  ;;  %v4049_v45 = vld [vmem:[%s6396_s17] sm:$0xff] }
0x4f64   :  { %v4051_v18 = vld [vmem:[%s6396_s17 + $0x10] sm:$0xff] }
0x4f65   :  { %v3807_v20 = vrot.slane %v3805_v16, 6  ;;  %v3798_v9 = vadd.f32 %v3796_v17, %v6258_v27  ;;  %v4050_v16 = vld [vmem:[%s6396_s17 + $0x8] sm:$0xff]  ;;  %v4052_v17 = vld [vmem:[%s6396_s17 + $0x18] sm:$0xff] }
0x4f67   :  { %3808 = vrot.lane.b32.xlu1 %v3807_v20, %s5471_s10  ;;  %v4218_v22 = vmul.f32 -1.442695, %v3798_v9  ;;  %v5036_v20 = vpack.c.bf16 %v4050_v16, %v4049_v45 }
0x4f69   :  { %5231 = vpow2.f32 %v4218_v22 }
0x4f73   :  { %v5232_v53 = vpop.eup %5231 }
0x4f74   :  { %v3802_v24 = vadd.f32 1.0, %v5232_v53 }
0x4f76   :  { %5233 = vrcp.f32 %v3802_v24 }
0x4f80   :  { %v5234_v25 = vpop.eup %5233 }
0x4f81   :  { %v3818_v32 = vsub.f32 1.0, %v5234_v25  ;;  %v3826_v38 = vmul.f32 %v5234_v25, %v3824_v33 }
0x4fd9   :  { %v3809_v26 = vpop.permute.xlu1 %3808 }
0x4fda   :  { %v3811_v28 = vmul.f32 %v5234_v25, %v3809_v26 }
0x4fdc   :  { %3813 = vrot.lane.b32.xlu0 %v3811_v28, %s5471_s10 }
0x504e   :  { %v3814_v13 = vpop.permute.xlu0 %3813 }
0x504f   :  { %v3816_v30 = vadd.f32 %v3814_v13, %v6258_v27 }
0x5051   :  { %5235 = vtanh.f32 %v3816_v30 }
0x505b   :  { %v5236_v31 = vpop.eup %5235 }
0x505c   :  { %3820 = vrot.lane.b32.xlu1 %v5236_v31, %s5472_s3 }
0x50ce   :  { %v3821_v34 = vpop.permute.xlu1 %3820 }
0x50cf   :  { %v3823_v35 = vmul.f32 %v3821_v34, %v3818_v32  ;;  %v4223_v32 = vld [vmem:[#allocation2] ss:$0 sm:$0xff] }
0x50d1   :  { %v3827_v37 = vadd.f32 %v3826_v38, %v3823_v35 }
0x50d3   :  { %v3829_v5 = vrot.slane %v3827_v37, 2  ;;  %v3933_v55 = vrot.slane %v3827_v37, 6  ;;  %v4046_v58 = vsel %vm1139_vm3, %v6322_v19, %v3827_v37 }
0x50d5   :  { %3830 = vrot.lane.b32.xlu0 %v3829_v5, %s5472_s3 }
0x5147   :  { %v3831_v39 = vpop.permute.xlu0 %3830 }
0x5148   :  { %4791 = vmatmul.mubr.msk.f32.vlgmr.msra.gmra.mrb[34].mxu0 %vm274_vm2, %v3831_v39 }
0x5149   :  { %4812 = vmatprep.mubr.msk.f32.mxu0 %vm5469_vm0, %v5470_v2  ;;  %5037 = vmatpush3.bf16.msra.mxu0 %v5036_v20 }
0x514a   :  { %5038 = vmatprep.subr.bf16.mxu0 %v5468_v1 }
0x521b   :  { %v3900_v40 = vpop.f32.mrb[34].mxu0 }
0x521c   :  { %v3914_v41 = vadd.f32 %v3900_v40, %v6244_v21  ;;  %v4792_v42 = vpop.f32.mrb[35].mxu0  ;;  %v3905_v46 = vrot.slane %v3900_v40, 4 }
0x521e   :  { %v3916_v44 = vrot.slane %v3914_v41, 4  ;;  %v3907_v47 = vadd.f32 %v3905_v46, %v6258_v27 }
0x5220   :  { %3917 = vrot.lane.b32.xlu1 %v3916_v44, %s5471_s10  ;;  %v4220_v14 = vmul.f32 -1.442695, %v3907_v47 }
0x5222   :  { %5237 = vpow2.f32 %v4220_v14 }
0x522c   :  { %v5238_v48 = vpop.eup %5237 }
0x522d   :  { %v3911_v43 = vadd.f32 1.0, %v5238_v48 }
0x522f   :  { %5239 = vrcp.f32 %v3911_v43 }
0x5239   :  { %v5240_v49 = vpop.eup %5239 }
0x523a   :  { %v3927_v23 = vsub.f32 1.0, %v5240_v49  ;;  %v3935_v57 = vmul.f32 %v5240_v49, %v3933_v55 }
0x5292   :  { %v3918_v50 = vpop.permute.xlu1 %3917 }
0x5293   :  { %v3920_v51 = vmul.f32 %v5240_v49, %v3918_v50 }
0x5295   :  { %3922 = vrot.lane.b32.xlu0 %v3920_v51, %s5471_s10 }
0x5307   :  { %v3923_v2 = vpop.permute.xlu0 %3922 }
0x5308   :  { %v3925_v52 = vadd.f32 %v3923_v2, %v6258_v27 }
0x530a   :  { %5241 = vtanh.f32 %v3925_v52 }
0x5314   :  { %v5242_v54 = vpop.eup %5241 }
0x5315   :  { %3929 = vrot.lane.b32.xlu1 %v5242_v54, %s5472_s3 }
0x5387   :  { %v3930_v56 = vpop.permute.xlu1 %3929 }
0x5388   :  { %v3932_v29 = vmul.f32 %v3930_v56, %v3927_v23 }
0x538a   :  { %v3936_v60 = vadd.f32 %v3935_v57, %v3932_v29 }
0x538c   :  { %v3938_v59 = vrot.slane %v3936_v60, 4  ;;  %v4047_v61 = vsel %vm1141_vm4, %v4046_v58, %v3936_v60  ;;  %v4042_v53 = vrot.slane %v3936_v60, 6 }
0x538e   :  { %3939 = vrot.lane.b32.xlu0 %v3938_v59, %s5472_s3 }
0x5400   :  { %v3940_v62 = vpop.permute.xlu0 %3939 }
0x5401   :  { %4802 = vmatmul.mubr.msk.f32.vlgmr.msra.gmra.mrb[34].mxu1 %vm274_vm2, %v3940_v62 }
0x54d4   :  { %v4009_v63 = vpop.f32.mrb[34].mxu1 }
0x54d5   :  { %v4023_v0 = vadd.f32 %v4009_v63, %v6244_v21  ;;  %v4803_v4 = vpop.f32.mrb[35].mxu1  ;;  %v4014_v6 = vrot.slane %v4009_v63, 2 }
0x54d7   :  { %v4025_v36 = vrot.slane %v4023_v0, 2  ;;  %v4016_v3 = vadd.f32 %v4014_v6, %v6258_v27 }
0x54d9   :  { %4026 = vrot.lane.b32.xlu1 %v4025_v36, %s5471_s10  ;;  %v4222_v7 = vmul.f32 -1.442695, %v4016_v3 }
0x54db   :  { %5243 = vpow2.f32 %v4222_v7 }
0x54e5   :  { %v5244_v8 = vpop.eup %5243 }
0x54e6   :  { %v4020_v10 = vadd.f32 1.0, %v5244_v8 }
0x54e8   :  { %5245 = vrcp.f32 %v4020_v10 }
0x54f2   :  { %v5246_v11 = vpop.eup %5245 }
0x54f3   :  { %v4036_v22 = vsub.f32 1.0, %v5246_v11  ;;  %v4044_v25 = vmul.f32 %v5246_v11, %v4042_v53 }
0x554b   :  { %v4027_v12 = vpop.permute.xlu1 %4026 }
0x554c   :  { %v4029_v19 = vmul.f32 %v5246_v11, %v4027_v12 }
0x554e   :  { %4031 = vrot.lane.b32.xlu0 %v4029_v19, %s5471_s10 }
0x55c0   :  { %v4032_v15 = vpop.permute.xlu0 %4031 }
0x55c1   :  { %v4034_v21 = vadd.f32 %v4032_v15, %v6258_v27  ;;  %v5039_v27 = vpack.c.bf16 %v4052_v17, %v4051_v18 }
0x55c3   :  { %5247 = vtanh.f32 %v4034_v21  ;;  %5040 = vmatpush3.bf16.msra.mxu0 %v5039_v27 }
0x55cd   :  { %v5248_v9 = vpop.eup %5247 }
0x55ce   :  { %4038 = vrot.lane.b32.xlu1 %v5248_v9, %s5472_s3 }
0x5640   :  { %v4039_v24 = vpop.permute.xlu1 %4038 }
0x5641   :  { %v4041_v26 = vmul.f32 %v4039_v24, %v4036_v22 }
0x5643   :  { %v4045_v28 = vadd.f32 %v4044_v25, %v4041_v26 }
0x5645   :  { %v4048_v13 = vsel %vm1143_vm5, %v4047_v61, %v4045_v28 }
0x5646   :  { %v4061_v30 = vrot.slane %v4048_v13, 6 }
0x5648   :  { %4062 = vrot.lane.b32.xlu0 %v4061_v30, %s5472_s3 }
0x56ba   :  { %v4063_v31 = vpop.permute.xlu0 %4062 }
0x56bb   :  { %4813 = vmatmul.mubr.msk.f32.vlgmr.msra.gmra.mrb[36].mxu0 %vm274_vm2, %v4063_v31 }
0x578e   :  { %v4132_v1 = vpop.f32.mrb[36].mxu0 }
0x578f   :  { %v4133_v33 = vadd.f32 %v4223_v32, %v4132_v1  ;;  %v4814_v34 = vpop.f32.mrb[37].mxu0 }
0x5791   :  { %4137 = vst.msk [vmem:[%s6398_s19] sm:$0x3] %vm4136_vm6, %v4133_v33 }
0x5792   :  { %4142 = vsyncpa [#allocation4], 1 }
0x5793   :  { %4143 = vsyncpa [#allocation6], 1 }
0x5794   :  { %4144 = vsyncpa [#allocation9], 1 }
0x5795   :  { %4145 = vsyncpa [#allocation12], 1 }
0x5796   :  { %4146 = vsyncpa [#allocation15], 1 }

</bundles_post_ra>
